<compile_context>
chip_gen: v5e
topology: v5e:2x2
jax: 0.10.0
libtpu: 0.0.40
codegen_flags: <defaults>
</compile_context>

<pallas_src>
import functools

import jax
import jax.numpy as jnp
import numpy as np
from jax.experimental import pallas as pl
from jax.experimental.pallas import tpu as pltpu


# ------------------------------ Pallas kernel --------------------------------
def _fused_conv_kernel(x_ref, w_ref, b_ref, o_ref, *, offsets, tb, mrow):
    """One grid step = `tb` images.

    x_ref: (tb, Lpad, 4*C)  parity-folded, row-flattened input tile
    w_ref: (9, 4*C, OC)     per-offset-group weights (grid-resident)
    b_ref: (1, OC) f32      bias (grid-resident)
    o_ref: (tb, mrow, OC)   "wide" output rows, mrow = OH * Ws

    Row q = oh*Ws + ow of image t:
        out[q] = ReLU(b + sum_g  x[t, offsets[g] + q, :] @ w[g])
    equals the 5x5 / stride-2 VALID conv for ow < OW; columns ow >= OW are
    junk and are dropped by the caller (never fed back into valid outputs).
    """
    for t in range(tb):
        x_img = x_ref.at[t]                       # ref view, no load
        acc = None
        for g, off in enumerate(offsets):         # 9 static row offsets
            lhs = x_img[pl.ds(off, mrow), :]      # (mrow, 4C) windowed load
            part = jnp.dot(lhs, w_ref[g], preferred_element_type=jnp.float32)
            acc = part if acc is None else acc + part
        acc = acc + b_ref[...]                    # f32 bias
        o_ref[t] = jnp.maximum(acc, 0.0).astype(o_ref.dtype)


# ------------------------------ glue (JAX) ------------------------------------
def _round_up(x, m):
    return ((x + m - 1) // m) * m


def _fold_stride2(x_nhwc, oh, ow, dtype):
    """Bijective stride-2 parity fold (one cheap XLA pass, ~input-sized).

    (N, H, W, C) -> (N, Hs*Ws, 4*C) with
        xs[n, h2*Ws + w2, (ph*2+pw)*C + c] = x[n, 2*h2+ph, 2*w2+pw, c]
    (zero padded out of range).  Hs = OH+3, Ws = OW+2 gives every 5x5/stride-2
    tap of the VALID conv as a pure row offset (kh//2)*Ws + (kw//2)."""
    n, h, w, c = x_nhwc.shape
    hs, ws = oh + 3, ow + 2
    xp = jnp.pad(x_nhwc.astype(dtype),
                 ((0, 0), (0, 2 * hs - h), (0, 2 * ws - w), (0, 0)))
    subs = [xp[:, ph::2, pw::2, :] for ph in range(2) for pw in range(2)]
    xs = jnp.stack(subs, axis=3)                  # (N, Hs, Ws, 4, C)
    return xs.reshape(n, hs * ws, 4 * c), ws


def _pack_weights(w_oihw, dtype):
    """(OC, IC, 5, 5) -> (9, 4*IC, OC): one matrix per row-offset group
    (a, b) = (kh//2, kw//2); the (ph, pw) parity selects the IC-wide lane slot.
    Out-of-range taps (kh or kw == 5) stay zero."""
    oc, ic, kh, kw = w_oihw.shape
    w_hwio = jnp.transpose(w_oihw, (2, 3, 1, 0))          # (KH, KW, IC, OC)
    wg = jnp.zeros((9, 4 * ic, oc), dtype=jnp.float32)
    for a in range(3):
        for b in range(3):
            for ph in range(2):
                for pw in range(2):
                    h, w = 2 * a + ph, 2 * b + pw
                    if h < kh and w < kw:
                        sl = (ph * 2 + pw) * ic
                        wg = wg.at[a * 3 + b, sl:sl + ic, :].set(w_hwio[h, w])
    return wg.astype(dtype)


def _pick_batch_tile(n, lpad, mrow, c4, oc, itemsize, budget_bytes):
    """Largest divisor of N whose double-buffered, (sublane,lane)-padded
    in+out blocks fit the VMEM budget; capped at N//2 so the 'parallel' grid
    axis keeps >= 2 steps (both TensorCores busy) whenever N >= 2."""
    per_img = (_round_up(lpad, 16) + _round_up(mrow, 16)) * 128 * itemsize * 2
    w_bytes = 2 * 9 * _round_up(c4, 16) * _round_up(oc, 128) * itemsize
    tb = max(1, min(n, int(max(budget_bytes - w_bytes, per_img) // per_img)))
    tb = min(tb, max(1, n // 2))
    while n % tb:
        tb -= 1
    return tb


def conv2d_relu_fused(x_nhwc, w_oihw, b, *, compute_dtype=jnp.bfloat16,
                      vmem_budget_bytes=8 * 1024 * 1024):
    """Conv2d(kernel=5, stride=2, VALID) + ReLU as one Pallas kernel.
    Returns (wide_out, OW) with wide_out of shape (N, OH, OW+2, OC); columns
    >= OW are junk and must be sliced off by the consumer (free when fused
    into the next layer's fold or the final flatten)."""
    oc, ic, kh, kw = w_oihw.shape
    n, h, w, c = x_nhwc.shape
    assert (kh, kw) == (5, 5) and c == ic
    oh = (h - kh) // 2 + 1
    ow = (w - kw) // 2 + 1
    assert oh >= 1 and ow >= 1

    xs, ws = _fold_stride2(x_nhwc, oh, ow, compute_dtype)      # (N, Lpad, 4C)
    lpad = xs.shape[1]
    mrow = oh * ws
    c4 = 4 * c

    wg = _pack_weights(w_oihw, compute_dtype)                  # (9, 4C, OC)
    b_row = b.reshape(1, oc).astype(jnp.float32)
    offsets = tuple(a * ws + bb for a in range(3) for bb in range(3))

    itemsize = np.dtype(compute_dtype).itemsize
    tb = _pick_batch_tile(n, lpad, mrow, c4, oc, itemsize, vmem_budget_bytes)

    cost = pl.CostEstimate(
        flops=2 * n * mrow * len(offsets) * c4 * oc,
        transcendentals=0,
        bytes_accessed=int(n * lpad * c4 * itemsize + 9 * c4 * oc * itemsize
                           + n * mrow * oc * itemsize + oc * 4),
    )

    kernel = functools.partial(_fused_conv_kernel, offsets=offsets, tb=tb,
                               mrow=mrow)
    out_wide = pl.pallas_call(
        kernel,
        out_shape=jax.ShapeDtypeStruct((n, mrow, oc), compute_dtype),
        grid=(n // tb,),
        in_specs=[
            pl.BlockSpec((tb, lpad, c4), lambda i: (i, 0, 0)),
            pl.BlockSpec((9, c4, oc), lambda i: (0, 0, 0)),    # grid-resident
            pl.BlockSpec((1, oc), lambda i: (0, 0)),           # grid-resident
        ],
        out_specs=pl.BlockSpec((tb, mrow, oc), lambda i: (i, 0, 0)),
        compiler_params=pltpu.CompilerParams(
            dimension_semantics=("parallel",),
            vmem_limit_bytes=32 * 1024 * 1024,
        ),
        cost_estimate=cost,
    )(xs, wg, b_row)

    return out_wide.reshape(n, oh, ws, oc), ow


# ------------------------------ DQNBase forward -------------------------------
def dqn_base_forward(params, states_nchw, compute_dtype=jnp.bfloat16):
    """Equivalent to DQNBase(batch_norm=False).forward(states).
    bf16 compute by default on every generation (f32 MXU accumulation;
    bias/ReLU on the f32 accumulator); pass compute_dtype=jnp.float32 for a
    tight match to the f32 reference."""
    x = jnp.transpose(states_nchw, (0, 2, 3, 1))                 # NCHW -> NHWC
    for i in (1, 2, 3):
        wide, ow = conv2d_relu_fused(x, params[f"w{i}"], params[f"b{i}"],
                                     compute_dtype=compute_dtype)
        x = wide[:, :, :ow, :]       # drop junk columns; fuses into next fold
    x = jnp.transpose(x, (0, 3, 1, 2))                           # NHWC -> NCHW
    return x.reshape(x.shape[0], -1)                             # Flatten


# ---------------------------- reference (pure JAX) -----------------------------
def _conv_relu_ref(x_nchw, w, b, stride=2):
    y = jax.lax.conv_general_dilated(
        x_nchw, w, window_strides=(stride, stride), padding="VALID",
        dimension_numbers=("NCHW", "OIHW", "NCHW"))
    return jax.nn.relu(y + b[None, :, None, None])


def dqn_base_ref(params, states_nchw):
    x = _conv_relu_ref(states_nchw, params["w1"], params["b1"])
    x = _conv_relu_ref(x, params["w2"], params["b2"])
    x = _conv_relu_ref(x, params["w3"], params["b3"])
    return x.reshape(x.shape[0], -1)


# ------------------------------- param init ------------------------------------
def _init_conv(key, oc, ic, k):
    kw, kb = jax.random.split(key)
    fan_in = ic * k * k
    bound = 1.0 / float(np.sqrt(fan_in))
    w = jax.random.uniform(kw, (oc, ic, k, k), jnp.float32, -bound, bound)
    b = jax.random.uniform(kb, (oc,), jnp.float32, -bound, bound)
    return w, b


def make_params(num_channels, key):
    k1, k2, k3 = jax.random.split(key, 3)
    w1, b1 = _init_conv(k1, 16, num_channels, 5)
    w2, b2 = _init_conv(k2, 32, 16, 5)
    w3, b3 = _init_conv(k3, 32, 32, 5)
    return {"w1": w1, "b1": b1, "w2": w2, "b2": b2, "w3": w3, "b3": b3}


# ---------------------------------- main ----------------------------------------
if __name__ == "__main__":
    key = jax.random.PRNGKey(0)
    k_x, k_p = jax.random.split(key)

    # Small but valid shapes: three stride-2 5x5 VALID convs need H, W >= 29.
    N, C, H, W = 2, 4, 32, 32
    states = jax.random.normal(k_x, (N, C, H, W), jnp.float32)
    params = make_params(C, k_p)

    ref = jax.block_until_ready(dqn_base_ref(params, states))

    # f32 compute path: tight match to the reference.
    fwd_f32 = jax.jit(functools.partial(dqn_base_forward,
                                        compute_dtype=jnp.float32))
    out_f32 = jax.block_until_ready(fwd_f32(params, states))
    assert out_f32.shape == ref.shape, (out_f32.shape, ref.shape)
    assert jnp.allclose(out_f32, ref, atol=1e-4, rtol=1e-4), "f32 mismatch"

    # Default bf16 compute path (f32 accumulation); loose tolerance for
    # bf16 input/weight rounding.
    fwd_bf16 = jax.jit(dqn_base_forward)
    out_bf16 = jax.block_until_ready(fwd_bf16(params, states))
    assert out_bf16.shape == ref.shape, (out_bf16.shape, ref.shape)
    assert jnp.allclose(out_bf16.astype(jnp.float32), ref,
                        atol=1e-1, rtol=1e-1), "bf16 mismatch"

    print("KERNEL_OK")
</pallas_src>

<mosaic_0001>
module attributes {stable_mosaic.version = 11 : i64} {
  func.func @_fused_conv_kernel(%arg0: i32, %arg1: memref<1x272x16xf32, #tpu.memory_space<vmem>>, %arg2: memref<9x16x16xf32, #tpu.memory_space<vmem>>, %arg3: memref<1x16xf32, #tpu.memory_space<vmem>>, %arg4: memref<1x224x16xf32, #tpu.memory_space<vmem>>) attributes {dimension_semantics = [#tpu.dimension_semantics<parallel>], iteration_bounds = array<i64: 2>, scalar_prefetch = 0 : i64, scratch_operands = 0 : i64, tpu.core_type = #tpu.core_type<tc>, window_params = [{transform_indices = @transform_0, window_bounds = array<i64: 1, 272, 16>}, {pipeline_mode = #tpu.pipeline_mode<synchronous>, transform_indices = @transform_1, window_bounds = array<i64: 9, 16, 16>}, {pipeline_mode = #tpu.pipeline_mode<synchronous>, transform_indices = @transform_2, window_bounds = array<i64: 1, 16>}, {transform_indices = @transform_3, window_bounds = array<i64: 1, 224, 16>}]} {
    %c0_i32 = arith.constant 0 : i32
    %c0_i32_0 = arith.constant 0 : i32
    %c0_i32_1 = arith.constant 0 : i32
    %0 = tpu.memref_slice %arg1[%c0_i32, %c0_i32_0, %c0_i32_1] : memref<1x272x16xf32, #tpu.memory_space<vmem>> -> memref<1x272x16xf32, #tpu.memory_space<vmem>>
    %1 = tpu.memref_squeeze %0 : memref<1x272x16xf32, #tpu.memory_space<vmem>> -> memref<272x16xf32, #tpu.memory_space<vmem>>
    %c0 = arith.constant 0 : index
    %c0_2 = arith.constant 0 : index
    %2 = vector.load %1[%c0, %c0_2] : memref<272x16xf32, #tpu.memory_space<vmem>>, vector<224x16xf32>
    %c0_3 = arith.constant 0 : index
    %c0_4 = arith.constant 0 : index
    %c0_5 = arith.constant 0 : index
    %3 = vector.load %arg2[%c0_3, %c0_4, %c0_5] : memref<9x16x16xf32, #tpu.memory_space<vmem>>, vector<1x16x16xf32>
    %4 = vector.shape_cast %3 : vector<1x16x16xf32> to vector<16x16xf32>
    %cst = arith.constant dense<0.000000e+00> : vector<224x16xf32>
    %5 = tpu.matmul %2, %4, %cst {dimension_numbers = #tpu.dot_dimension_numbers<[1], [0], [0], [1], [0, 0, 1, 1], [], []>} : vector<224x16xf32>, vector<16x16xf32>, vector<224x16xf32> -> vector<224x16xf32>
    %c0_i32_6 = arith.constant 0 : i32
    %c0_i32_7 = arith.constant 0 : i32
    %c0_i32_8 = arith.constant 0 : i32
    %6 = tpu.memref_slice %arg1[%c0_i32_6, %c0_i32_7, %c0_i32_8] : memref<1x272x16xf32, #tpu.memory_space<vmem>> -> memref<1x272x16xf32, #tpu.memory_space<vmem>>
    %7 = tpu.memref_squeeze %6 : memref<1x272x16xf32, #tpu.memory_space<vmem>> -> memref<272x16xf32, #tpu.memory_space<vmem>>
    %c1 = arith.constant 1 : index
    %c0_9 = arith.constant 0 : index
    %8 = vector.load %7[%c1, %c0_9] : memref<272x16xf32, #tpu.memory_space<vmem>>, vector<224x16xf32>
    %c1_10 = arith.constant 1 : index
    %c0_11 = arith.constant 0 : index
    %c0_12 = arith.constant 0 : index
    %9 = vector.load %arg2[%c1_10, %c0_11, %c0_12] : memref<9x16x16xf32, #tpu.memory_space<vmem>>, vector<1x16x16xf32>
    %10 = vector.shape_cast %9 : vector<1x16x16xf32> to vector<16x16xf32>
    %cst_13 = arith.constant dense<0.000000e+00> : vector<224x16xf32>
    %11 = tpu.matmul %8, %10, %cst_13 {dimension_numbers = #tpu.dot_dimension_numbers<[1], [0], [0], [1], [0, 0, 1, 1], [], []>} : vector<224x16xf32>, vector<16x16xf32>, vector<224x16xf32> -> vector<224x16xf32>
    %12 = arith.addf %5, %11 : vector<224x16xf32>
    %c0_i32_14 = arith.constant 0 : i32
    %c0_i32_15 = arith.constant 0 : i32
    %c0_i32_16 = arith.constant 0 : i32
    %13 = tpu.memref_slice %arg1[%c0_i32_14, %c0_i32_15, %c0_i32_16] : memref<1x272x16xf32, #tpu.memory_space<vmem>> -> memref<1x272x16xf32, #tpu.memory_space<vmem>>
    %14 = tpu.memref_squeeze %13 : memref<1x272x16xf32, #tpu.memory_space<vmem>> -> memref<272x16xf32, #tpu.memory_space<vmem>>
    %c2 = arith.constant 2 : index
    %c0_17 = arith.constant 0 : index
    %15 = vector.load %14[%c2, %c0_17] : memref<272x16xf32, #tpu.memory_space<vmem>>, vector<224x16xf32>
    %c2_18 = arith.constant 2 : index
    %c0_19 = arith.constant 0 : index
    %c0_20 = arith.constant 0 : index
    %16 = vector.load %arg2[%c2_18, %c0_19, %c0_20] : memref<9x16x16xf32, #tpu.memory_space<vmem>>, vector<1x16x16xf32>
    %17 = vector.shape_cast %16 : vector<1x16x16xf32> to vector<16x16xf32>
    %cst_21 = arith.constant dense<0.000000e+00> : vector<224x16xf32>
    %18 = tpu.matmul %15, %17, %cst_21 {dimension_numbers = #tpu.dot_dimension_numbers<[1], [0], [0], [1], [0, 0, 1, 1], [], []>} : vector<224x16xf32>, vector<16x16xf32>, vector<224x16xf32> -> vector<224x16xf32>
    %19 = arith.addf %12, %18 : vector<224x16xf32>
    %c0_i32_22 = arith.constant 0 : i32
    %c0_i32_23 = arith.constant 0 : i32
    %c0_i32_24 = arith.constant 0 : i32
    %20 = tpu.memref_slice %arg1[%c0_i32_22, %c0_i32_23, %c0_i32_24] : memref<1x272x16xf32, #tpu.memory_space<vmem>> -> memref<1x272x16xf32, #tpu.memory_space<vmem>>
    %21 = tpu.memref_squeeze %20 : memref<1x272x16xf32, #tpu.memory_space<vmem>> -> memref<272x16xf32, #tpu.memory_space<vmem>>
    %c16 = arith.constant 16 : index
    %c0_25 = arith.constant 0 : index
    %22 = vector.load %21[%c16, %c0_25] : memref<272x16xf32, #tpu.memory_space<vmem>>, vector<224x16xf32>
    %c3 = arith.constant 3 : index
    %c0_26 = arith.constant 0 : index
    %c0_27 = arith.constant 0 : index
    %23 = vector.load %arg2[%c3, %c0_26, %c0_27] : memref<9x16x16xf32, #tpu.memory_space<vmem>>, vector<1x16x16xf32>
    %24 = vector.shape_cast %23 : vector<1x16x16xf32> to vector<16x16xf32>
    %cst_28 = arith.constant dense<0.000000e+00> : vector<224x16xf32>
    %25 = tpu.matmul %22, %24, %cst_28 {dimension_numbers = #tpu.dot_dimension_numbers<[1], [0], [0], [1], [0, 0, 1, 1], [], []>} : vector<224x16xf32>, vector<16x16xf32>, vector<224x16xf32> -> vector<224x16xf32>
    %26 = arith.addf %19, %25 : vector<224x16xf32>
    %c0_i32_29 = arith.constant 0 : i32
    %c0_i32_30 = arith.constant 0 : i32
    %c0_i32_31 = arith.constant 0 : i32
    %27 = tpu.memref_slice %arg1[%c0_i32_29, %c0_i32_30, %c0_i32_31] : memref<1x272x16xf32, #tpu.memory_space<vmem>> -> memref<1x272x16xf32, #tpu.memory_space<vmem>>
    %28 = tpu.memref_squeeze %27 : memref<1x272x16xf32, #tpu.memory_space<vmem>> -> memref<272x16xf32, #tpu.memory_space<vmem>>
    %c17 = arith.constant 17 : index
    %c0_32 = arith.constant 0 : index
    %29 = vector.load %28[%c17, %c0_32] : memref<272x16xf32, #tpu.memory_space<vmem>>, vector<224x16xf32>
    %c4 = arith.constant 4 : index
    %c0_33 = arith.constant 0 : index
    %c0_34 = arith.constant 0 : index
    %30 = vector.load %arg2[%c4, %c0_33, %c0_34] : memref<9x16x16xf32, #tpu.memory_space<vmem>>, vector<1x16x16xf32>
    %31 = vector.shape_cast %30 : vector<1x16x16xf32> to vector<16x16xf32>
    %cst_35 = arith.constant dense<0.000000e+00> : vector<224x16xf32>
    %32 = tpu.matmul %29, %31, %cst_35 {dimension_numbers = #tpu.dot_dimension_numbers<[1], [0], [0], [1], [0, 0, 1, 1], [], []>} : vector<224x16xf32>, vector<16x16xf32>, vector<224x16xf32> -> vector<224x16xf32>
    %33 = arith.addf %26, %32 : vector<224x16xf32>
    %c0_i32_36 = arith.constant 0 : i32
    %c0_i32_37 = arith.constant 0 : i32
    %c0_i32_38 = arith.constant 0 : i32
    %34 = tpu.memref_slice %arg1[%c0_i32_36, %c0_i32_37, %c0_i32_38] : memref<1x272x16xf32, #tpu.memory_space<vmem>> -> memref<1x272x16xf32, #tpu.memory_space<vmem>>
    %35 = tpu.memref_squeeze %34 : memref<1x272x16xf32, #tpu.memory_space<vmem>> -> memref<272x16xf32, #tpu.memory_space<vmem>>
    %c18 = arith.constant 18 : index
    %c0_39 = arith.constant 0 : index
    %36 = vector.load %35[%c18, %c0_39] : memref<272x16xf32, #tpu.memory_space<vmem>>, vector<224x16xf32>
    %c5 = arith.constant 5 : index
    %c0_40 = arith.constant 0 : index
    %c0_41 = arith.constant 0 : index
    %37 = vector.load %arg2[%c5, %c0_40, %c0_41] : memref<9x16x16xf32, #tpu.memory_space<vmem>>, vector<1x16x16xf32>
    %38 = vector.shape_cast %37 : vector<1x16x16xf32> to vector<16x16xf32>
    %cst_42 = arith.constant dense<0.000000e+00> : vector<224x16xf32>
    %39 = tpu.matmul %36, %38, %cst_42 {dimension_numbers = #tpu.dot_dimension_numbers<[1], [0], [0], [1], [0, 0, 1, 1], [], []>} : vector<224x16xf32>, vector<16x16xf32>, vector<224x16xf32> -> vector<224x16xf32>
    %40 = arith.addf %33, %39 : vector<224x16xf32>
    %c0_i32_43 = arith.constant 0 : i32
    %c0_i32_44 = arith.constant 0 : i32
    %c0_i32_45 = arith.constant 0 : i32
    %41 = tpu.memref_slice %arg1[%c0_i32_43, %c0_i32_44, %c0_i32_45] : memref<1x272x16xf32, #tpu.memory_space<vmem>> -> memref<1x272x16xf32, #tpu.memory_space<vmem>>
    %42 = tpu.memref_squeeze %41 : memref<1x272x16xf32, #tpu.memory_space<vmem>> -> memref<272x16xf32, #tpu.memory_space<vmem>>
    %c32 = arith.constant 32 : index
    %c0_46 = arith.constant 0 : index
    %43 = vector.load %42[%c32, %c0_46] : memref<272x16xf32, #tpu.memory_space<vmem>>, vector<224x16xf32>
    %c6 = arith.constant 6 : index
    %c0_47 = arith.constant 0 : index
    %c0_48 = arith.constant 0 : index
    %44 = vector.load %arg2[%c6, %c0_47, %c0_48] : memref<9x16x16xf32, #tpu.memory_space<vmem>>, vector<1x16x16xf32>
    %45 = vector.shape_cast %44 : vector<1x16x16xf32> to vector<16x16xf32>
    %cst_49 = arith.constant dense<0.000000e+00> : vector<224x16xf32>
    %46 = tpu.matmul %43, %45, %cst_49 {dimension_numbers = #tpu.dot_dimension_numbers<[1], [0], [0], [1], [0, 0, 1, 1], [], []>} : vector<224x16xf32>, vector<16x16xf32>, vector<224x16xf32> -> vector<224x16xf32>
    %47 = arith.addf %40, %46 : vector<224x16xf32>
    %c0_i32_50 = arith.constant 0 : i32
    %c0_i32_51 = arith.constant 0 : i32
    %c0_i32_52 = arith.constant 0 : i32
    %48 = tpu.memref_slice %arg1[%c0_i32_50, %c0_i32_51, %c0_i32_52] : memref<1x272x16xf32, #tpu.memory_space<vmem>> -> memref<1x272x16xf32, #tpu.memory_space<vmem>>
    %49 = tpu.memref_squeeze %48 : memref<1x272x16xf32, #tpu.memory_space<vmem>> -> memref<272x16xf32, #tpu.memory_space<vmem>>
    %c33 = arith.constant 33 : index
    %c0_53 = arith.constant 0 : index
    %50 = vector.load %49[%c33, %c0_53] : memref<272x16xf32, #tpu.memory_space<vmem>>, vector<224x16xf32>
    %c7 = arith.constant 7 : index
    %c0_54 = arith.constant 0 : index
    %c0_55 = arith.constant 0 : index
    %51 = vector.load %arg2[%c7, %c0_54, %c0_55] : memref<9x16x16xf32, #tpu.memory_space<vmem>>, vector<1x16x16xf32>
    %52 = vector.shape_cast %51 : vector<1x16x16xf32> to vector<16x16xf32>
    %cst_56 = arith.constant dense<0.000000e+00> : vector<224x16xf32>
    %53 = tpu.matmul %50, %52, %cst_56 {dimension_numbers = #tpu.dot_dimension_numbers<[1], [0], [0], [1], [0, 0, 1, 1], [], []>} : vector<224x16xf32>, vector<16x16xf32>, vector<224x16xf32> -> vector<224x16xf32>
    %54 = arith.addf %47, %53 : vector<224x16xf32>
    %c0_i32_57 = arith.constant 0 : i32
    %c0_i32_58 = arith.constant 0 : i32
    %c0_i32_59 = arith.constant 0 : i32
    %55 = tpu.memref_slice %arg1[%c0_i32_57, %c0_i32_58, %c0_i32_59] : memref<1x272x16xf32, #tpu.memory_space<vmem>> -> memref<1x272x16xf32, #tpu.memory_space<vmem>>
    %56 = tpu.memref_squeeze %55 : memref<1x272x16xf32, #tpu.memory_space<vmem>> -> memref<272x16xf32, #tpu.memory_space<vmem>>
    %c34 = arith.constant 34 : index
    %c0_60 = arith.constant 0 : index
    %57 = vector.load %56[%c34, %c0_60] : memref<272x16xf32, #tpu.memory_space<vmem>>, vector<224x16xf32>
    %c8 = arith.constant 8 : index
    %c0_61 = arith.constant 0 : index
    %c0_62 = arith.constant 0 : index
    %58 = vector.load %arg2[%c8, %c0_61, %c0_62] : memref<9x16x16xf32, #tpu.memory_space<vmem>>, vector<1x16x16xf32>
    %59 = vector.shape_cast %58 : vector<1x16x16xf32> to vector<16x16xf32>
    %cst_63 = arith.constant dense<0.000000e+00> : vector<224x16xf32>
    %60 = tpu.matmul %57, %59, %cst_63 {dimension_numbers = #tpu.dot_dimension_numbers<[1], [0], [0], [1], [0, 0, 1, 1], [], []>} : vector<224x16xf32>, vector<16x16xf32>, vector<224x16xf32> -> vector<224x16xf32>
    %61 = arith.addf %54, %60 : vector<224x16xf32>
    %c0_64 = arith.constant 0 : index
    %c0_65 = arith.constant 0 : index
    %62 = vector.load %arg3[%c0_64, %c0_65] : memref<1x16xf32, #tpu.memory_space<vmem>>, vector<1x16xf32>
    %63 = vector.broadcast %62 : vector<1x16xf32> to vector<224x16xf32>
    %64 = arith.addf %61, %63 : vector<224x16xf32>
    %cst_66 = arith.constant 0.000000e+00 : f32
    %65 = vector.broadcast %cst_66 : f32 to vector<224x16xf32>
    %66 = arith.maximumf %64, %65 : vector<224x16xf32>
    %c0_67 = arith.constant 0 : index
    %c0_68 = arith.constant 0 : index
    %c0_69 = arith.constant 0 : index
    %67 = vector.load %arg4[%c0_67, %c0_68, %c0_69] : memref<1x224x16xf32, #tpu.memory_space<vmem>>, vector<1x224x16xf32>
    %68 = vector.shape_cast %67 : vector<1x224x16xf32> to vector<224x16xf32>
    %69 = vector.shape_cast %66 : vector<224x16xf32> to vector<1x224x16xf32>
    tpu.vector_store %arg4[%c0_67, %c0_68, %c0_69], %69 {strides = array<i32>} : memref<1x224x16xf32, #tpu.memory_space<vmem>>, vector<1x224x16xf32>,
    return
  }
  func.func @transform_0(%arg0: i32) -> (i32, i32, i32) {
    %c0_i32 = arith.constant 0 : i32
    %c0_i32_0 = arith.constant 0 : i32
    %c0_i32_1 = arith.constant 0 : i32
    return %arg0, %c0_i32, %c0_i32_0 : i32, i32, i32
  }
  func.func @transform_1(%arg0: i32) -> (i32, i32, i32) {
    %c0_i32 = arith.constant 0 : i32
    %c0_i32_0 = arith.constant 0 : i32
    %c0_i32_1 = arith.constant 0 : i32
    %c0_i32_2 = arith.constant 0 : i32
    return %c0_i32, %c0_i32_0, %c0_i32_1 : i32, i32, i32
  }
  func.func @transform_2(%arg0: i32) -> (i32, i32) {
    %c0_i32 = arith.constant 0 : i32
    %c0_i32_0 = arith.constant 0 : i32
    %c0_i32_1 = arith.constant 0 : i32
    return %c0_i32, %c0_i32_0 : i32, i32
  }
  func.func @transform_3(%arg0: i32) -> (i32, i32, i32) {
    %c0_i32 = arith.constant 0 : i32
    %c0_i32_0 = arith.constant 0 : i32
    %c0_i32_1 = arith.constant 0 : i32
    return %arg0, %c0_i32, %c0_i32_0 : i32, i32, i32
  }
}

module attributes {stable_mosaic.version = 11 : i64} {
  func.func @_fused_conv_kernel(%arg0: i32, %arg1: memref<1x56x64xf32, #tpu.memory_space<vmem>>, %arg2: memref<9x64x32xf32, #tpu.memory_space<vmem>>, %arg3: memref<1x32xf32, #tpu.memory_space<vmem>>, %arg4: memref<1x35x32xf32, #tpu.memory_space<vmem>>) attributes {dimension_semantics = [#tpu.dimension_semantics<parallel>], iteration_bounds = array<i64: 2>, scalar_prefetch = 0 : i64, scratch_operands = 0 : i64, tpu.core_type = #tpu.core_type<tc>, window_params = [{transform_indices = @transform_0, window_bounds = array<i64: 1, 56, 64>}, {pipeline_mode = #tpu.pipeline_mode<synchronous>, transform_indices = @transform_1, window_bounds = array<i64: 9, 64, 32>}, {pipeline_mode = #tpu.pipeline_mode<synchronous>, transform_indices = @transform_2, window_bounds = array<i64: 1, 32>}, {transform_indices = @transform_3, window_bounds = array<i64: 1, 35, 32>}]} {
    %c0_i32 = arith.constant 0 : i32
    %c0_i32_0 = arith.constant 0 : i32
    %c0_i32_1 = arith.constant 0 : i32
    %0 = tpu.memref_slice %arg1[%c0_i32, %c0_i32_0, %c0_i32_1] : memref<1x56x64xf32, #tpu.memory_space<vmem>> -> memref<1x56x64xf32, #tpu.memory_space<vmem>>
    %1 = tpu.memref_squeeze %0 : memref<1x56x64xf32, #tpu.memory_space<vmem>> -> memref<56x64xf32, #tpu.memory_space<vmem>>
    %c0 = arith.constant 0 : index
    %c0_2 = arith.constant 0 : index
    %2 = vector.load %1[%c0, %c0_2] : memref<56x64xf32, #tpu.memory_space<vmem>>, vector<35x64xf32>
    %c0_3 = arith.constant 0 : index
    %c0_4 = arith.constant 0 : index
    %c0_5 = arith.constant 0 : index
    %3 = vector.load %arg2[%c0_3, %c0_4, %c0_5] : memref<9x64x32xf32, #tpu.memory_space<vmem>>, vector<1x64x32xf32>
    %4 = vector.shape_cast %3 : vector<1x64x32xf32> to vector<64x32xf32>
    %cst = arith.constant dense<0.000000e+00> : vector<35x32xf32>
    %5 = tpu.matmul %2, %4, %cst {dimension_numbers = #tpu.dot_dimension_numbers<[1], [0], [0], [1], [0, 0, 1, 1], [], []>} : vector<35x64xf32>, vector<64x32xf32>, vector<35x32xf32> -> vector<35x32xf32>
    %c0_i32_6 = arith.constant 0 : i32
    %c0_i32_7 = arith.constant 0 : i32
    %c0_i32_8 = arith.constant 0 : i32
    %6 = tpu.memref_slice %arg1[%c0_i32_6, %c0_i32_7, %c0_i32_8] : memref<1x56x64xf32, #tpu.memory_space<vmem>> -> memref<1x56x64xf32, #tpu.memory_space<vmem>>
    %7 = tpu.memref_squeeze %6 : memref<1x56x64xf32, #tpu.memory_space<vmem>> -> memref<56x64xf32, #tpu.memory_space<vmem>>
    %c1 = arith.constant 1 : index
    %c0_9 = arith.constant 0 : index
    %8 = vector.load %7[%c1, %c0_9] : memref<56x64xf32, #tpu.memory_space<vmem>>, vector<35x64xf32>
    %c1_10 = arith.constant 1 : index
    %c0_11 = arith.constant 0 : index
    %c0_12 = arith.constant 0 : index
    %9 = vector.load %arg2[%c1_10, %c0_11, %c0_12] : memref<9x64x32xf32, #tpu.memory_space<vmem>>, vector<1x64x32xf32>
    %10 = vector.shape_cast %9 : vector<1x64x32xf32> to vector<64x32xf32>
    %cst_13 = arith.constant dense<0.000000e+00> : vector<35x32xf32>
    %11 = tpu.matmul %8, %10, %cst_13 {dimension_numbers = #tpu.dot_dimension_numbers<[1], [0], [0], [1], [0, 0, 1, 1], [], []>} : vector<35x64xf32>, vector<64x32xf32>, vector<35x32xf32> -> vector<35x32xf32>
    %12 = arith.addf %5, %11 : vector<35x32xf32>
    %c0_i32_14 = arith.constant 0 : i32
    %c0_i32_15 = arith.constant 0 : i32
    %c0_i32_16 = arith.constant 0 : i32
    %13 = tpu.memref_slice %arg1[%c0_i32_14, %c0_i32_15, %c0_i32_16] : memref<1x56x64xf32, #tpu.memory_space<vmem>> -> memref<1x56x64xf32, #tpu.memory_space<vmem>>
    %14 = tpu.memref_squeeze %13 : memref<1x56x64xf32, #tpu.memory_space<vmem>> -> memref<56x64xf32, #tpu.memory_space<vmem>>
    %c2 = arith.constant 2 : index
    %c0_17 = arith.constant 0 : index
    %15 = vector.load %14[%c2, %c0_17] : memref<56x64xf32, #tpu.memory_space<vmem>>, vector<35x64xf32>
    %c2_18 = arith.constant 2 : index
    %c0_19 = arith.constant 0 : index
    %c0_20 = arith.constant 0 : index
    %16 = vector.load %arg2[%c2_18, %c0_19, %c0_20] : memref<9x64x32xf32, #tpu.memory_space<vmem>>, vector<1x64x32xf32>
    %17 = vector.shape_cast %16 : vector<1x64x32xf32> to vector<64x32xf32>
    %cst_21 = arith.constant dense<0.000000e+00> : vector<35x32xf32>
    %18 = tpu.matmul %15, %17, %cst_21 {dimension_numbers = #tpu.dot_dimension_numbers<[1], [0], [0], [1], [0, 0, 1, 1], [], []>} : vector<35x64xf32>, vector<64x32xf32>, vector<35x32xf32> -> vector<35x32xf32>
    %19 = arith.addf %12, %18 : vector<35x32xf32>
    %c0_i32_22 = arith.constant 0 : i32
    %c0_i32_23 = arith.constant 0 : i32
    %c0_i32_24 = arith.constant 0 : i32
    %20 = tpu.memref_slice %arg1[%c0_i32_22, %c0_i32_23, %c0_i32_24] : memref<1x56x64xf32, #tpu.memory_space<vmem>> -> memref<1x56x64xf32, #tpu.memory_space<vmem>>
    %21 = tpu.memref_squeeze %20 : memref<1x56x64xf32, #tpu.memory_space<vmem>> -> memref<56x64xf32, #tpu.memory_space<vmem>>
    %c7 = arith.constant 7 : index
    %c0_25 = arith.constant 0 : index
    %22 = vector.load %21[%c7, %c0_25] : memref<56x64xf32, #tpu.memory_space<vmem>>, vector<35x64xf32>
    %c3 = arith.constant 3 : index
    %c0_26 = arith.constant 0 : index
    %c0_27 = arith.constant 0 : index
    %23 = vector.load %arg2[%c3, %c0_26, %c0_27] : memref<9x64x32xf32, #tpu.memory_space<vmem>>, vector<1x64x32xf32>
    %24 = vector.shape_cast %23 : vector<1x64x32xf32> to vector<64x32xf32>
    %cst_28 = arith.constant dense<0.000000e+00> : vector<35x32xf32>
    %25 = tpu.matmul %22, %24, %cst_28 {dimension_numbers = #tpu.dot_dimension_numbers<[1], [0], [0], [1], [0, 0, 1, 1], [], []>} : vector<35x64xf32>, vector<64x32xf32>, vector<35x32xf32> -> vector<35x32xf32>
    %26 = arith.addf %19, %25 : vector<35x32xf32>
    %c0_i32_29 = arith.constant 0 : i32
    %c0_i32_30 = arith.constant 0 : i32
    %c0_i32_31 = arith.constant 0 : i32
    %27 = tpu.memref_slice %arg1[%c0_i32_29, %c0_i32_30, %c0_i32_31] : memref<1x56x64xf32, #tpu.memory_space<vmem>> -> memref<1x56x64xf32, #tpu.memory_space<vmem>>
    %28 = tpu.memref_squeeze %27 : memref<1x56x64xf32, #tpu.memory_space<vmem>> -> memref<56x64xf32, #tpu.memory_space<vmem>>
    %c8 = arith.constant 8 : index
    %c0_32 = arith.constant 0 : index
    %29 = vector.load %28[%c8, %c0_32] : memref<56x64xf32, #tpu.memory_space<vmem>>, vector<35x64xf32>
    %c4 = arith.constant 4 : index
    %c0_33 = arith.constant 0 : index
    %c0_34 = arith.constant 0 : index
    %30 = vector.load %arg2[%c4, %c0_33, %c0_34] : memref<9x64x32xf32, #tpu.memory_space<vmem>>, vector<1x64x32xf32>
    %31 = vector.shape_cast %30 : vector<1x64x32xf32> to vector<64x32xf32>
    %cst_35 = arith.constant dense<0.000000e+00> : vector<35x32xf32>
    %32 = tpu.matmul %29, %31, %cst_35 {dimension_numbers = #tpu.dot_dimension_numbers<[1], [0], [0], [1], [0, 0, 1, 1], [], []>} : vector<35x64xf32>, vector<64x32xf32>, vector<35x32xf32> -> vector<35x32xf32>
    %33 = arith.addf %26, %32 : vector<35x32xf32>
    %c0_i32_36 = arith.constant 0 : i32
    %c0_i32_37 = arith.constant 0 : i32
    %c0_i32_38 = arith.constant 0 : i32
    %34 = tpu.memref_slice %arg1[%c0_i32_36, %c0_i32_37, %c0_i32_38] : memref<1x56x64xf32, #tpu.memory_space<vmem>> -> memref<1x56x64xf32, #tpu.memory_space<vmem>>
    %35 = tpu.memref_squeeze %34 : memref<1x56x64xf32, #tpu.memory_space<vmem>> -> memref<56x64xf32, #tpu.memory_space<vmem>>
    %c9 = arith.constant 9 : index
    %c0_39 = arith.constant 0 : index
    %36 = vector.load %35[%c9, %c0_39] : memref<56x64xf32, #tpu.memory_space<vmem>>, vector<35x64xf32>
    %c5 = arith.constant 5 : index
    %c0_40 = arith.constant 0 : index
    %c0_41 = arith.constant 0 : index
    %37 = vector.load %arg2[%c5, %c0_40, %c0_41] : memref<9x64x32xf32, #tpu.memory_space<vmem>>, vector<1x64x32xf32>
    %38 = vector.shape_cast %37 : vector<1x64x32xf32> to vector<64x32xf32>
    %cst_42 = arith.constant dense<0.000000e+00> : vector<35x32xf32>
    %39 = tpu.matmul %36, %38, %cst_42 {dimension_numbers = #tpu.dot_dimension_numbers<[1], [0], [0], [1], [0, 0, 1, 1], [], []>} : vector<35x64xf32>, vector<64x32xf32>, vector<35x32xf32> -> vector<35x32xf32>
    %40 = arith.addf %33, %39 : vector<35x32xf32>
    %c0_i32_43 = arith.constant 0 : i32
    %c0_i32_44 = arith.constant 0 : i32
    %c0_i32_45 = arith.constant 0 : i32
    %41 = tpu.memref_slice %arg1[%c0_i32_43, %c0_i32_44, %c0_i32_45] : memref<1x56x64xf32, #tpu.memory_space<vmem>> -> memref<1x56x64xf32, #tpu.memory_space<vmem>>
    %42 = tpu.memref_squeeze %41 : memref<1x56x64xf32, #tpu.memory_space<vmem>> -> memref<56x64xf32, #tpu.memory_space<vmem>>
    %c14 = arith.constant 14 : index
    %c0_46 = arith.constant 0 : index
    %43 = vector.load %42[%c14, %c0_46] : memref<56x64xf32, #tpu.memory_space<vmem>>, vector<35x64xf32>
    %c6 = arith.constant 6 : index
    %c0_47 = arith.constant 0 : index
    %c0_48 = arith.constant 0 : index
    %44 = vector.load %arg2[%c6, %c0_47, %c0_48] : memref<9x64x32xf32, #tpu.memory_space<vmem>>, vector<1x64x32xf32>
    %45 = vector.shape_cast %44 : vector<1x64x32xf32> to vector<64x32xf32>
    %cst_49 = arith.constant dense<0.000000e+00> : vector<35x32xf32>
    %46 = tpu.matmul %43, %45, %cst_49 {dimension_numbers = #tpu.dot_dimension_numbers<[1], [0], [0], [1], [0, 0, 1, 1], [], []>} : vector<35x64xf32>, vector<64x32xf32>, vector<35x32xf32> -> vector<35x32xf32>
    %47 = arith.addf %40, %46 : vector<35x32xf32>
    %c0_i32_50 = arith.constant 0 : i32
    %c0_i32_51 = arith.constant 0 : i32
    %c0_i32_52 = arith.constant 0 : i32
    %48 = tpu.memref_slice %arg1[%c0_i32_50, %c0_i32_51, %c0_i32_52] : memref<1x56x64xf32, #tpu.memory_space<vmem>> -> memref<1x56x64xf32, #tpu.memory_space<vmem>>
    %49 = tpu.memref_squeeze %48 : memref<1x56x64xf32, #tpu.memory_space<vmem>> -> memref<56x64xf32, #tpu.memory_space<vmem>>
    %c15 = arith.constant 15 : index
    %c0_53 = arith.constant 0 : index
    %50 = vector.load %49[%c15, %c0_53] : memref<56x64xf32, #tpu.memory_space<vmem>>, vector<35x64xf32>
    %c7_54 = arith.constant 7 : index
    %c0_55 = arith.constant 0 : index
    %c0_56 = arith.constant 0 : index
    %51 = vector.load %arg2[%c7_54, %c0_55, %c0_56] : memref<9x64x32xf32, #tpu.memory_space<vmem>>, vector<1x64x32xf32>
    %52 = vector.shape_cast %51 : vector<1x64x32xf32> to vector<64x32xf32>
    %cst_57 = arith.constant dense<0.000000e+00> : vector<35x32xf32>
    %53 = tpu.matmul %50, %52, %cst_57 {dimension_numbers = #tpu.dot_dimension_numbers<[1], [0], [0], [1], [0, 0, 1, 1], [], []>} : vector<35x64xf32>, vector<64x32xf32>, vector<35x32xf32> -> vector<35x32xf32>
    %54 = arith.addf %47, %53 : vector<35x32xf32>
    %c0_i32_58 = arith.constant 0 : i32
    %c0_i32_59 = arith.constant 0 : i32
    %c0_i32_60 = arith.constant 0 : i32
    %55 = tpu.memref_slice %arg1[%c0_i32_58, %c0_i32_59, %c0_i32_60] : memref<1x56x64xf32, #tpu.memory_space<vmem>> -> memref<1x56x64xf32, #tpu.memory_space<vmem>>
    %56 = tpu.memref_squeeze %55 : memref<1x56x64xf32, #tpu.memory_space<vmem>> -> memref<56x64xf32, #tpu.memory_space<vmem>>
    %c16 = arith.constant 16 : index
    %c0_61 = arith.constant 0 : index
    %57 = vector.load %56[%c16, %c0_61] : memref<56x64xf32, #tpu.memory_space<vmem>>, vector<35x64xf32>
    %c8_62 = arith.constant 8 : index
    %c0_63 = arith.constant 0 : index
    %c0_64 = arith.constant 0 : index
    %58 = vector.load %arg2[%c8_62, %c0_63, %c0_64] : memref<9x64x32xf32, #tpu.memory_space<vmem>>, vector<1x64x32xf32>
    %59 = vector.shape_cast %58 : vector<1x64x32xf32> to vector<64x32xf32>
    %cst_65 = arith.constant dense<0.000000e+00> : vector<35x32xf32>
    %60 = tpu.matmul %57, %59, %cst_65 {dimension_numbers = #tpu.dot_dimension_numbers<[1], [0], [0], [1], [0, 0, 1, 1], [], []>} : vector<35x64xf32>, vector<64x32xf32>, vector<35x32xf32> -> vector<35x32xf32>
    %61 = arith.addf %54, %60 : vector<35x32xf32>
    %c0_66 = arith.constant 0 : index
    %c0_67 = arith.constant 0 : index
    %62 = vector.load %arg3[%c0_66, %c0_67] : memref<1x32xf32, #tpu.memory_space<vmem>>, vector<1x32xf32>
    %63 = vector.broadcast %62 : vector<1x32xf32> to vector<35x32xf32>
    %64 = arith.addf %61, %63 : vector<35x32xf32>
    %cst_68 = arith.constant 0.000000e+00 : f32
    %65 = vector.broadcast %cst_68 : f32 to vector<35x32xf32>
    %66 = arith.maximumf %64, %65 : vector<35x32xf32>
    %c0_69 = arith.constant 0 : index
    %c0_70 = arith.constant 0 : index
    %c0_71 = arith.constant 0 : index
    %67 = vector.load %arg4[%c0_69, %c0_70, %c0_71] : memref<1x35x32xf32, #tpu.memory_space<vmem>>, vector<1x35x32xf32>
    %68 = vector.shape_cast %67 : vector<1x35x32xf32> to vector<35x32xf32>
    %69 = vector.shape_cast %66 : vector<35x32xf32> to vector<1x35x32xf32>
    tpu.vector_store %arg4[%c0_69, %c0_70, %c0_71], %69 {strides = array<i32>} : memref<1x35x32xf32, #tpu.memory_space<vmem>>, vector<1x35x32xf32>,
    return
  }
  func.func @transform_0(%arg0: i32) -> (i32, i32, i32) {
    %c0_i32 = arith.constant 0 : i32
    %c0_i32_0 = arith.constant 0 : i32
    %c0_i32_1 = arith.constant 0 : i32
    return %arg0, %c0_i32, %c0_i32_0 : i32, i32, i32
  }
  func.func @transform_1(%arg0: i32) -> (i32, i32, i32) {
    %c0_i32 = arith.constant 0 : i32
    %c0_i32_0 = arith.constant 0 : i32
    %c0_i32_1 = arith.constant 0 : i32
    %c0_i32_2 = arith.constant 0 : i32
    return %c0_i32, %c0_i32_0, %c0_i32_1 : i32, i32, i32
  }
  func.func @transform_2(%arg0: i32) -> (i32, i32) {
    %c0_i32 = arith.constant 0 : i32
    %c0_i32_0 = arith.constant 0 : i32
    %c0_i32_1 = arith.constant 0 : i32
    return %c0_i32, %c0_i32_0 : i32, i32
  }
  func.func @transform_3(%arg0: i32) -> (i32, i32, i32) {
    %c0_i32 = arith.constant 0 : i32
    %c0_i32_0 = arith.constant 0 : i32
    %c0_i32_1 = arith.constant 0 : i32
    return %arg0, %c0_i32, %c0_i32_0 : i32, i32, i32
  }
}

module attributes {stable_mosaic.version = 11 : i64} {
  func.func @_fused_conv_kernel(%arg0: i32, %arg1: memref<1x12x128xf32, #tpu.memory_space<vmem>>, %arg2: memref<9x128x32xf32, #tpu.memory_space<vmem>>, %arg3: memref<1x32xf32, #tpu.memory_space<vmem>>, %arg4: memref<1x3x32xf32, #tpu.memory_space<vmem>>) attributes {dimension_semantics = [#tpu.dimension_semantics<parallel>], iteration_bounds = array<i64: 2>, scalar_prefetch = 0 : i64, scratch_operands = 0 : i64, tpu.core_type = #tpu.core_type<tc>, window_params = [{transform_indices = @transform_0, window_bounds = array<i64: 1, 12, 128>}, {pipeline_mode = #tpu.pipeline_mode<synchronous>, transform_indices = @transform_1, window_bounds = array<i64: 9, 128, 32>}, {pipeline_mode = #tpu.pipeline_mode<synchronous>, transform_indices = @transform_2, window_bounds = array<i64: 1, 32>}, {transform_indices = @transform_3, window_bounds = array<i64: 1, 3, 32>}]} {
    %c0_i32 = arith.constant 0 : i32
    %c0_i32_0 = arith.constant 0 : i32
    %c0_i32_1 = arith.constant 0 : i32
    %0 = tpu.memref_slice %arg1[%c0_i32, %c0_i32_0, %c0_i32_1] : memref<1x12x128xf32, #tpu.memory_space<vmem>> -> memref<1x12x128xf32, #tpu.memory_space<vmem>>
    %1 = tpu.memref_squeeze %0 : memref<1x12x128xf32, #tpu.memory_space<vmem>> -> memref<12x128xf32, #tpu.memory_space<vmem>>
    %c0 = arith.constant 0 : index
    %c0_2 = arith.constant 0 : index
    %2 = vector.load %1[%c0, %c0_2] : memref<12x128xf32, #tpu.memory_space<vmem>>, vector<3x128xf32>
    %c0_3 = arith.constant 0 : index
    %c0_4 = arith.constant 0 : index
    %c0_5 = arith.constant 0 : index
    %3 = vector.load %arg2[%c0_3, %c0_4, %c0_5] : memref<9x128x32xf32, #tpu.memory_space<vmem>>, vector<1x128x32xf32>
    %4 = vector.shape_cast %3 : vector<1x128x32xf32> to vector<128x32xf32>
    %cst = arith.constant dense<0.000000e+00> : vector<3x32xf32>
    %5 = tpu.matmul %2, %4, %cst {dimension_numbers = #tpu.dot_dimension_numbers<[1], [0], [0], [1], [0, 0, 1, 1], [], []>} : vector<3x128xf32>, vector<128x32xf32>, vector<3x32xf32> -> vector<3x32xf32>
    %c0_i32_6 = arith.constant 0 : i32
    %c0_i32_7 = arith.constant 0 : i32
    %c0_i32_8 = arith.constant 0 : i32
    %6 = tpu.memref_slice %arg1[%c0_i32_6, %c0_i32_7, %c0_i32_8] : memref<1x12x128xf32, #tpu.memory_space<vmem>> -> memref<1x12x128xf32, #tpu.memory_space<vmem>>
    %7 = tpu.memref_squeeze %6 : memref<1x12x128xf32, #tpu.memory_space<vmem>> -> memref<12x128xf32, #tpu.memory_space<vmem>>
    %c1 = arith.constant 1 : index
    %c0_9 = arith.constant 0 : index
    %8 = vector.load %7[%c1, %c0_9] : memref<12x128xf32, #tpu.memory_space<vmem>>, vector<3x128xf32>
    %c1_10 = arith.constant 1 : index
    %c0_11 = arith.constant 0 : index
    %c0_12 = arith.constant 0 : index
    %9 = vector.load %arg2[%c1_10, %c0_11, %c0_12] : memref<9x128x32xf32, #tpu.memory_space<vmem>>, vector<1x128x32xf32>
    %10 = vector.shape_cast %9 : vector<1x128x32xf32> to vector<128x32xf32>
    %cst_13 = arith.constant dense<0.000000e+00> : vector<3x32xf32>
    %11 = tpu.matmul %8, %10, %cst_13 {dimension_numbers = #tpu.dot_dimension_numbers<[1], [0], [0], [1], [0, 0, 1, 1], [], []>} : vector<3x128xf32>, vector<128x32xf32>, vector<3x32xf32> -> vector<3x32xf32>
    %12 = arith.addf %5, %11 : vector<3x32xf32>
    %c0_i32_14 = arith.constant 0 : i32
    %c0_i32_15 = arith.constant 0 : i32
    %c0_i32_16 = arith.constant 0 : i32
    %13 = tpu.memref_slice %arg1[%c0_i32_14, %c0_i32_15, %c0_i32_16] : memref<1x12x128xf32, #tpu.memory_space<vmem>> -> memref<1x12x128xf32, #tpu.memory_space<vmem>>
    %14 = tpu.memref_squeeze %13 : memref<1x12x128xf32, #tpu.memory_space<vmem>> -> memref<12x128xf32, #tpu.memory_space<vmem>>
    %c2 = arith.constant 2 : index
    %c0_17 = arith.constant 0 : index
    %15 = vector.load %14[%c2, %c0_17] : memref<12x128xf32, #tpu.memory_space<vmem>>, vector<3x128xf32>
    %c2_18 = arith.constant 2 : index
    %c0_19 = arith.constant 0 : index
    %c0_20 = arith.constant 0 : index
    %16 = vector.load %arg2[%c2_18, %c0_19, %c0_20] : memref<9x128x32xf32, #tpu.memory_space<vmem>>, vector<1x128x32xf32>
    %17 = vector.shape_cast %16 : vector<1x128x32xf32> to vector<128x32xf32>
    %cst_21 = arith.constant dense<0.000000e+00> : vector<3x32xf32>
    %18 = tpu.matmul %15, %17, %cst_21 {dimension_numbers = #tpu.dot_dimension_numbers<[1], [0], [0], [1], [0, 0, 1, 1], [], []>} : vector<3x128xf32>, vector<128x32xf32>, vector<3x32xf32> -> vector<3x32xf32>
    %19 = arith.addf %12, %18 : vector<3x32xf32>
    %c0_i32_22 = arith.constant 0 : i32
    %c0_i32_23 = arith.constant 0 : i32
    %c0_i32_24 = arith.constant 0 : i32
    %20 = tpu.memref_slice %arg1[%c0_i32_22, %c0_i32_23, %c0_i32_24] : memref<1x12x128xf32, #tpu.memory_space<vmem>> -> memref<1x12x128xf32, #tpu.memory_space<vmem>>
    %21 = tpu.memref_squeeze %20 : memref<1x12x128xf32, #tpu.memory_space<vmem>> -> memref<12x128xf32, #tpu.memory_space<vmem>>
    %c3 = arith.constant 3 : index
    %c0_25 = arith.constant 0 : index
    %22 = vector.load %21[%c3, %c0_25] : memref<12x128xf32, #tpu.memory_space<vmem>>, vector<3x128xf32>
    %c3_26 = arith.constant 3 : index
    %c0_27 = arith.constant 0 : index
    %c0_28 = arith.constant 0 : index
    %23 = vector.load %arg2[%c3_26, %c0_27, %c0_28] : memref<9x128x32xf32, #tpu.memory_space<vmem>>, vector<1x128x32xf32>
    %24 = vector.shape_cast %23 : vector<1x128x32xf32> to vector<128x32xf32>
    %cst_29 = arith.constant dense<0.000000e+00> : vector<3x32xf32>
    %25 = tpu.matmul %22, %24, %cst_29 {dimension_numbers = #tpu.dot_dimension_numbers<[1], [0], [0], [1], [0, 0, 1, 1], [], []>} : vector<3x128xf32>, vector<128x32xf32>, vector<3x32xf32> -> vector<3x32xf32>
    %26 = arith.addf %19, %25 : vector<3x32xf32>
    %c0_i32_30 = arith.constant 0 : i32
    %c0_i32_31 = arith.constant 0 : i32
    %c0_i32_32 = arith.constant 0 : i32
    %27 = tpu.memref_slice %arg1[%c0_i32_30, %c0_i32_31, %c0_i32_32] : memref<1x12x128xf32, #tpu.memory_space<vmem>> -> memref<1x12x128xf32, #tpu.memory_space<vmem>>
    %28 = tpu.memref_squeeze %27 : memref<1x12x128xf32, #tpu.memory_space<vmem>> -> memref<12x128xf32, #tpu.memory_space<vmem>>
    %c4 = arith.constant 4 : index
    %c0_33 = arith.constant 0 : index
    %29 = vector.load %28[%c4, %c0_33] : memref<12x128xf32, #tpu.memory_space<vmem>>, vector<3x128xf32>
    %c4_34 = arith.constant 4 : index
    %c0_35 = arith.constant 0 : index
    %c0_36 = arith.constant 0 : index
    %30 = vector.load %arg2[%c4_34, %c0_35, %c0_36] : memref<9x128x32xf32, #tpu.memory_space<vmem>>, vector<1x128x32xf32>
    %31 = vector.shape_cast %30 : vector<1x128x32xf32> to vector<128x32xf32>
    %cst_37 = arith.constant dense<0.000000e+00> : vector<3x32xf32>
    %32 = tpu.matmul %29, %31, %cst_37 {dimension_numbers = #tpu.dot_dimension_numbers<[1], [0], [0], [1], [0, 0, 1, 1], [], []>} : vector<3x128xf32>, vector<128x32xf32>, vector<3x32xf32> -> vector<3x32xf32>
    %33 = arith.addf %26, %32 : vector<3x32xf32>
    %c0_i32_38 = arith.constant 0 : i32
    %c0_i32_39 = arith.constant 0 : i32
    %c0_i32_40 = arith.constant 0 : i32
    %34 = tpu.memref_slice %arg1[%c0_i32_38, %c0_i32_39, %c0_i32_40] : memref<1x12x128xf32, #tpu.memory_space<vmem>> -> memref<1x12x128xf32, #tpu.memory_space<vmem>>
    %35 = tpu.memref_squeeze %34 : memref<1x12x128xf32, #tpu.memory_space<vmem>> -> memref<12x128xf32, #tpu.memory_space<vmem>>
    %c5 = arith.constant 5 : index
    %c0_41 = arith.constant 0 : index
    %36 = vector.load %35[%c5, %c0_41] : memref<12x128xf32, #tpu.memory_space<vmem>>, vector<3x128xf32>
    %c5_42 = arith.constant 5 : index
    %c0_43 = arith.constant 0 : index
    %c0_44 = arith.constant 0 : index
    %37 = vector.load %arg2[%c5_42, %c0_43, %c0_44] : memref<9x128x32xf32, #tpu.memory_space<vmem>>, vector<1x128x32xf32>
    %38 = vector.shape_cast %37 : vector<1x128x32xf32> to vector<128x32xf32>
    %cst_45 = arith.constant dense<0.000000e+00> : vector<3x32xf32>
    %39 = tpu.matmul %36, %38, %cst_45 {dimension_numbers = #tpu.dot_dimension_numbers<[1], [0], [0], [1], [0, 0, 1, 1], [], []>} : vector<3x128xf32>, vector<128x32xf32>, vector<3x32xf32> -> vector<3x32xf32>
    %40 = arith.addf %33, %39 : vector<3x32xf32>
    %c0_i32_46 = arith.constant 0 : i32
    %c0_i32_47 = arith.constant 0 : i32
    %c0_i32_48 = arith.constant 0 : i32
    %41 = tpu.memref_slice %arg1[%c0_i32_46, %c0_i32_47, %c0_i32_48] : memref<1x12x128xf32, #tpu.memory_space<vmem>> -> memref<1x12x128xf32, #tpu.memory_space<vmem>>
    %42 = tpu.memref_squeeze %41 : memref<1x12x128xf32, #tpu.memory_space<vmem>> -> memref<12x128xf32, #tpu.memory_space<vmem>>
    %c6 = arith.constant 6 : index
    %c0_49 = arith.constant 0 : index
    %43 = vector.load %42[%c6, %c0_49] : memref<12x128xf32, #tpu.memory_space<vmem>>, vector<3x128xf32>
    %c6_50 = arith.constant 6 : index
    %c0_51 = arith.constant 0 : index
    %c0_52 = arith.constant 0 : index
    %44 = vector.load %arg2[%c6_50, %c0_51, %c0_52] : memref<9x128x32xf32, #tpu.memory_space<vmem>>, vector<1x128x32xf32>
    %45 = vector.shape_cast %44 : vector<1x128x32xf32> to vector<128x32xf32>
    %cst_53 = arith.constant dense<0.000000e+00> : vector<3x32xf32>
    %46 = tpu.matmul %43, %45, %cst_53 {dimension_numbers = #tpu.dot_dimension_numbers<[1], [0], [0], [1], [0, 0, 1, 1], [], []>} : vector<3x128xf32>, vector<128x32xf32>, vector<3x32xf32> -> vector<3x32xf32>
    %47 = arith.addf %40, %46 : vector<3x32xf32>
    %c0_i32_54 = arith.constant 0 : i32
    %c0_i32_55 = arith.constant 0 : i32
    %c0_i32_56 = arith.constant 0 : i32
    %48 = tpu.memref_slice %arg1[%c0_i32_54, %c0_i32_55, %c0_i32_56] : memref<1x12x128xf32, #tpu.memory_space<vmem>> -> memref<1x12x128xf32, #tpu.memory_space<vmem>>
    %49 = tpu.memref_squeeze %48 : memref<1x12x128xf32, #tpu.memory_space<vmem>> -> memref<12x128xf32, #tpu.memory_space<vmem>>
    %c7 = arith.constant 7 : index
    %c0_57 = arith.constant 0 : index
    %50 = vector.load %49[%c7, %c0_57] : memref<12x128xf32, #tpu.memory_space<vmem>>, vector<3x128xf32>
    %c7_58 = arith.constant 7 : index
    %c0_59 = arith.constant 0 : index
    %c0_60 = arith.constant 0 : index
    %51 = vector.load %arg2[%c7_58, %c0_59, %c0_60] : memref<9x128x32xf32, #tpu.memory_space<vmem>>, vector<1x128x32xf32>
    %52 = vector.shape_cast %51 : vector<1x128x32xf32> to vector<128x32xf32>
    %cst_61 = arith.constant dense<0.000000e+00> : vector<3x32xf32>
    %53 = tpu.matmul %50, %52, %cst_61 {dimension_numbers = #tpu.dot_dimension_numbers<[1], [0], [0], [1], [0, 0, 1, 1], [], []>} : vector<3x128xf32>, vector<128x32xf32>, vector<3x32xf32> -> vector<3x32xf32>
    %54 = arith.addf %47, %53 : vector<3x32xf32>
    %c0_i32_62 = arith.constant 0 : i32
    %c0_i32_63 = arith.constant 0 : i32
    %c0_i32_64 = arith.constant 0 : i32
    %55 = tpu.memref_slice %arg1[%c0_i32_62, %c0_i32_63, %c0_i32_64] : memref<1x12x128xf32, #tpu.memory_space<vmem>> -> memref<1x12x128xf32, #tpu.memory_space<vmem>>
    %56 = tpu.memref_squeeze %55 : memref<1x12x128xf32, #tpu.memory_space<vmem>> -> memref<12x128xf32, #tpu.memory_space<vmem>>
    %c8 = arith.constant 8 : index
    %c0_65 = arith.constant 0 : index
    %57 = vector.load %56[%c8, %c0_65] : memref<12x128xf32, #tpu.memory_space<vmem>>, vector<3x128xf32>
    %c8_66 = arith.constant 8 : index
    %c0_67 = arith.constant 0 : index
    %c0_68 = arith.constant 0 : index
    %58 = vector.load %arg2[%c8_66, %c0_67, %c0_68] : memref<9x128x32xf32, #tpu.memory_space<vmem>>, vector<1x128x32xf32>
    %59 = vector.shape_cast %58 : vector<1x128x32xf32> to vector<128x32xf32>
    %cst_69 = arith.constant dense<0.000000e+00> : vector<3x32xf32>
    %60 = tpu.matmul %57, %59, %cst_69 {dimension_numbers = #tpu.dot_dimension_numbers<[1], [0], [0], [1], [0, 0, 1, 1], [], []>} : vector<3x128xf32>, vector<128x32xf32>, vector<3x32xf32> -> vector<3x32xf32>
    %61 = arith.addf %54, %60 : vector<3x32xf32>
    %c0_70 = arith.constant 0 : index
    %c0_71 = arith.constant 0 : index
    %62 = vector.load %arg3[%c0_70, %c0_71] : memref<1x32xf32, #tpu.memory_space<vmem>>, vector<1x32xf32>
    %63 = vector.broadcast %62 : vector<1x32xf32> to vector<3x32xf32>
    %64 = arith.addf %61, %63 : vector<3x32xf32>
    %cst_72 = arith.constant 0.000000e+00 : f32
    %65 = vector.broadcast %cst_72 : f32 to vector<3x32xf32>
    %66 = arith.maximumf %64, %65 : vector<3x32xf32>
    %c0_73 = arith.constant 0 : index
    %c0_74 = arith.constant 0 : index
    %c0_75 = arith.constant 0 : index
    %67 = vector.load %arg4[%c0_73, %c0_74, %c0_75] : memref<1x3x32xf32, #tpu.memory_space<vmem>>, vector<1x3x32xf32>
    %68 = vector.shape_cast %67 : vector<1x3x32xf32> to vector<3x32xf32>
    %69 = vector.shape_cast %66 : vector<3x32xf32> to vector<1x3x32xf32>
    tpu.vector_store %arg4[%c0_73, %c0_74, %c0_75], %69 {strides = array<i32>} : memref<1x3x32xf32, #tpu.memory_space<vmem>>, vector<1x3x32xf32>,
    return
  }
  func.func @transform_0(%arg0: i32) -> (i32, i32, i32) {
    %c0_i32 = arith.constant 0 : i32
    %c0_i32_0 = arith.constant 0 : i32
    %c0_i32_1 = arith.constant 0 : i32
    return %arg0, %c0_i32, %c0_i32_0 : i32, i32, i32
  }
  func.func @transform_1(%arg0: i32) -> (i32, i32, i32) {
    %c0_i32 = arith.constant 0 : i32
    %c0_i32_0 = arith.constant 0 : i32
    %c0_i32_1 = arith.constant 0 : i32
    %c0_i32_2 = arith.constant 0 : i32
    return %c0_i32, %c0_i32_0, %c0_i32_1 : i32, i32, i32
  }
  func.func @transform_2(%arg0: i32) -> (i32, i32) {
    %c0_i32 = arith.constant 0 : i32
    %c0_i32_0 = arith.constant 0 : i32
    %c0_i32_1 = arith.constant 0 : i32
    return %c0_i32, %c0_i32_0 : i32, i32
  }
  func.func @transform_3(%arg0: i32) -> (i32, i32, i32) {
    %c0_i32 = arith.constant 0 : i32
    %c0_i32_0 = arith.constant 0 : i32
    %c0_i32_1 = arith.constant 0 : i32
    return %arg0, %c0_i32, %c0_i32_0 : i32, i32, i32
  }
}

</mosaic_0001>

<bundles_post_ra>
// kernel: dqn_base_forward.4
= control target key start
LH: loop header
LB: loop body
LE: loop exit
PB: predicated region body
PF: predicated region fallthrough
CT: control target
= control target key end

     0   :  { %s1004_s12 = smov 0   ;;  %s1358_s0 = inlined_call_operand.vmem [shape: f32[2,56,64], index: 0, kind: input, shape index: {}]   ;;  %s1359_s1 = inlined_call_operand.vmem [shape: f32[9,64,32], index: 1, kind: input, shape index: {}]   ;;  %s1360_s2 = inlined_call_operand.vmem [shape: f32[1,32], index: 2, kind: input, shape index: {}]   ;;  %s1361_s3 = inlined_call_operand.vmem [shape: f32[2,35,32], index: 3, kind: output, shape index: {}]  }
   0x1 LB: > { %s831_s13 = sadd.s32 4294967295, %s982_s12   ;;  %p835_p0 = scmp.ge.s32.totalorder %s982_s12, 1  ;;  %s982_s12 = sphi %s1004_s12, %s13_s12  }
   0x2   : > { %p137_p1 = scmp.lt.s32.totalorder %s982_s12, 3 }
   0x4   : > { %p138_p2 = pnand %p835_p0, %p137_p1 }
   0x5   : > { %p161_p3 = scmp.lt.s32.totalorder (!%p138_p2), %s831_s13, 1 }
   0x6   : > { %141 = sbr.rel (%p138_p2) target bundleno = 258 (0x102), region = 32 }
   0xb   : > { %v845_v0 = vld [vmem:[%s1359_s1 + $0x78] sm:$0xff]  ;;  %v844_v1 = vld [vmem:[%s1359_s1 + $0x70] sm:$0xff]  ;;  %v843_v2 = vld [vmem:[%s1359_s1 + $0x68] sm:$0xff]  ;;  %s1363_s13 = smov (!%p161_p3, %s831_s13), 1  ;;  %vm198_vm0 = vcmask 523264   ;;  %vm769_vm1 = vcmask 261120  }
   0xc   : > { %949 = vmatpush.msra.mxu1 %v845_v0  ;;  %950 = vmatpush.msra.mxu2 %v845_v0  ;;  %v876_v3 = vld [vmem:[%s1359_s1 + $0xf8] sm:$0xff]  ;;  %v842_v4 = vld [vmem:[%s1359_s1 + $0x60] sm:$0xff]  ;;  %v875_v5 = vld [vmem:[%s1359_s1 + $0xf0] sm:$0xff]  ;;  %s965_s30 = smul.u32 56, %s1363_s13  ;;  %vm774_vm2 = vcmask 256000  }
   0xd   : > { %222 = vmatpush.msra.mxu0 %v845_v0  ;;  %396 = vmatpush.msra.mxu3 %v876_v3  ;;  %v874_v6 = vld [vmem:[%s1359_s1 + $0xe8] sm:$0xff]  ;;  %v841_v7 = vld [vmem:[%s1359_s1 + $0x58] sm:$0xff]  ;;  %v873_v8 = vld [vmem:[%s1359_s1 + $0xe0] sm:$0xff]  ;;  %s966_s18 = smul.u32 40, %s1363_s13 }
   0xe   : > { %951 = vmatpush.msra.mxu1 %v844_v1  ;;  %952 = vmatpush.msra.mxu2 %v844_v1  ;;  %v840_v9 = vld [vmem:[%s1359_s1 + $0x50] sm:$0xff]  ;;  %v872_v10 = vld [vmem:[%s1359_s1 + $0xd8] sm:$0xff]  ;;  %v839_v11 = vld [vmem:[%s1359_s1 + $0x48] sm:$0xff]  ;;  %s1054_s16 = scalar_lea.vmem %s1358_s0, %s965_s30 }
   0xf   : > { %223 = vmatpush.msra.mxu0 %v844_v1  ;;  %397 = vmatpush.msra.mxu3 %v875_v5  ;;  %v871_v12 = vld [vmem:[%s1359_s1 + $0xd0] sm:$0xff]  ;;  %v838_v13 = vld [vmem:[%s1359_s1 + $0x40] sm:$0xff]  ;;  %v863_v15 = vld [vmem:[%s1359_s1 + $0xb8] sm:$0xff]  ;;  %s1343_s21 = scalar_lea.vmem %s1361_s3, %s966_s18 }
  0x10   : > { %953 = vmatpush.msra.mxu1 %v843_v2  ;;  %954 = vmatpush.msra.mxu2 %v843_v2  ;;  %v1063_v14 = vld [vmem:[%s1054_s16 + $0x11] sm:$0xff]  ;;  %v188_v17 = vld [vmem:[%s1054_s16 + $0x21] sm:$0x7]  ;;  %v861_v21 = vld [vmem:[%s1359_s1 + $0xa8] sm:$0xff] }
  0x11   : > { %224 = vmatpush.msra.mxu0 %v843_v2  ;;  %398 = vmatpush.msra.mxu3 %v874_v6  ;;  %v183_v16 = vld [vmem:[%s1359_s1 + $0x38] sm:$0xff]  ;;  %v862_v18 = vld [vmem:[%s1359_s1 + $0xb0] sm:$0xff]  ;;  %v184_v20 = vld [vmem:[%s1054_s16 + $0x1] sm:$0xff] }
  0x12   : > { %955 = vmatpush.msra.mxu1 %v842_v4  ;;  %956 = vmatpush.msra.mxu2 %v842_v4  ;;  %v182_v19 = vld [vmem:[%s1359_s1 + $0x30] sm:$0xff]  ;;  %v889_v22 = vld [vmem:[%s1359_s1 + $0x138] sm:$0xff]  ;;  %v181_v23 = vld [vmem:[%s1359_s1 + $0x28] sm:$0xff] }
  0x13   : > { %225 = vmatpush.msra.mxu0 %v842_v4  ;;  %399 = vmatpush.msra.mxu3 %v873_v8  ;;  %v870_v24 = vld [vmem:[%s1359_s1 + $0xc8] sm:$0xff]  ;;  %v860_v25 = vld [vmem:[%s1359_s1 + $0xa0] sm:$0xff]  ;;  %v888_v26 = vld [vmem:[%s1359_s1 + $0x130] sm:$0xff] }
  0x14   : > { %957 = vmatpush.msra.mxu1 %v841_v7  ;;  %958 = vmatpush.msra.mxu2 %v841_v7  ;;  %v180_v27 = vld [vmem:[%s1359_s1 + $0x20] sm:$0xff]  ;;  %v859_v30 = vld [vmem:[%s1359_s1 + $0x98] sm:$0xff]  ;;  %v887_v32 = vld [vmem:[%s1359_s1 + $0x128] sm:$0xff] }
  0x15   : > { %226 = vmatpush.msra.mxu0 %v841_v7  ;;  %400 = vmatpush.msra.mxu3 %v872_v10  ;;  %v869_v28 = vld [vmem:[%s1359_s1 + $0xc0] sm:$0xff]  ;;  %v179_v31 = vld [vmem:[%s1359_s1 + $0x18] sm:$0xff]  ;;  %v858_v33 = vld [vmem:[%s1359_s1 + $0x90] sm:$0xff] }
  0x16   : > { %959 = vmatpush.msra.mxu1 %v840_v9  ;;  %960 = vmatpush.msra.mxu2 %v840_v9  ;;  %v1108_v29 = vld [vmem:[%s1054_s16 + $0x19] sm:$0xff]  ;;  %v359_v34 = vld [vmem:[%s1054_s16 + $0x7] sm:$0xff]  ;;  %v178_v35 = vld [vmem:[%s1359_s1 + $0x10] sm:$0xff] }
  0x17   : > { %227 = vmatpush.msra.mxu0 %v840_v9  ;;  %401 = vmatpush.msra.mxu3 %v871_v12  ;;  %v886_v36 = vld [vmem:[%s1359_s1 + $0x120] sm:$0xff]  ;;  %v857_v37 = vld [vmem:[%s1359_s1 + $0x88] sm:$0xff]  ;;  %v885_v40 = vld [vmem:[%s1359_s1 + $0x118] sm:$0xff] }
  0x18   : > { %961 = vmatpush.msra.mxu1 %v839_v11  ;;  %962 = vmatpush.msra.mxu2 %v839_v11  ;;  %v1135_v38 = vld [vmem:[%s1054_s16 + $0x9] sm:$0xff]  ;;  %v856_v41 = vld [vmem:[%s1359_s1 + $0x80] sm:$0xff]  ;;  %v928_v42 = vld [vmem:[%s1359_s1 + $0x1f8] sm:$0xff] }
  0x19   : > { %228 = vmatpush.msra.mxu0 %v839_v11  ;;  %402 = vmatpush.msra.mxu3 %v870_v24  ;;  %v177_v39 = vld [vmem:[%s1359_s1 + $0x8] sm:$0xff]  ;;  %v176_v43 = vld [vmem:[%s1359_s1] sm:$0xff]  ;;  %v915_v45 = vld [vmem:[%s1359_s1 + $0x1b8] sm:$0xff] }
  0x1a   : > { %963 = vmatpush.msra.mxu1 %v838_v13  ;;  %964 = vmatpush.msra.mxu2 %v838_v13  ;;  %v293_v44 = vld [vmem:[%s1054_s16 + $0x2] sm:$0xff]  ;;  %v884_v47 = vld [vmem:[%s1359_s1 + $0x110] sm:$0xff]  ;;  %v902_v48 = vld [vmem:[%s1359_s1 + $0x178] sm:$0xff] }
  0x1b   : > { %848 = vmatmul.msk.f32.vlgmr.msra.gmra.mxu1 %vm198_vm0, %v1063_v14  ;;  %850 = vmatmul.msk.f32.vlgmr.msra.gmra.mxu2 %vm198_vm0, %v188_v17  ;;  %v171_v46 = vld [vmem:[%s1054_s16] sm:$0xff]  ;;  %v914_v49 = vld [vmem:[%s1359_s1 + $0x1b0] sm:$0xff]  ;;  %v883_v51 = vld [vmem:[%s1359_s1 + $0x108] sm:$0xff] }
  0x1c   : > { %330 = vmatpush.msrb.mxu2 %v863_v15  ;;  %269 = vmatpush.msrb.mxu1 %v183_v16  ;;  %v927_v50 = vld [vmem:[%s1359_s1 + $0x1f0] sm:$0xff]  ;;  %v913_v54 = vld [vmem:[%s1359_s1 + $0x1a8] sm:$0xff]  ;;  %v882_v55 = vld [vmem:[%s1359_s1 + $0x100] sm:$0xff] }
  0x1d   : > { %229 = vmatpush.msra.mxu0 %v838_v13  ;;  %403 = vmatpush.msra.mxu3 %v869_v28  ;;  %v901_v52 = vld [vmem:[%s1359_s1 + $0x170] sm:$0xff]  ;;  %v926_v56 = vld [vmem:[%s1359_s1 + $0x1e8] sm:$0xff]  ;;  %v941_v60 = vld [vmem:[%s1359_s1 + $0x238] sm:$0xff] }
  0x1e   : > { %331 = vmatpush.msrb.mxu2 %v862_v18  ;;  %270 = vmatpush.msrb.mxu1 %v182_v19  ;;  %v1181_v53 = vld [vmem:[%s1054_s16 + $0xf] sm:$0xff]  ;;  %v912_v61 = vld [vmem:[%s1359_s1 + $0x1a0] sm:$0xff]  ;;  %v911_v1 = vld [vmem:[%s1359_s1 + $0x198] sm:$0xff] }
  0x1f   : > { %846 = vmatmul.msk.f32.vlgmr.msra.gmra.mxu0 %vm198_vm0, %v184_v20  ;;  %877 = vmatmul.msk.f32.vlgmr.msra.gmra.mxu3 %vm198_vm0, %v359_v34  ;;  %v172_v57 = vld [vmem:[%s1054_s16 + $0x8] sm:$0xff]  ;;  %v940_v62 = vld [vmem:[%s1359_s1 + $0x230] sm:$0xff]  ;;  %v925_v63 = vld [vmem:[%s1359_s1 + $0x1e0] sm:$0xff] }
  0x20   : > { %332 = vmatpush.msrb.mxu2 %v861_v21  ;;  %462 = vmatpush.msrb.mxu0 %v889_v22  ;;  %v900_v58 = vld [vmem:[%s1359_s1 + $0x168] sm:$0xff]  ;;  %v899_v0 = vld [vmem:[%s1359_s1 + $0x160] sm:$0xff]  ;;  %v924_v3 = vld [vmem:[%s1359_s1 + $0x1d8] sm:$0xff] }
  0x21   : > { %271 = vmatpush.msrb.mxu1 %v181_v23  ;;  %660 = vmatpush.msrb.mxu3 %v928_v42  ;;  %v294_v59 = vld [vmem:[%s1054_s16 + $0xa] sm:$0xff]  ;;  %v1227_v4 = vld [vmem:[%s1054_s16 + $0x17] sm:$0xff]  ;;  %v938_v7 = vld [vmem:[%s1359_s1 + $0x220] sm:$0xff] }
  0x22   : > { %333 = vmatpush.msrb.mxu2 %v860_v25  ;;  %463 = vmatpush.msrb.mxu0 %v888_v26  ;;  %v939_v2 = vld [vmem:[%s1359_s1 + $0x228] sm:$0xff]  ;;  %v898_v5 = vld [vmem:[%s1359_s1 + $0x158] sm:$0xff]  ;;  %v910_v6 = vld [vmem:[%s1359_s1 + $0x190] sm:$0xff] }
  0x23   : > { %272 = vmatpush.msrb.mxu1 %v180_v27  ;;  %661 = vmatpush.msrb.mxu3 %v927_v50  ;;  %v173_v8 = vld [vmem:[%s1054_s16 + $0x10] sm:$0xff]  ;;  %v909_v12 = vld [vmem:[%s1359_s1 + $0x188] sm:$0xff]  ;;  %v937_v13 = vld [vmem:[%s1359_s1 + $0x218] sm:$0xff] }
  0x24   : > { %849 = vmatmul.msk.f32.gmra.mxu1 %vm198_vm0, %v1108_v29  ;;  %334 = vmatpush.msrb.mxu2 %v859_v30  ;;  %v923_v9 = vld [vmem:[%s1359_s1 + $0x1d0] sm:$0xff]  ;;  %v922_v15 = vld [vmem:[%s1359_s1 + $0x1c8] sm:$0xff]  ;;  %v908_v17 = vld [vmem:[%s1359_s1 + $0x180] sm:$0xff] }
  0x25   : > { %273 = vmatpush.msrb.mxu1 %v179_v31  ;;  %464 = vmatpush.msrb.mxu0 %v887_v32  ;;  %v295_v10 = vld [vmem:[%s1054_s16 + $0x12] sm:$0xff]  ;;  %v896_v16 = vld [vmem:[%s1359_s1 + $0x148] sm:$0xff]  ;;  %v921_v19 = vld [vmem:[%s1359_s1 + $0x1c0] sm:$0xff] }
  0x26   : > { %335 = vmatpush.msrb.mxu2 %v858_v33  ;;  %662 = vmatpush.msrb.mxu3 %v926_v56  ;;  %v897_v11 = vld [vmem:[%s1359_s1 + $0x150] sm:$0xff]  ;;  %v362_v20 = vld [vmem:[%s1054_s16 + $0x1f] sm:$0xff]  ;;  %v935_v22 = vld [vmem:[%s1359_s1 + $0x208] sm:$0xff] }
  0x27   : > { %274 = vmatpush.msrb.mxu1 %v178_v35  ;;  %465 = vmatpush.msrb.mxu0 %v886_v36  ;;  %v936_v18 = vld [vmem:[%s1359_s1 + $0x210] sm:$0xff]  ;;  %v895_v21 = vld [vmem:[%s1359_s1 + $0x140] sm:$0xff]  ;;  %v174_v23 = vld [vmem:[%s1054_s16 + $0x18] sm:$0xff] }
  0x28   : > { %336 = vmatpush.msrb.mxu2 %v857_v37  ;;  %847 = vmatmul.msk.f32.gmra.mxu0 %vm198_vm0, %v1135_v38  ;;  %v296_v24 = vld [vmem:[%s1054_s16 + $0x1a] sm:$0xff]  ;;  %v363_v26 = vld [vmem:[%s1054_s16 + $0x27] sm:$0x7]  ;;  %v297_v28 = vld [vmem:[%s1054_s16 + $0x22] sm:$0x7] }
  0x29   : > { %275 = vmatpush.msrb.mxu1 %v177_v39  ;;  %466 = vmatpush.msrb.mxu0 %v885_v40  ;;  %v934_v25 = vld [vmem:[%s1359_s1 + $0x200] sm:$0xff]  ;;  %v429_v31 = vld [vmem:[%s1054_s16 + $0x28] sm:$0x7]  ;;  %v557_v32 = vld [vmem:[%s1054_s16 + $0xe] sm:$0xff] }
  0x2a   : > { %337 = vmatpush.msrb.mxu2 %v856_v41  ;;  %878 = vmatmul.msk.f32.gmra.mxu3 %vm198_vm0, %v1181_v53  ;;  %v428_v27 = vld [vmem:[%s1054_s16 + $0x20] sm:$0xff]  ;;  %v558_v33 = vld [vmem:[%s1054_s16 + $0x16] sm:$0xff]  ;;  %v561_v39 = vld [vmem:[%s1054_s16 + $0x2e] sm:$0x7] }
  0x2b   : > { %276 = vmatpush.msrb.mxu1 %v176_v43  ;;  %864 = vmatmul.msk.f32.vlgmr.msrb.gmra.mxu2 %vm198_vm0, %v293_v44  ;;  %v175_v30 = vld [vmem:[%s1054_s16 + $0x20] sm:$0x7]  ;;  %v626_v35 = vld [vmem:[%s1054_s16 + $0x27] sm:$0xff] }
  0x2c   : > { %594 = vmatpush.msra.mxu2 %v915_v45  ;;  %851 = vmatmul.msk.f32.vlgmr.msrb.gmra.mxu1 %vm198_vm0, %v171_v46  ;;  %v559_v34 = vld [vmem:[%s1054_s16 + $0x1e] sm:$0xff]  ;;  %v560_v36 = vld [vmem:[%s1054_s16 + $0x26] sm:$0xff] }
  0x2d   : > { %467 = vmatpush.msrb.mxu0 %v884_v47  ;;  %528 = vmatpush.msra.mxu1 %v902_v48  ;;  %v494_v37 = vld [vmem:[%s1054_s16 + $0x21] sm:$0xff]  ;;  %v495_v40 = vld [vmem:[%s1054_s16 + $0x29] sm:$0x7] }
  0x2e   : > { %595 = vmatpush.msra.mxu2 %v914_v49  ;;  %663 = vmatpush.msrb.mxu3 %v925_v63 }
  0x2f   : > { %468 = vmatpush.msrb.mxu0 %v883_v51  ;;  %529 = vmatpush.msra.mxu1 %v901_v52 }
  0x30   : > { %596 = vmatpush.msra.mxu2 %v913_v54  ;;  %664 = vmatpush.msrb.mxu3 %v924_v3 }
  0x31   : > { %469 = vmatpush.msrb.mxu0 %v882_v55  ;;  %530 = vmatpush.msra.mxu1 %v900_v58 }
  0x32   : > { %890 = vmatmul.msk.f32.vlgmr.msrb.gmra.mxu0 %vm198_vm0, %v172_v57  ;;  %597 = vmatpush.msra.mxu2 %v912_v61 }
  0x33   : > { %865 = vmatmul.msk.f32.gmra.mxu2 %vm198_vm0, %v294_v59  ;;  %726 = vmatpush.msra.mxu0 %v941_v60 }
  0x34   : > { %852 = vmatmul.msk.f32.gmra.mxu1 %vm198_vm0, %v172_v57  ;;  %598 = vmatpush.msra.mxu2 %v911_v1 }
  0x35   : > { %727 = vmatpush.msra.mxu0 %v940_v62  ;;  %531 = vmatpush.msra.mxu1 %v899_v0 }
  0x36   : > { %879 = vmatmul.msk.f32.gmra.mxu3 %vm198_vm0, %v1227_v4  ;;  %599 = vmatpush.msra.mxu2 %v910_v6 }
  0x37   : > { %728 = vmatpush.msra.mxu0 %v939_v2  ;;  %532 = vmatpush.msra.mxu1 %v898_v5 }
  0x38   : > { %665 = vmatpush.msrb.mxu3 %v923_v9  ;;  %600 = vmatpush.msra.mxu2 %v909_v12 }
  0x39   : > { %729 = vmatpush.msra.mxu0 %v938_v7  ;;  %533 = vmatpush.msra.mxu1 %v897_v11 }
  0x3a   : > { %891 = vmatmul.msk.f32.gmra.mxu0 %vm198_vm0, %v173_v8  ;;  %666 = vmatpush.msrb.mxu3 %v922_v15 }
  0x3b   : > { %866 = vmatmul.msk.f32.gmra.mxu2 %vm198_vm0, %v295_v10  ;;  %730 = vmatpush.msra.mxu0 %v937_v13 }
  0x3c   : > { %853 = vmatmul.msk.f32.gmra.mxu1 %vm198_vm0, %v173_v8  ;;  %601 = vmatpush.msra.mxu2 %v908_v17 }
  0x3d   : > { %534 = vmatpush.msra.mxu1 %v896_v16  ;;  %731 = vmatpush.msra.mxu0 %v936_v18 }
  0x3e   : > { %667 = vmatpush.msrb.mxu3 %v921_v19  ;;  %v975_v19 = vld [vmem:[%s1360_s2] ss:$0 sm:$0xff] }
  0x3f   : > { %880 = vmatmul.msk.f32.gmra.mxu3 %vm198_vm0, %v362_v20  ;;  %535 = vmatpush.msra.mxu1 %v895_v21 }
  0x40   : > { %732 = vmatpush.msra.mxu0 %v935_v22 }
  0x42   : > { %892 = vmatmul.msk.f32.gmra.mxu0 %vm198_vm0, %v174_v23 }
  0x43   : > { %867 = vmatmul.msk.f32.gmra.mxu2 %vm198_vm0, %v296_v24  ;;  %733 = vmatpush.msra.mxu0 %v934_v25 }
  0x44   : > { %854 = vmatmul.msk.f32.gmra.mxu1 %vm198_vm0, %v174_v23 }
  0x47   : > { %881 = vmatmul.msk.f32.gmra.mxu3 %vm198_vm0, %v363_v26 }
  0x4a   : > { %893 = vmatmul.msk.f32.gmra.mxu0 %vm198_vm0, %v428_v27 }
  0x4b   : > { %868 = vmatmul.msk.f32.gmra.mxu2 %vm198_vm0, %v297_v28 }
  0x4c   : > { %855 = vmatmul.msk.f32.gmra.mxu1 %vm198_vm0, %v175_v30 }
  0x4f   : > { %929 = vmatmul.msk.f32.vlgmr.msrb.gmra.mxu3 %vm198_vm0, %v1181_v53 }
  0x52   : > { %894 = vmatmul.msk.f32.gmra.mxu0 %vm198_vm0, %v429_v31 }
  0x53   : > { %916 = vmatmul.msk.f32.vlgmr.msra.gmra.mxu2 %vm198_vm0, %v557_v32 }
  0x54   : > { %903 = vmatmul.msk.f32.vlgmr.msra.gmra.mxu1 %vm198_vm0, %v1135_v38  ;;  %v692_v38 = vld [vmem:[%s1054_s16 + $0x28] sm:$0xff] }
  0x57   : > { %930 = vmatmul.msk.f32.gmra.mxu3 %vm198_vm0, %v1227_v4 }
  0x5a   : > { %942 = vmatmul.msk.f32.vlgmr.msra.gmra.mxu0 %vm198_vm0, %v173_v8 }
  0x5b   : > { %917 = vmatmul.msk.f32.gmra.mxu2 %vm198_vm0, %v558_v33 }
  0x5c   : > { %904 = vmatmul.msk.f32.gmra.mxu1 %vm198_vm0, %v1063_v14  ;;  %v627_v14 = vld [vmem:[%s1054_s16 + $0x2f] sm:$0x7] }
  0x5f   : > { %931 = vmatmul.msk.f32.gmra.mxu3 %vm198_vm0, %v362_v20 }
  0x62   : > { %943 = vmatmul.msk.f32.gmra.mxu0 %vm198_vm0, %v174_v23 }
  0x63   : > { %918 = vmatmul.msk.f32.gmra.mxu2 %vm198_vm0, %v559_v34 }
  0x64   : > { %905 = vmatmul.msk.f32.gmra.mxu1 %vm198_vm0, %v1108_v29  ;;  %v693_v29 = vld [vmem:[%s1054_s16 + $0x30] sm:$0x7] }
  0x67   : > { %932 = vmatmul.msk.f32.gmra.mxu3 %vm198_vm0, %v626_v35 }
  0x6a   : > { %944 = vmatmul.msk.f32.gmra.mxu0 %vm198_vm0, %v428_v27 }
  0x6b   : > { %919 = vmatmul.msk.f32.gmra.mxu2 %vm198_vm0, %v560_v36 }
  0x6c   : > { %906 = vmatmul.msk.f32.gmra.mxu1 %vm198_vm0, %v494_v37 }
  0x6f   : > { %933 = vmatmul.msk.f32.gmra.mxu3 %vm198_vm0, %v627_v14 }
  0x72   : > { %945 = vmatmul.msk.f32.gmra.mxu0 %vm198_vm0, %v692_v38 }
  0x73   : > { %920 = vmatmul.msk.f32.gmra.mxu2 %vm198_vm0, %v561_v39 }
  0x74   : > { %907 = vmatmul.msk.f32.gmra.mxu1 %vm198_vm0, %v495_v40 }
  0x7a   : > { %946 = vmatmul.msk.f32.gmra.mxu0 %vm198_vm0, %v693_v29 }
  0x98   : > { %v237_v41 = vpop.f32.mrf.mxu1 }
  0x9c   : > { %v231_v42 = vpop.f32.mrf.mxu0 }
  0x9e   : > { %v1334_v44 = vpop.f32.mrf.mxu2 }
  0xa1   : > { %v240_v43 = vpop.f32.mrf.mxu1 }
  0xa2   : > { %v405_v47 = vpop.f32.mrf.mxu3 }
  0xa5   : > { %v234_v45 = vpop.f32.mrf.mxu0 }
  0xa9   : > { %v278_v46 = vpop.f32.mrf.mxu1 }
  0xaa   : > { %v279_v62 = vadd.f32 %v278_v46, %v231_v42 }
  0xad   : > { %v408_v51 = vpop.f32.mrf.mxu3 }
  0xae   : > { %v339_v48 = vpop.f32.mrf.mxu2 }
  0xaf   : > { %v471_v49 = vpop.f32.mrf.mxu0  ;;  %v354_v0 = vadd.f32 %v339_v48, %v279_v62 }
  0xb1   : > { %v281_v50 = vpop.f32.mrf.mxu1  ;;  %v420_v3 = vadd.f32 %v405_v47, %v354_v0 }
  0xb2   : > { %v282_v5 = vadd.f32 %v281_v50, %v234_v45 }
  0xb3   : > { %v486_v7 = vadd.f32 %v471_v49, %v420_v3 }
  0xb6   : > { %v342_v52 = vpop.f32.mrf.mxu2 }
  0xb7   : > { %v474_v53 = vpop.f32.mrf.mxu0  ;;  %v355_v8 = vadd.f32 %v342_v52, %v282_v5 }
  0xb9   : > { %v284_v54 = vpop.f32.mrf.mxu1  ;;  %v411_v55 = vpop.f32.mrf.mxu3  ;;  %v421_v12 = vadd.f32 %v408_v51, %v355_v8 }
  0xba   : > { %v285_v16 = vadd.f32 %v284_v54, %v237_v41 }
  0xbb   : > { %v487_v20 = vadd.f32 %v474_v53, %v421_v12 }
  0xbe   : > { %v345_v56 = vpop.f32.mrf.mxu2 }
  0xbf   : > { %v477_v57 = vpop.f32.mrf.mxu0  ;;  %v356_v21 = vadd.f32 %v345_v56, %v285_v16 }
  0xc1   : > { %v287_v58 = vpop.f32.mrf.mxu1  ;;  %v422_v27 = vadd.f32 %v411_v55, %v356_v21 }
  0xc2   : > { %v414_v59 = vpop.f32.mrf.mxu3  ;;  %v288_v32 = vadd.f32 %v287_v58, %v240_v43 }
  0xc3   : > { %v488_v35 = vadd.f32 %v477_v57, %v422_v27 }
  0xc6   : > { %v348_v60 = vpop.f32.mrf.mxu2 }
  0xc7   : > { %v480_v61 = vpop.f32.mrf.mxu0  ;;  %v357_v36 = vadd.f32 %v348_v60, %v288_v32 }
  0xc9   : > { %v290_v63 = vpop.f32.mrf.mxu1  ;;  %v423_v29 = vadd.f32 %v414_v59, %v357_v36 }
  0xca   : > { %v417_v1 = vpop.f32.mrf.mxu3  ;;  %v291_v46 = vadd.f32 %v290_v63, %v1334_v44 }
  0xcb   : > { %v489_v48 = vadd.f32 %v480_v61, %v423_v29 }
  0xce   : > { %v351_v2 = vpop.f32.mrf.mxu2 }
  0xcf   : > { %v483_v4 = vpop.f32.mrf.mxu0  ;;  %v358_v49 = vadd.f32 %v351_v2, %v291_v46 }
  0xd1   : > { %v537_v6 = vpop.f32.mrf.mxu1  ;;  %v424_v55 = vadd.f32 %v417_v1, %v358_v49 }
  0xd2   : > { %v669_v9 = vpop.f32.mrf.mxu3  ;;  %v552_v10 = vadd.f32 %v537_v6, %v486_v7 }
  0xd3   : > { %v490_v60 = vadd.f32 %v483_v4, %v424_v55 }
  0xd6   : > { %v603_v11 = vpop.f32.mrf.mxu2 }
  0xd7   : > { %v618_v13 = vadd.f32 %v603_v11, %v552_v10  ;;  %v735_v15 = vpop.f32.mrf.mxu0 }
  0xd9   : > { %v684_v17 = vadd.f32 %v669_v9, %v618_v13  ;;  %v540_v18 = vpop.f32.mrf.mxu1 }
  0xda   : > { %v672_v23 = vpop.f32.mrf.mxu3  ;;  %v553_v24 = vadd.f32 %v540_v18, %v487_v20 }
  0xdb   : > { %v750_v22 = vadd.f32 %v735_v15, %v684_v17 }
  0xdd   : > { %v759_v25 = vadd.f32 %v975_v19, %v750_v22 }
  0xde   : > { %v606_v26 = vpop.f32.mrf.mxu2 }
  0xdf   : > { %v764_v28 = vmax.f32 %v759_v25, 0.0  ;;  %v619_v30 = vadd.f32 %v606_v26, %v553_v24  ;;  %v738_v31 = vpop.f32.mrf.mxu0 }
  0xe1   : > { %770 = vst.msk [vmem:[%s1343_s21] sm:$0xff] %vm769_vm1, %v764_v28  ;;  %v685_v33 = vadd.f32 %v672_v23, %v619_v30  ;;  %v543_v34 = vpop.f32.mrf.mxu1 }
  0xe2   : > { %v675_v14 = vpop.f32.mrf.mxu3  ;;  %v554_v38 = vadd.f32 %v543_v34, %v488_v35 }
  0xe3   : > { %v751_v37 = vadd.f32 %v738_v31, %v685_v33 }
  0xe5   : > { %v760_v39 = vadd.f32 %v975_v19, %v751_v37 }
  0xe6   : > { %v609_v40 = vpop.f32.mrf.mxu2 }
  0xe7   : > { %v765_v41 = vmax.f32 %v760_v39, 0.0  ;;  %v620_v42 = vadd.f32 %v609_v40, %v554_v38  ;;  %v741_v45 = vpop.f32.mrf.mxu0 }
  0xe9   : > { %771 = vst.msk [vmem:[%s1343_s21 + $0x8] sm:$0xff] %vm769_vm1, %v765_v41  ;;  %v686_v43 = vadd.f32 %v675_v14, %v620_v42  ;;  %v546_v47 = vpop.f32.mrf.mxu1 }
  0xea   : > { %v678_v51 = vpop.f32.mrf.mxu3  ;;  %v555_v52 = vadd.f32 %v546_v47, %v489_v48 }
  0xeb   : > { %v752_v50 = vadd.f32 %v741_v45, %v686_v43 }
  0xed   : > { %v761_v53 = vadd.f32 %v975_v19, %v752_v50 }
  0xee   : > { %v612_v54 = vpop.f32.mrf.mxu2 }
  0xef   : > { %v766_v56 = vmax.f32 %v761_v53, 0.0  ;;  %v621_v57 = vadd.f32 %v612_v54, %v555_v52  ;;  %v744_v58 = vpop.f32.mrf.mxu0 }
  0xf1   : > { %772 = vst.msk [vmem:[%s1343_s21 + $0x10] sm:$0xff] %vm769_vm1, %v766_v56  ;;  %v687_v59 = vadd.f32 %v678_v51, %v621_v57  ;;  %v549_v44 = vpop.f32.mrf.mxu1 }
  0xf2   : > { %v556_v63 = vadd.f32 %v549_v44, %v490_v60  ;;  %v681_v2 = vpop.f32.mrf.mxu3 }
  0xf3   : > { %v753_v62 = vadd.f32 %v744_v58, %v687_v59 }
  0xf5   : > { %v762_v61 = vadd.f32 %v975_v19, %v753_v62 }
  0xf6   : > { %v615_v0 = vpop.f32.mrf.mxu2 }
  0xf7   : > { %v767_v3 = vmax.f32 %v762_v61, 0.0  ;;  %v622_v5 = vadd.f32 %v615_v0, %v556_v63  ;;  %v747_v6 = vpop.f32.mrf.mxu0 }
  0xf9   : > { %773 = vst.msk [vmem:[%s1343_s21 + $0x18] sm:$0xff] %vm769_vm1, %v767_v3  ;;  %v688_v1 = vadd.f32 %v681_v2, %v622_v5 }
  0xfb   : > { %v754_v7 = vadd.f32 %v747_v6, %v688_v1 }
  0xfd   : > { %v763_v8 = vadd.f32 %v975_v19, %v754_v7 }
  0xff   : > { %v768_v9 = vmax.f32 %v763_v8, 0.0 }
 0x101   : > { %775 = vst.msk [vmem:[%s1343_s21 + $0x20] sm:$0x7] %vm774_vm2, %v768_v9 }
 0x102 PF: > { %s13_s12 = sadd.s32 1, %s982_s12  }
 0x103   : > { %p10_p4 = scmp.ge.s32.totalorder %s13_s12, 4  }
 0x105   :  { %12 = sbr.rel (!%p10_p4) target bundleno = 1 (0x1), region = 70 }

// kernel: dqn_base_forward.3
= control target key start
LH: loop header
LB: loop body
LE: loop exit
PB: predicated region body
PF: predicated region fallthrough
CT: control target
= control target key end

     0   :  { %s2776_s12 = smov 0   ;;  %s3844_s0 = inlined_call_operand.vmem [shape: f32[2,272,16], index: 0, kind: input, shape index: {}]   ;;  %s3845_s1 = inlined_call_operand.vmem [shape: f32[9,16,16], index: 1, kind: input, shape index: {}]   ;;  %s3846_s2 = inlined_call_operand.vmem [shape: f32[1,16], index: 2, kind: input, shape index: {}]   ;;  %s3847_s3 = inlined_call_operand.vmem [shape: f32[2,224,16], index: 3, kind: output, shape index: {}]  }
   0x1 LB: > { %s2454_s13 = sadd.s32 4294967295, %s2754_s12   ;;  %p2458_p0 = scmp.ge.s32.totalorder %s2754_s12, 1  ;;  %s2754_s12 = sphi %s2776_s12, %s13_s12  }
   0x2   : > { %p137_p1 = scmp.lt.s32.totalorder %s2754_s12, 3 }
   0x4   : > { %p138_p2 = pnand %p2458_p0, %p137_p1 }
   0x6   : > { %141 = sbr.rel (%p138_p2) target bundleno = 658 (0x292), region = 32 }
   0xb   : > { %v2462_v0 = vld [vmem:[%s3845_s1 + $0x18] sm:$0xff]  ;;  %v2461_v1 = vld [vmem:[%s3845_s1 + $0x10] sm:$0xff]  ;;  %p161_p3 = scmp.lt.s32.totalorder %s2454_s13, 1  ;;  %v2520_v2 = vld [vmem:[%s3845_s1 + $0x28] sm:$0xff]  ;;  %vm232_vm0 = vcmask 130048  }
   0xc   : > { %2731 = vmatpush.msra.mxu1 %v2462_v0  ;;  %2732 = vmatpush.msra.mxu2 %v2462_v0  ;;  %v2550_v3 = vld [vmem:[%s3845_s1 + $0x38] sm:$0xff]  ;;  %v200_v4 = vld [vmem:[%s3845_s1 + $0x8] sm:$0xff]  ;;  %v2519_v5 = vld [vmem:[%s3845_s1 + $0x20] sm:$0xff] }
   0xd   : > { %2733 = vmatpush.msra.mxu3 %v2462_v0  ;;  %s3946_s13 = smov (!%p161_p3, %s2454_s13), 1  ;;  %331 = vmatpush.msra.mxu0 %v2462_v0  ;;  %v2580_v6 = vld [vmem:[%s3845_s1 + $0x48] sm:$0xff]  ;;  %v2549_v7 = vld [vmem:[%s3845_s1 + $0x30] sm:$0xff]  ;;  %v199_v12 = vld [vmem:[%s3845_s1] sm:$0xff] }
   0xe   : > { %2734 = vmatpush.msra.mxu1 %v2461_v1  ;;  %2735 = vmatpush.msra.mxu2 %v2461_v1  ;;  %s2737_s26 = smul.u32 272, %s3946_s13  ;;  %v2579_v15 = vld [vmem:[%s3845_s1 + $0x40] sm:$0xff]  ;;  %v2640_v26 = vld [vmem:[%s3845_s1 + $0x68] sm:$0xff]  ;;  %v2670_v27 = vld [vmem:[%s3845_s1 + $0x78] sm:$0xff] }
   0xf   : > { %2736 = vmatpush.msra.mxu3 %v2461_v1  ;;  %332 = vmatpush.msra.mxu0 %v2461_v1  ;;  %v2610_v28 = vld [vmem:[%s3845_s1 + $0x58] sm:$0xff]  ;;  %v2700_v33 = vld [vmem:[%s3845_s1 + $0x88] sm:$0xff]  ;;  %s2738_s4 = smul.u32 224, %s3946_s13 }
  0x10   : > { %732 = vmatpush.msrb.mxu2 %v2520_v2  ;;  %516 = vmatpush.msrb.mxu1 %v200_v4  ;;  %s2814_s6 = scalar_lea.vmem %s3844_s0, %s2737_s26 }
  0x11   : > { %976 = vmatpush.msrb.mxu3 %v2550_v3  ;;  %v2817_v8 = vld [vmem:[%s2814_s6 + $0x39] sm:$0xff]  ;;  %v2820_v9 = vld [vmem:[%s2814_s6 + $0x71] sm:$0xff]  ;;  %v2823_v10 = vld [vmem:[%s2814_s6 + $0xa9] sm:$0xff]  ;;  %1220 = vmatpush.msrb.mxu0 %v2580_v6  ;;  %s3652_s13 = scalar_lea.vmem %s3847_s3, %s2738_s4 }
  0x12   : > { %733 = vmatpush.msrb.mxu2 %v2519_v5  ;;  %2470 = vmatmul.msk.f32.vlgmr.msra.gmra.mxu1 %vm232_vm0, %v2817_v8  ;;  %v201_v11 = vld [vmem:[%s2814_s6 + $0x1] sm:$0xff]  ;;  %v2840_v14 = vld [vmem:[%s2814_s6 + $0x79] sm:$0xff]  ;;  %v2846_v16 = vld [vmem:[%s2814_s6 + $0xb1] sm:$0xff] }
  0x13   : > { %977 = vmatpush.msrb.mxu3 %v2549_v7  ;;  %2477 = vmatmul.msk.f32.vlgmr.msra.gmra.mxu2 %vm232_vm0, %v2820_v9  ;;  %v2837_v13 = vld [vmem:[%s2814_s6 + $0x41] sm:$0xff]  ;;  %v202_v17 = vld [vmem:[%s2814_s6 + $0x9] sm:$0xff]  ;;  %v2863_v20 = vld [vmem:[%s2814_s6 + $0xb9] sm:$0xff] }
  0x14   : > { %2484 = vmatmul.msk.f32.vlgmr.msra.gmra.mxu3 %vm232_vm0, %v2823_v10  ;;  %2463 = vmatmul.msk.f32.vlgmr.msra.gmra.mxu0 %vm232_vm0, %v201_v11  ;;  %v2857_v18 = vld [vmem:[%s2814_s6 + $0x49] sm:$0xff]  ;;  %v2860_v19 = vld [vmem:[%s2814_s6 + $0x81] sm:$0xff]  ;;  %v203_v21 = vld [vmem:[%s2814_s6 + $0x11] sm:$0xff] }
  0x15   : > { %517 = vmatpush.msrb.mxu1 %v199_v12  ;;  %1221 = vmatpush.msrb.mxu0 %v2579_v15  ;;  %v2874_v22 = vld [vmem:[%s2814_s6 + $0x51] sm:$0xff]  ;;  %v2877_v23 = vld [vmem:[%s2814_s6 + $0x89] sm:$0xff]  ;;  %v2880_v24 = vld [vmem:[%s2814_s6 + $0xc1] sm:$0xff] }
  0x16   : > { %v204_v25 = vld [vmem:[%s2814_s6 + $0x19] sm:$0xff]  ;;  %1708 = vmatpush.msra.mxu2 %v2640_v26  ;;  %1952 = vmatpush.msra.mxu3 %v2670_v27  ;;  %v2903_v30 = vld [vmem:[%s2814_s6 + $0x91] sm:$0xff]  ;;  %v2906_v31 = vld [vmem:[%s2814_s6 + $0xc9] sm:$0xff] }
  0x17   : > { %1464 = vmatpush.msra.mxu1 %v2610_v28  ;;  %v2900_v29 = vld [vmem:[%s2814_s6 + $0x59] sm:$0xff]  ;;  %v2909_v32 = vld [vmem:[%s2814_s6 + $0x21] sm:$0xff]  ;;  %2196 = vmatpush.msra.mxu0 %v2700_v33  ;;  %v2929_v36 = vld [vmem:[%s2814_s6 + $0xd1] sm:$0xff] }
  0x18   : > { %3873 = vst [vmem:[#allocation2_spill] sm:$0xff] %v2900_v29  ;;  %v2923_v34 = vld [vmem:[%s2814_s6 + $0x61] sm:$0xff]  ;;  %v2926_v35 = vld [vmem:[%s2814_s6 + $0x99] sm:$0xff]  ;;  %v2932_v37 = vld [vmem:[%s2814_s6 + $0x29] sm:$0xff] }
  0x19   : > { %v2943_v38 = vld [vmem:[%s2814_s6 + $0x69] sm:$0xff]  ;;  %v2946_v39 = vld [vmem:[%s2814_s6 + $0xa1] sm:$0xff]  ;;  %v2949_v40 = vld [vmem:[%s2814_s6 + $0xd9] sm:$0xff] }
  0x1a   : > { %2471 = vmatmul.msk.f32.gmra.mxu1 %vm232_vm0, %v2837_v13  ;;  %v2952_v41 = vld [vmem:[%s2814_s6 + $0x31] sm:$0xff]  ;;  %v171_v42 = vld [vmem:[%s2814_s6] sm:$0xff]  ;;  %v172_v45 = vld [vmem:[%s2814_s6 + $0x8] sm:$0xff] }
  0x1b   : > { %2478 = vmatmul.msk.f32.gmra.mxu2 %vm232_vm0, %v2840_v14  ;;  %v603_v43 = vld [vmem:[%s2814_s6 + $0x2] sm:$0xff]  ;;  %v847_v44 = vld [vmem:[%s2814_s6 + $0x10] sm:$0xff]  ;;  %v848_v47 = vld [vmem:[%s2814_s6 + $0x18] sm:$0xff] }
  0x1c   : > { %2485 = vmatmul.msk.f32.gmra.mxu3 %vm232_vm0, %v2846_v16  ;;  %2464 = vmatmul.msk.f32.gmra.mxu0 %vm232_vm0, %v202_v17  ;;  %v604_v46 = vld [vmem:[%s2814_s6 + $0xa] sm:$0xff]  ;;  %v2977_v48 = vld [vmem:[%s2814_s6 + $0x12] sm:$0xff]  ;;  %v2980_v49 = vld [vmem:[%s2814_s6 + $0x20] sm:$0xff] }
  0x1d   : > { %v2990_v50 = vld [vmem:[%s2814_s6 + $0x1a] sm:$0xff]  ;;  %v2993_v51 = vld [vmem:[%s2814_s6 + $0x28] sm:$0xff]  ;;  %v3006_v53 = vld [vmem:[%s2814_s6 + $0x30] sm:$0xff] }
  0x1e   : > { %v3003_v52 = vld [vmem:[%s2814_s6 + $0x22] sm:$0xff]  ;;  %v3017_v54 = vld [vmem:[%s2814_s6 + $0x2a] sm:$0xff]  ;;  %v3020_v55 = vld [vmem:[%s2814_s6 + $0x38] sm:$0xff] }
  0x1f   : > { %v3031_v56 = vld [vmem:[%s2814_s6 + $0x32] sm:$0xff]  ;;  %v3034_v57 = vld [vmem:[%s2814_s6 + $0x40] sm:$0xff]  ;;  %v3048_v59 = vld [vmem:[%s2814_s6 + $0x48] sm:$0xff] }
  0x20   : > { %v3045_v58 = vld [vmem:[%s2814_s6 + $0x3a] sm:$0xff]  ;;  %v3059_v60 = vld [vmem:[%s2814_s6 + $0x42] sm:$0xff]  ;;  %v3062_v61 = vld [vmem:[%s2814_s6 + $0x50] sm:$0xff] }
  0x21   : > { %v3075_v63 = vld [vmem:[%s2814_s6 + $0x4a] sm:$0xff]  ;;  %v3078_v0 = vld [vmem:[%s2814_s6 + $0x58] sm:$0xff]  ;;  %v3100_v6 = vld [vmem:[%s2814_s6 + $0x60] sm:$0xff] }
  0x22   : > { %2472 = vmatmul.msk.f32.gmra.mxu1 %vm232_vm0, %v2857_v18  ;;  %3874 = vst [vmem:[#allocation3_spill] sm:$0xff] %v3078_v0  ;;  %v3097_v5 = vld [vmem:[%s2814_s6 + $0x52] sm:$0xff]  ;;  %v2639_v11 = vld [vmem:[%s3845_s1 + $0x60] sm:$0xff]  ;;  %v3131_v27 = vld [vmem:[%s2814_s6 + $0x68] sm:$0xff] }
  0x23   : > { %2479 = vmatmul.msk.f32.gmra.mxu2 %vm232_vm0, %v2860_v19  ;;  %3876 = vst [vmem:[#allocation5_spill] sm:$0xff] %v3097_v5  ;;  %v2669_v12 = vld [vmem:[%s3845_s1 + $0x70] sm:$0xff]  ;;  %v3128_v26 = vld [vmem:[%s2814_s6 + $0x5a] sm:$0xff] }
  0x24   : > { %2486 = vmatmul.msk.f32.gmra.mxu3 %vm232_vm0, %v2863_v20  ;;  %2465 = vmatmul.msk.f32.gmra.mxu0 %vm232_vm0, %v203_v21  ;;  %3877 = vst [vmem:[#allocation6_spill] sm:$0xff] %v3100_v6  ;;  %v2609_v17 = vld [vmem:[%s3845_s1 + $0x50] sm:$0xff]  ;;  %v2699_v33 = vld [vmem:[%s3845_s1 + $0x80] sm:$0xff] }
  0x25   : > { %1709 = vmatpush.msra.mxu2 %v2639_v11  ;;  %1953 = vmatpush.msra.mxu3 %v2669_v12  ;;  %3879 = vst [vmem:[#allocation8_spill] sm:$0xff] %v3128_v26  ;;  %v3175_v12 = vld [vmem:[%s2814_s6 + $0x6a] sm:$0xff] }
  0x26   : > { %1465 = vmatpush.msra.mxu1 %v2609_v17  ;;  %3880 = vst [vmem:[#allocation9_spill] sm:$0xff] %v3131_v27  ;;  %2197 = vmatpush.msra.mxu0 %v2699_v33  ;;  %v3178_v17 = vld [vmem:[%s2814_s6 + $0x78] sm:$0xff] }
  0x27   : > { %3885 = vst [vmem:[#allocation14_spill] sm:$0xff] %v3175_v12 }
  0x28   : > { %3886 = vst [vmem:[#allocation15_spill] sm:$0xff] %v3178_v17 }
  0x2a   : > { %2473 = vmatmul.msk.f32.gmra.mxu1 %vm232_vm0, %v2874_v22 }
  0x2b   : > { %2480 = vmatmul.msk.f32.gmra.mxu2 %vm232_vm0, %v2877_v23 }
  0x2c   : > { %2487 = vmatmul.msk.f32.gmra.mxu3 %vm232_vm0, %v2880_v24  ;;  %2466 = vmatmul.msk.f32.gmra.mxu0 %vm232_vm0, %v204_v25 }
  0x32   : > { %2474 = vmatmul.msk.f32.gmra.mxu1 %vm232_vm0, %v2900_v29 }
  0x33   : > { %2481 = vmatmul.msk.f32.gmra.mxu2 %vm232_vm0, %v2903_v30 }
  0x34   : > { %2488 = vmatmul.msk.f32.gmra.mxu3 %vm232_vm0, %v2906_v31  ;;  %2467 = vmatmul.msk.f32.gmra.mxu0 %vm232_vm0, %v2909_v32 }
  0x3a   : > { %2475 = vmatmul.msk.f32.gmra.mxu1 %vm232_vm0, %v2923_v34 }
  0x3b   : > { %2482 = vmatmul.msk.f32.gmra.mxu2 %vm232_vm0, %v2926_v35 }
  0x3c   : > { %2489 = vmatmul.msk.f32.gmra.mxu3 %vm232_vm0, %v2929_v36  ;;  %2468 = vmatmul.msk.f32.gmra.mxu0 %vm232_vm0, %v2932_v37 }
  0x42   : > { %2476 = vmatmul.msk.f32.gmra.mxu1 %vm232_vm0, %v2943_v38 }
  0x43   : > { %2483 = vmatmul.msk.f32.gmra.mxu2 %vm232_vm0, %v2946_v39 }
  0x44   : > { %2490 = vmatmul.msk.f32.gmra.mxu3 %vm232_vm0, %v2949_v40  ;;  %2469 = vmatmul.msk.f32.gmra.mxu0 %vm232_vm0, %v2952_v41 }
  0x4a   : > { %2491 = vmatmul.msk.f32.vlgmr.msrb.gmra.mxu1 %vm232_vm0, %v171_v42 }
  0x4b   : > { %2521 = vmatmul.msk.f32.vlgmr.msrb.gmra.mxu2 %vm232_vm0, %v603_v43 }
  0x4c   : > { %2551 = vmatmul.msk.f32.vlgmr.msrb.gmra.mxu3 %vm232_vm0, %v847_v44  ;;  %2581 = vmatmul.msk.f32.vlgmr.msrb.gmra.mxu0 %vm232_vm0, %v203_v21 }
  0x52   : > { %2492 = vmatmul.msk.f32.gmra.mxu1 %vm232_vm0, %v172_v45  ;;  %v3156_v45 = vld [vmem:[%s2814_s6 + $0x70] sm:$0xff] }
  0x53   : > { %2522 = vmatmul.msk.f32.gmra.mxu2 %vm232_vm0, %v604_v46  ;;  %3883 = vst [vmem:[#allocation12_spill] sm:$0xff] %v3156_v45 }
  0x54   : > { %2552 = vmatmul.msk.f32.gmra.mxu3 %vm232_vm0, %v848_v47  ;;  %2582 = vmatmul.msk.f32.gmra.mxu0 %vm232_vm0, %v204_v25 }
  0x5a   : > { %2493 = vmatmul.msk.f32.gmra.mxu1 %vm232_vm0, %v847_v44  ;;  %v3153_v44 = vld [vmem:[%s2814_s6 + $0x62] sm:$0xff] }
  0x5b   : > { %2523 = vmatmul.msk.f32.gmra.mxu2 %vm232_vm0, %v2977_v48  ;;  %3882 = vst [vmem:[#allocation11_spill] sm:$0xff] %v3153_v44 }
  0x5c   : > { %2553 = vmatmul.msk.f32.gmra.mxu3 %vm232_vm0, %v2980_v49  ;;  %2583 = vmatmul.msk.f32.gmra.mxu0 %vm232_vm0, %v2909_v32 }
  0x62   : > { %2494 = vmatmul.msk.f32.gmra.mxu1 %vm232_vm0, %v848_v47 }
  0x63   : > { %2524 = vmatmul.msk.f32.gmra.mxu2 %vm232_vm0, %v2990_v50 }
  0x64   : > { %2554 = vmatmul.msk.f32.gmra.mxu3 %vm232_vm0, %v2993_v51  ;;  %2584 = vmatmul.msk.f32.gmra.mxu0 %vm232_vm0, %v2932_v37 }
  0x6a   : > { %2495 = vmatmul.msk.f32.gmra.mxu1 %vm232_vm0, %v2980_v49 }
  0x6b   : > { %2525 = vmatmul.msk.f32.gmra.mxu2 %vm232_vm0, %v3003_v52 }
  0x6c   : > { %2555 = vmatmul.msk.f32.gmra.mxu3 %vm232_vm0, %v3006_v53  ;;  %2585 = vmatmul.msk.f32.gmra.mxu0 %vm232_vm0, %v2952_v41 }
  0x72   : > { %2496 = vmatmul.msk.f32.gmra.mxu1 %vm232_vm0, %v2993_v51 }
  0x73   : > { %2526 = vmatmul.msk.f32.gmra.mxu2 %vm232_vm0, %v3017_v54 }
  0x74   : > { %2556 = vmatmul.msk.f32.gmra.mxu3 %vm232_vm0, %v3020_v55  ;;  %2586 = vmatmul.msk.f32.gmra.mxu0 %vm232_vm0, %v2817_v8 }
  0x7a   : > { %2497 = vmatmul.msk.f32.gmra.mxu1 %vm232_vm0, %v3006_v53 }
  0x7b   : > { %2527 = vmatmul.msk.f32.gmra.mxu2 %vm232_vm0, %v3031_v56 }
  0x7c   : > { %2557 = vmatmul.msk.f32.gmra.mxu3 %vm232_vm0, %v3034_v57  ;;  %2587 = vmatmul.msk.f32.gmra.mxu0 %vm232_vm0, %v2837_v13 }
  0x82   : > { %2498 = vmatmul.msk.f32.gmra.mxu1 %vm232_vm0, %v3020_v55 }
  0x83   : > { %2528 = vmatmul.msk.f32.gmra.mxu2 %vm232_vm0, %v3045_v58 }
  0x84   : > { %2558 = vmatmul.msk.f32.gmra.mxu3 %vm232_vm0, %v3048_v59  ;;  %2588 = vmatmul.msk.f32.gmra.mxu0 %vm232_vm0, %v2857_v18 }
  0x8a   : > { %2499 = vmatmul.msk.f32.gmra.mxu1 %vm232_vm0, %v3034_v57 }
  0x8b   : > { %2529 = vmatmul.msk.f32.gmra.mxu2 %vm232_vm0, %v3059_v60 }
  0x8c   : > { %2559 = vmatmul.msk.f32.gmra.mxu3 %vm232_vm0, %v3062_v61  ;;  %2589 = vmatmul.msk.f32.gmra.mxu0 %vm232_vm0, %v2874_v22 }
  0x8f   : > { %v3072_v62 = vpop.f32.mrf.mxu1 }
  0x91   : > { %v3080_v1 = vpop.f32.mrf.mxu0 }
  0x92   : > { %2500 = vmatmul.msk.f32.gmra.mxu1 %vm232_vm0, %v3048_v59 }
  0x93   : > { %2530 = vmatmul.msk.f32.gmra.mxu2 %vm232_vm0, %v3075_v63 }
  0x94   : > { %2560 = vmatmul.msk.f32.gmra.mxu3 %vm232_vm0, %v3078_v0  ;;  %2590 = vmatmul.msk.f32.gmra.mxu0 %vm232_vm0, %v2900_v29 }
  0x96   : > { %v3090_v2 = vpop.f32.mrf.mxu2 }
  0x97   : > { %v3092_v3 = vpop.f32.mrf.mxu3  ;;  %v3094_v4 = vpop.f32.mrf.mxu1 }
  0x98   : > { %3875 = vst [vmem:[#allocation4_spill] sm:$0xff] %v3092_v3  ;;  %v3200_v3 = vld [vmem:[%s2814_s6 + $0x80] sm:$0xff] }
  0x99   : > { %v3102_v7 = vpop.f32.mrf.mxu0  ;;  %3890 = vst [vmem:[#allocation19_spill] sm:$0xff] %v3200_v3 }
  0x9a   : > { %2501 = vmatmul.msk.f32.gmra.mxu1 %vm232_vm0, %v3062_v61 }
  0x9b   : > { %2531 = vmatmul.msk.f32.gmra.mxu2 %vm232_vm0, %v3097_v5 }
  0x9c   : > { %2561 = vmatmul.msk.f32.gmra.mxu3 %vm232_vm0, %v3100_v6  ;;  %2591 = vmatmul.msk.f32.gmra.mxu0 %vm232_vm0, %v2923_v34 }
  0x9e   : > { %v3118_v15 = vpop.f32.mrf.mxu2 }
  0x9f   : > { %v3123_v21 = vpop.f32.mrf.mxu3  ;;  %v3125_v25 = vpop.f32.mrf.mxu1 }
  0xa0   : > { %3878 = vst [vmem:[#allocation7_spill] sm:$0xff] %v3123_v21  ;;  %v3197_v21 = vld [vmem:[%s2814_s6 + $0x72] sm:$0xff] }
  0xa1   : > { %v3133_v28 = vpop.f32.mrf.mxu0  ;;  %3889 = vst [vmem:[#allocation18_spill] sm:$0xff] %v3197_v21 }
  0xa2   : > { %2502 = vmatmul.msk.f32.gmra.mxu1 %vm232_vm0, %v3078_v0  ;;  %v3254_v0 = vld [vmem:[%s2814_s6 + $0x8a] sm:$0xff] }
  0xa3   : > { %2532 = vmatmul.msk.f32.gmra.mxu2 %vm232_vm0, %v3128_v26  ;;  %v3242_v26 = vld [vmem:[%s2814_s6 + $0x90] sm:$0xff] }
  0xa4   : > { %2562 = vmatmul.msk.f32.gmra.mxu3 %vm232_vm0, %v3131_v27  ;;  %2592 = vmatmul.msk.f32.gmra.mxu0 %vm232_vm0, %v2943_v38 }
  0xa6   : > { %v3146_v34 = vpop.f32.mrf.mxu2 }
  0xa7   : > { %v3148_v42 = vpop.f32.mrf.mxu3  ;;  %v3150_v43 = vpop.f32.mrf.mxu1 }
  0xa8   : > { %3881 = vst [vmem:[#allocation10_spill] sm:$0xff] %v3148_v42 }
  0xa9   : > { %v3158_v46 = vpop.f32.mrf.mxu0 }
  0xaa   : > { %2503 = vmatmul.msk.f32.gmra.mxu1 %vm232_vm0, %v3100_v6 }
  0xab   : > { %2533 = vmatmul.msk.f32.gmra.mxu2 %vm232_vm0, %v3153_v44  ;;  %v3219_v44 = vld [vmem:[%s2814_s6 + $0x7a] sm:$0xff] }
  0xac   : > { %2563 = vmatmul.msk.f32.gmra.mxu3 %vm232_vm0, %v3156_v45  ;;  %2593 = vmatmul.msk.f32.gmra.mxu0 %vm232_vm0, %v2820_v9  ;;  %3893 = vst [vmem:[#allocation22_spill] sm:$0xff] %v3219_v44 }
  0xae   : > { %v3168_v38 = vpop.f32.mrf.mxu2 }
  0xaf   : > { %v3170_v47 = vpop.f32.mrf.mxu3  ;;  %v3172_v11 = vpop.f32.mrf.mxu1 }
  0xb0   : > { %3884 = vst [vmem:[#allocation13_spill] sm:$0xff] %v3170_v47 }
  0xb1   : > { %v3180_v33 = vpop.f32.mrf.mxu0 }
  0xb2   : > { %2504 = vmatmul.msk.f32.gmra.mxu1 %vm232_vm0, %v3131_v27 }
  0xb3   : > { %2534 = vmatmul.msk.f32.gmra.mxu2 %vm232_vm0, %v3175_v12 }
  0xb4   : > { %2564 = vmatmul.msk.f32.gmra.mxu3 %vm232_vm0, %v3178_v17  ;;  %2594 = vmatmul.msk.f32.gmra.mxu0 %vm232_vm0, %v2840_v14 }
  0xb6   : > { %v3190_v9 = vpop.f32.mrf.mxu2 }
  0xb7   : > { %3887 = vst [vmem:[#allocation16_spill] sm:$0xff] %v3190_v9  ;;  %v3192_v47 = vpop.f32.mrf.mxu3  ;;  %v3194_v42 = vpop.f32.mrf.mxu1  ;;  %v3257_v9 = vld [vmem:[%s2814_s6 + $0x98] sm:$0xff] }
  0xb8   : > { %3888 = vst [vmem:[#allocation17_spill] sm:$0xff] %v3192_v47 }
  0xb9   : > { %v3202_v27 = vpop.f32.mrf.mxu0 }
  0xba   : > { %2505 = vmatmul.msk.f32.gmra.mxu1 %vm232_vm0, %v3156_v45  ;;  %v3222_v45 = vld [vmem:[%s2814_s6 + $0x88] sm:$0xff] }
  0xbb   : > { %2535 = vmatmul.msk.f32.gmra.mxu2 %vm232_vm0, %v3197_v21 }
  0xbc   : > { %2565 = vmatmul.msk.f32.gmra.mxu3 %vm232_vm0, %v3200_v3  ;;  %2595 = vmatmul.msk.f32.gmra.mxu0 %vm232_vm0, %v2860_v19 }
  0xbe   : > { %v3212_v14 = vpop.f32.mrf.mxu2 }
  0xbf   : > { %3891 = vst [vmem:[#allocation20_spill] sm:$0xff] %v3212_v14  ;;  %v3214_v47 = vpop.f32.mrf.mxu3  ;;  %v3216_v12 = vpop.f32.mrf.mxu1  ;;  %v3239_v14 = vld [vmem:[%s2814_s6 + $0x82] sm:$0xff] }
  0xc0   : > { %3892 = vst [vmem:[#allocation21_spill] sm:$0xff] %v3214_v47 }
  0xc1   : > { %v3224_v6 = vpop.f32.mrf.mxu0  ;;  %3896 = vst [vmem:[#allocation25_spill] sm:$0xff] %v3239_v14 }
  0xc2   : > { %2506 = vmatmul.msk.f32.gmra.mxu1 %vm232_vm0, %v3178_v17 }
  0xc3   : > { %2536 = vmatmul.msk.f32.gmra.mxu2 %vm232_vm0, %v3219_v44 }
  0xc4   : > { %2566 = vmatmul.msk.f32.gmra.mxu3 %vm232_vm0, %v3222_v45  ;;  %2596 = vmatmul.msk.f32.gmra.mxu0 %vm232_vm0, %v2877_v23 }
  0xc6   : > { %v3234_v19 = vpop.f32.mrf.mxu2 }
  0xc7   : > { %3894 = vst [vmem:[#allocation23_spill] sm:$0xff] %v3234_v19  ;;  %v3236_v47 = vpop.f32.mrf.mxu3  ;;  %v519_v21 = vpop.f32.mrf.mxu1 }
  0xc8   : > { %3895 = vst [vmem:[#allocation24_spill] sm:$0xff] %v3236_v47  ;;  %v520_v23 = vadd.f32 %v519_v21, %v3080_v1 }
  0xc9   : > { %v1223_v17 = vpop.f32.mrf.mxu0 }
  0xca   : > { %2507 = vmatmul.msk.f32.gmra.mxu1 %vm232_vm0, %v3200_v3 }
  0xcb   : > { %2537 = vmatmul.msk.f32.gmra.mxu2 %vm232_vm0, %v3239_v14 }
  0xcc   : > { %2567 = vmatmul.msk.f32.gmra.mxu3 %vm232_vm0, %v3242_v26  ;;  %2597 = vmatmul.msk.f32.gmra.mxu0 %vm232_vm0, %v2903_v30 }
  0xce   : > { %v735_v47 = vpop.f32.mrf.mxu2 }
  0xcf   : > { %v819_v44 = vadd.f32 %v735_v47, %v520_v23  ;;  %v979_v19 = vpop.f32.mrf.mxu3  ;;  %v522_v29 = vpop.f32.mrf.mxu1  ;;  %v3271_v47 = vld [vmem:[%s2814_s6 + $0x92] sm:$0xff] }
  0xd0   : > { %v523_v30 = vadd.f32 %v522_v29, %v3102_v7 }
  0xd1   : > { %v1063_v3 = vadd.f32 %v979_v19, %v819_v44  ;;  %v1226_v14 = vpop.f32.mrf.mxu0  ;;  %v3274_v19 = vld [vmem:[%s2814_s6 + $0xa0] sm:$0xff] }
  0xd2   : > { %2508 = vmatmul.msk.f32.gmra.mxu1 %vm232_vm0, %v3222_v45 }
  0xd3   : > { %v3259_v5 = vadd.f32 %v1223_v17, %v1063_v3  ;;  %2538 = vmatmul.msk.f32.gmra.mxu2 %vm232_vm0, %v3254_v0 }
  0xd4   : > { %2568 = vmatmul.msk.f32.gmra.mxu3 %vm232_vm0, %v3257_v9  ;;  %2598 = vmatmul.msk.f32.gmra.mxu0 %vm232_vm0, %v2926_v35 }
  0xd5   : > { %3897 = vst [vmem:[#allocation26_spill] sm:$0xff] %v3259_v5 }
  0xd6   : > { %v738_v1 = vpop.f32.mrf.mxu2 }
  0xd7   : > { %v820_v21 = vadd.f32 %v738_v1, %v523_v30  ;;  %v982_v44 = vpop.f32.mrf.mxu3  ;;  %v525_v3 = vpop.f32.mrf.mxu1  ;;  %v3288_v1 = vld [vmem:[%s2814_s6 + $0x9a] sm:$0xff] }
  0xd8   : > { %v526_v29 = vadd.f32 %v525_v3, %v3133_v28 }
  0xd9   : > { %v1064_v17 = vadd.f32 %v982_v44, %v820_v21  ;;  %v1229_v23 = vpop.f32.mrf.mxu0  ;;  %v3291_v44 = vld [vmem:[%s2814_s6 + $0xa8] sm:$0xff] }
  0xda   : > { %2509 = vmatmul.msk.f32.gmra.mxu1 %vm232_vm0, %v3242_v26 }
  0xdb   : > { %v3276_v5 = vadd.f32 %v1226_v14, %v1064_v17  ;;  %2539 = vmatmul.msk.f32.gmra.mxu2 %vm232_vm0, %v3271_v47 }
  0xdc   : > { %2569 = vmatmul.msk.f32.gmra.mxu3 %vm232_vm0, %v3274_v19  ;;  %2599 = vmatmul.msk.f32.gmra.mxu0 %vm232_vm0, %v2946_v39 }
  0xdd   : > { %3898 = vst [vmem:[#allocation27_spill] sm:$0xff] %v3276_v5 }
  0xde   : > { %v741_v35 = vpop.f32.mrf.mxu2 }
  0xdf   : > { %v821_v7 = vadd.f32 %v741_v35, %v526_v29  ;;  %v985_v30 = vpop.f32.mrf.mxu3  ;;  %v528_v14 = vpop.f32.mrf.mxu1  ;;  %v3305_v35 = vld [vmem:[%s2814_s6 + $0xa2] sm:$0xff] }
  0xe0   : > { %v529_v39 = vadd.f32 %v528_v14, %v3158_v46 }
  0xe1   : > { %v1065_v21 = vadd.f32 %v985_v30, %v821_v7  ;;  %v1232_v17 = vpop.f32.mrf.mxu0  ;;  %v3308_v30 = vld [vmem:[%s2814_s6 + $0xb0] sm:$0xff] }
  0xe2   : > { %2510 = vmatmul.msk.f32.gmra.mxu1 %vm232_vm0, %v3257_v9 }
  0xe3   : > { %v3293_v5 = vadd.f32 %v1229_v23, %v1065_v21  ;;  %2540 = vmatmul.msk.f32.gmra.mxu2 %vm232_vm0, %v3288_v1 }
  0xe4   : > { %2570 = vmatmul.msk.f32.gmra.mxu3 %vm232_vm0, %v3291_v44  ;;  %2600 = vmatmul.msk.f32.gmra.mxu0 %vm232_vm0, %v2823_v10 }
  0xe5   : > { %3899 = vst [vmem:[#allocation28_spill] sm:$0xff] %v3293_v5 }
  0xe6   : > { %v744_v28 = vpop.f32.mrf.mxu2 }
  0xe7   : > { %v822_v3 = vadd.f32 %v744_v28, %v529_v39  ;;  %v988_v29 = vpop.f32.mrf.mxu3  ;;  %v531_v23 = vpop.f32.mrf.mxu1  ;;  %v3322_v28 = vld [vmem:[%s2814_s6 + $0xaa] sm:$0xff] }
  0xe8   : > { %v532_v10 = vadd.f32 %v531_v23, %v3180_v33 }
  0xe9   : > { %v1066_v7 = vadd.f32 %v988_v29, %v822_v3  ;;  %v1235_v21 = vpop.f32.mrf.mxu0  ;;  %v3325_v29 = vld [vmem:[%s2814_s6 + $0xb8] sm:$0xff] }
  0xea   : > { %2511 = vmatmul.msk.f32.gmra.mxu1 %vm232_vm0, %v3274_v19 }
  0xeb   : > { %v3310_v5 = vadd.f32 %v1232_v17, %v1066_v7  ;;  %2541 = vmatmul.msk.f32.gmra.mxu2 %vm232_vm0, %v3305_v35 }
  0xec   : > { %2571 = vmatmul.msk.f32.gmra.mxu3 %vm232_vm0, %v3308_v30  ;;  %2601 = vmatmul.msk.f32.gmra.mxu0 %vm232_vm0, %v2846_v16 }
  0xed   : > { %3900 = vst [vmem:[#allocation29_spill] sm:$0xff] %v3310_v5 }
  0xee   : > { %v747_v46 = vpop.f32.mrf.mxu2 }
  0xef   : > { %v823_v14 = vadd.f32 %v747_v46, %v532_v10  ;;  %v991_v39 = vpop.f32.mrf.mxu3  ;;  %v534_v17 = vpop.f32.mrf.mxu1  ;;  %v3339_v46 = vld [vmem:[%s2814_s6 + $0xb2] sm:$0xff] }
  0xf0   : > { %v535_v16 = vadd.f32 %v534_v17, %v3202_v27 }
  0xf1   : > { %v1067_v3 = vadd.f32 %v991_v39, %v823_v14  ;;  %v1238_v7 = vpop.f32.mrf.mxu0  ;;  %v3342_v39 = vld [vmem:[%s2814_s6 + $0xc0] sm:$0xff] }
  0xf2   : > { %2512 = vmatmul.msk.f32.gmra.mxu1 %vm232_vm0, %v3291_v44 }
  0xf3   : > { %v3327_v5 = vadd.f32 %v1235_v21, %v1067_v3  ;;  %2542 = vmatmul.msk.f32.gmra.mxu2 %vm232_vm0, %v3322_v28 }
  0xf4   : > { %2572 = vmatmul.msk.f32.gmra.mxu3 %vm232_vm0, %v3325_v29  ;;  %2602 = vmatmul.msk.f32.gmra.mxu0 %vm232_vm0, %v2863_v20 }
  0xf5   : > { %3901 = vst [vmem:[#allocation30_spill] sm:$0xff] %v3327_v5 }
  0xf6   : > { %v750_v33 = vpop.f32.mrf.mxu2 }
  0xf7   : > { %v824_v23 = vadd.f32 %v750_v33, %v535_v16  ;;  %v994_v10 = vpop.f32.mrf.mxu3  ;;  %v537_v21 = vpop.f32.mrf.mxu1  ;;  %v3356_v33 = vld [vmem:[%s2814_s6 + $0xba] sm:$0xff] }
  0xf8   : > { %v538_v20 = vadd.f32 %v537_v21, %v3224_v6 }
  0xf9   : > { %v1068_v14 = vadd.f32 %v994_v10, %v824_v23  ;;  %v1241_v3 = vpop.f32.mrf.mxu0  ;;  %v3359_v10 = vld [vmem:[%s2814_s6 + $0xc8] sm:$0xff] }
  0xfa   : > { %2513 = vmatmul.msk.f32.gmra.mxu1 %vm232_vm0, %v3308_v30 }
  0xfb   : > { %v3344_v5 = vadd.f32 %v1238_v7, %v1068_v14  ;;  %2543 = vmatmul.msk.f32.gmra.mxu2 %vm232_vm0, %v3339_v46 }
  0xfc   : > { %2573 = vmatmul.msk.f32.gmra.mxu3 %vm232_vm0, %v3342_v39  ;;  %2603 = vmatmul.msk.f32.gmra.mxu0 %vm232_vm0, %v2880_v24 }
  0xfd   : > { %3902 = vst [vmem:[#allocation31_spill] sm:$0xff] %v3344_v5 }
  0xfe   : > { %v753_v27 = vpop.f32.mrf.mxu2 }
  0xff   : > { %v825_v17 = vadd.f32 %v753_v27, %v538_v20  ;;  %v997_v16 = vpop.f32.mrf.mxu3  ;;  %v540_v7 = vpop.f32.mrf.mxu1  ;;  %v3373_v27 = vld [vmem:[%s2814_s6 + $0xc2] sm:$0xff] }
 0x100   : > { %v541_v24 = vadd.f32 %v540_v7, %v3072_v62 }
 0x101   : > { %v1069_v23 = vadd.f32 %v997_v16, %v825_v17  ;;  %v1244_v14 = vpop.f32.mrf.mxu0  ;;  %v3376_v16 = vld [vmem:[%s2814_s6 + $0xd0] sm:$0xff] }
 0x102   : > { %2514 = vmatmul.msk.f32.gmra.mxu1 %vm232_vm0, %v3325_v29 }
 0x103   : > { %v3361_v5 = vadd.f32 %v1241_v3, %v1069_v23  ;;  %2544 = vmatmul.msk.f32.gmra.mxu2 %vm232_vm0, %v3356_v33 }
 0x104   : > { %2574 = vmatmul.msk.f32.gmra.mxu3 %vm232_vm0, %v3359_v10  ;;  %2604 = vmatmul.msk.f32.gmra.mxu0 %vm232_vm0, %v2906_v31 }
 0x105   : > { %3903 = vst [vmem:[#allocation32_spill] sm:$0xff] %v3361_v5 }
 0x106   : > { %v756_v6 = vpop.f32.mrf.mxu2 }
 0x107   : > { %v826_v21 = vadd.f32 %v756_v6, %v541_v24  ;;  %v1000_v20 = vpop.f32.mrf.mxu3  ;;  %v543_v3 = vpop.f32.mrf.mxu1  ;;  %v3390_v6 = vld [vmem:[%s2814_s6 + $0xca] sm:$0xff] }
 0x108   : > { %v544_v31 = vadd.f32 %v543_v3, %v3094_v4  ;;  %3905 = vst [vmem:[#allocation34_spill] sm:$0xff] %v3390_v6 }
 0x109   : > { %v1070_v17 = vadd.f32 %v1000_v20, %v826_v21  ;;  %v1247_v23 = vpop.f32.mrf.mxu0  ;;  %v3393_v20 = vld [vmem:[%s2814_s6 + $0xd8] sm:$0xff] }
 0x10a   : > { %2515 = vmatmul.msk.f32.gmra.mxu1 %vm232_vm0, %v3342_v39 }
 0x10b   : > { %v3378_v5 = vadd.f32 %v1244_v14, %v1070_v17  ;;  %2545 = vmatmul.msk.f32.gmra.mxu2 %vm232_vm0, %v3373_v27 }
 0x10c   : > { %2575 = vmatmul.msk.f32.gmra.mxu3 %vm232_vm0, %v3376_v16  ;;  %2605 = vmatmul.msk.f32.gmra.mxu0 %vm232_vm0, %v2929_v36 }
 0x10d   : > { %3904 = vst [vmem:[#allocation33_spill] sm:$0xff] %v3378_v5 }
 0x10e   : > { %v759_v62 = vpop.f32.mrf.mxu2 }
 0x10f   : > { %v827_v7 = vadd.f32 %v759_v62, %v544_v31  ;;  %v1003_v24 = vpop.f32.mrf.mxu3  ;;  %v546_v14 = vpop.f32.mrf.mxu1 }
 0x110   : > { %v547_v36 = vadd.f32 %v546_v14, %v3125_v25 }
 0x111   : > { %v1071_v21 = vadd.f32 %v1003_v24, %v827_v7  ;;  %v1250_v17 = vpop.f32.mrf.mxu0  ;;  %v3410_v24 = vld [vmem:[%s2814_s6 + $0xe0] sm:$0xff] }
 0x112   : > { %2516 = vmatmul.msk.f32.gmra.mxu1 %vm232_vm0, %v3359_v10 }
 0x113   : > { %v3395_v5 = vadd.f32 %v1247_v23, %v1071_v21  ;;  %2546 = vmatmul.msk.f32.gmra.mxu2 %vm232_vm0, %v3390_v6  ;;  %v3407_v23 = vld [vmem:[%s2814_s6 + $0xd2] sm:$0xff] }
 0x114   : > { %2576 = vmatmul.msk.f32.gmra.mxu3 %vm232_vm0, %v3393_v20  ;;  %2606 = vmatmul.msk.f32.gmra.mxu0 %vm232_vm0, %v2949_v40  ;;  %3907 = vst [vmem:[#allocation36_spill] sm:$0xff] %v3407_v23 }
 0x115   : > { %3906 = vst [vmem:[#allocation35_spill] sm:$0xff] %v3395_v5  ;;  %v3413_v5 = vld [vmem:[%s2814_s6 + $0xe1] sm:$0xff] }
 0x116   : > { %v762_v4 = vpop.f32.mrf.mxu2 }
 0x117   : > { %v828_v3 = vadd.f32 %v762_v4, %v547_v36  ;;  %v1006_v31 = vpop.f32.mrf.mxu3  ;;  %v549_v62 = vpop.f32.mrf.mxu1 }
 0x118   : > { %v550_v40 = vadd.f32 %v549_v62, %v3150_v43 }
 0x119   : > { %v1072_v7 = vadd.f32 %v1006_v31, %v828_v3  ;;  %v1253_v21 = vpop.f32.mrf.mxu0  ;;  %v3430_v31 = vld [vmem:[%s2814_s6 + $0xe8] sm:$0xff] }
 0x11a   : > { %2517 = vmatmul.msk.f32.gmra.mxu1 %vm232_vm0, %v3376_v16 }
 0x11b   : > { %v3415_v6 = vadd.f32 %v1250_v17, %v1072_v7  ;;  %2547 = vmatmul.msk.f32.gmra.mxu2 %vm232_vm0, %v3407_v23  ;;  %v3427_v17 = vld [vmem:[%s2814_s6 + $0xda] sm:$0xff] }
 0x11c   : > { %2577 = vmatmul.msk.f32.gmra.mxu3 %vm232_vm0, %v3410_v24  ;;  %2607 = vmatmul.msk.f32.gmra.mxu0 %vm232_vm0, %v3413_v5 }
 0x11d   : > { %3908 = vst [vmem:[#allocation37_spill] sm:$0xff] %v3415_v6  ;;  %v3433_v6 = vld [vmem:[%s2814_s6 + $0xe9] sm:$0xff] }
 0x11e   : > { %v765_v25 = vpop.f32.mrf.mxu2 }
 0x11f   : > { %v829_v14 = vadd.f32 %v765_v25, %v550_v40  ;;  %v1009_v36 = vpop.f32.mrf.mxu3  ;;  %v552_v4 = vpop.f32.mrf.mxu1 }
 0x120   : > { %v553_v43 = vadd.f32 %v552_v4, %v3172_v11 }
 0x121   : > { %v1073_v3 = vadd.f32 %v1009_v36, %v829_v14  ;;  %v1256_v7 = vpop.f32.mrf.mxu0 }
 0x122   : > { %2518 = vmatmul.msk.f32.gmra.mxu1 %vm232_vm0, %v3393_v20 }
 0x123   : > { %v3435_v23 = vadd.f32 %v1253_v21, %v1073_v3  ;;  %2548 = vmatmul.msk.f32.gmra.mxu2 %vm232_vm0, %v3427_v17 }
 0x124   : > { %2578 = vmatmul.msk.f32.gmra.mxu3 %vm232_vm0, %v3430_v31  ;;  %2608 = vmatmul.msk.f32.gmra.mxu0 %vm232_vm0, %v3433_v6 }
 0x126   : > { %v768_v62 = vpop.f32.mrf.mxu2 }
 0x127   : > { %v830_v40 = vadd.f32 %v768_v62, %v553_v43  ;;  %v1012_v25 = vpop.f32.mrf.mxu3  ;;  %v555_v14 = vpop.f32.mrf.mxu1 }
 0x128   : > { %v556_v11 = vadd.f32 %v555_v14, %v3194_v42 }
 0x129   : > { %v1074_v21 = vadd.f32 %v1012_v25, %v830_v40  ;;  %v1259_v36 = vpop.f32.mrf.mxu0 }
 0x12a   : > { %2611 = vmatmul.msk.f32.vlgmr.msra.gmra.mxu1 %vm232_vm0, %v2977_v48 }
 0x12b   : > { %v3446_v3 = vadd.f32 %v1256_v7, %v1074_v21  ;;  %2641 = vmatmul.msk.f32.vlgmr.msra.gmra.mxu2 %vm232_vm0, %v2980_v49 }
 0x12c   : > { %2671 = vmatmul.msk.f32.vlgmr.msra.gmra.mxu3 %vm232_vm0, %v2909_v32  ;;  %2701 = vmatmul.msk.f32.vlgmr.msra.gmra.mxu0 %vm232_vm0, %v3003_v52 }
 0x12e   : > { %v771_v4 = vpop.f32.mrf.mxu2 }
 0x12f   : > { %v831_v43 = vadd.f32 %v771_v4, %v556_v11  ;;  %v1015_v62 = vpop.f32.mrf.mxu3  ;;  %v558_v40 = vpop.f32.mrf.mxu1 }
 0x130   : > { %v559_v32 = vadd.f32 %v558_v40, %v3216_v12 }
 0x131   : > { %v1075_v7 = vadd.f32 %v1015_v62, %v831_v43  ;;  %v1262_v25 = vpop.f32.mrf.mxu0 }
 0x132   : > { %2612 = vmatmul.msk.f32.gmra.mxu1 %vm232_vm0, %v2990_v50 }
 0x133   : > { %v3457_v21 = vadd.f32 %v1259_v36, %v1075_v7  ;;  %2642 = vmatmul.msk.f32.gmra.mxu2 %vm232_vm0, %v2993_v51 }
 0x134   : > { %2672 = vmatmul.msk.f32.gmra.mxu3 %vm232_vm0, %v2932_v37  ;;  %2702 = vmatmul.msk.f32.gmra.mxu0 %vm232_vm0, %v3017_v54 }
 0x136   : > { %v774_v48 = vpop.f32.mrf.mxu2 }
 0x137   : > { %v832_v49 = vadd.f32 %v774_v48, %v559_v32  ;;  %v1018_v42 = vpop.f32.mrf.mxu3  ;;  %v561_v14 = vpop.f32.mrf.mxu1 }
 0x138   : > { %v562_v37 = vadd.f32 %v561_v14, %v3090_v2 }
 0x139   : > { %v1076_v36 = vadd.f32 %v1018_v42, %v832_v49  ;;  %v1265_v11 = vpop.f32.mrf.mxu0 }
 0x13a   : > { %2613 = vmatmul.msk.f32.gmra.mxu1 %vm232_vm0, %v3003_v52 }
 0x13b   : > { %v3468_v4 = vadd.f32 %v1262_v25, %v1076_v36  ;;  %2643 = vmatmul.msk.f32.gmra.mxu2 %vm232_vm0, %v3006_v53 }
 0x13c   : > { %2673 = vmatmul.msk.f32.gmra.mxu3 %vm232_vm0, %v2952_v41  ;;  %2703 = vmatmul.msk.f32.gmra.mxu0 %vm232_vm0, %v3031_v56 }
 0x13e   : > { %v777_v50 = vpop.f32.mrf.mxu2 }
 0x13f   : > { %v833_v51 = vadd.f32 %v777_v50, %v562_v37  ;;  %v1021_v12 = vpop.f32.mrf.mxu3  ;;  %v564_v43 = vpop.f32.mrf.mxu1 }
 0x140   : > { %v565_v41 = vadd.f32 %v564_v43, %v3118_v15 }
 0x141   : > { %v1077_v62 = vadd.f32 %v1021_v12, %v833_v51  ;;  %v1268_v40 = vpop.f32.mrf.mxu0 }
 0x142   : > { %2614 = vmatmul.msk.f32.gmra.mxu1 %vm232_vm0, %v3017_v54 }
 0x143   : > { %v3479_v7 = vadd.f32 %v1265_v11, %v1077_v62  ;;  %2644 = vmatmul.msk.f32.gmra.mxu2 %vm232_vm0, %v3020_v55 }
 0x144   : > { %2674 = vmatmul.msk.f32.gmra.mxu3 %vm232_vm0, %v2817_v8  ;;  %2704 = vmatmul.msk.f32.gmra.mxu0 %vm232_vm0, %v3045_v58 }
 0x146   : > { %v780_v52 = vpop.f32.mrf.mxu2 }
 0x147   : > { %v834_v53 = vadd.f32 %v780_v52, %v565_v41  ;;  %v1024_v2 = vpop.f32.mrf.mxu3  ;;  %v567_v25 = vpop.f32.mrf.mxu1 }
 0x148   : > { %v568_v8 = vadd.f32 %v567_v25, %v3146_v34 }
 0x149   : > { %v1078_v32 = vadd.f32 %v1024_v2, %v834_v53  ;;  %v1271_v48 = vpop.f32.mrf.mxu0  ;;  %v3914_v2 = vld [vmem:[#allocation20_spill] sm:$0xff] }
 0x14a   : > { %2615 = vmatmul.msk.f32.gmra.mxu1 %vm232_vm0, %v3031_v56 }
 0x14b   : > { %v3490_v49 = vadd.f32 %v1268_v40, %v1078_v32  ;;  %2645 = vmatmul.msk.f32.gmra.mxu2 %vm232_vm0, %v3034_v57 }
 0x14c   : > { %2675 = vmatmul.msk.f32.gmra.mxu3 %vm232_vm0, %v2837_v13  ;;  %2705 = vmatmul.msk.f32.gmra.mxu0 %vm232_vm0, %v3059_v60 }
 0x14e   : > { %v783_v54 = vpop.f32.mrf.mxu2 }
 0x14f   : > { %v835_v55 = vadd.f32 %v783_v54, %v568_v8  ;;  %v1027_v15 = vpop.f32.mrf.mxu3  ;;  %v570_v42 = vpop.f32.mrf.mxu1 }
 0x150   : > { %v571_v13 = vadd.f32 %v570_v42, %v3168_v38 }
 0x151   : > { %v1079_v14 = vadd.f32 %v1027_v15, %v835_v55  ;;  %v1274_v36 = vpop.f32.mrf.mxu0  ;;  %v1831_v15 = vld [vmem:[%s2814_s6 + $0x61] sm:$0xff] }
 0x152   : > { %2616 = vmatmul.msk.f32.gmra.mxu1 %vm232_vm0, %v3045_v58  ;;  %v3910_v58 = vld [vmem:[#allocation16_spill] sm:$0xff] }
 0x153   : > { %v3501_v11 = vadd.f32 %v1271_v48, %v1079_v14  ;;  %2646 = vmatmul.msk.f32.gmra.mxu2 %vm232_vm0, %v3048_v59  ;;  %v3915_v14 = vld [vmem:[#allocation6_spill] sm:$0xff] }
 0x154   : > { %2676 = vmatmul.msk.f32.gmra.mxu3 %vm232_vm0, %v2857_v18  ;;  %2706 = vmatmul.msk.f32.gmra.mxu0 %vm232_vm0, %v3075_v63  ;;  %v3909_v18 = vld [vmem:[#allocation5_spill] sm:$0xff] }
 0x156   : > { %v786_v56 = vpop.f32.mrf.mxu2 }
 0x157   : > { %v836_v57 = vadd.f32 %v786_v56, %v571_v13  ;;  %v1030_v34 = vpop.f32.mrf.mxu3  ;;  %v573_v37 = vpop.f32.mrf.mxu1  ;;  %v3917_v13 = vld [vmem:[#allocation23_spill] sm:$0xff] }
 0x158   : > { %v574_v59 = vadd.f32 %v573_v37, %v3910_v58  ;;  %v1832_v58 = vld [vmem:[%s2814_s6 + $0x69] sm:$0xff] }
 0x159   : > { %v1080_v50 = vadd.f32 %v1030_v34, %v836_v57  ;;  %v1277_v51 = vpop.f32.mrf.mxu0 }
 0x15a   : > { %2617 = vmatmul.msk.f32.gmra.mxu1 %vm232_vm0, %v3059_v60  ;;  %v3911_v60 = vld [vmem:[#allocation3_spill] sm:$0xff] }
 0x15b   : > { %v3512_v12 = vadd.f32 %v1274_v36, %v1080_v50  ;;  %2647 = vmatmul.msk.f32.gmra.mxu2 %vm232_vm0, %v3062_v61  ;;  %v3913_v61 = vld [vmem:[#allocation8_spill] sm:$0xff]  ;;  %v3916_v36 = vld [vmem:[#allocation11_spill] sm:$0xff] }
 0x15c   : > { %2677 = vmatmul.msk.f32.gmra.mxu3 %vm232_vm0, %v2874_v22  ;;  %2707 = vmatmul.msk.f32.gmra.mxu0 %vm232_vm0, %v3909_v18  ;;  %v3912_v22 = vld [vmem:[#allocation2_spill] sm:$0xff] }
 0x15e   : > { %v789_v38 = vpop.f32.mrf.mxu2 }
 0x15f   : > { %v837_v43 = vadd.f32 %v789_v38, %v574_v59  ;;  %v1033_v62 = vpop.f32.mrf.mxu3  ;;  %v576_v40 = vpop.f32.mrf.mxu1 }
 0x160   : > { %v577_v25 = vadd.f32 %v576_v40, %v3914_v2 }
 0x161   : > { %v1081_v41 = vadd.f32 %v1033_v62, %v837_v43  ;;  %v1280_v52 = vpop.f32.mrf.mxu0  ;;  %v3919_v43 = vld [vmem:[#allocation14_spill] sm:$0xff]  ;;  %v3920_v62 = vld [vmem:[#allocation4_spill] sm:$0xff] }
 0x162   : > { %2618 = vmatmul.msk.f32.gmra.mxu1 %vm232_vm0, %v3075_v63 }
 0x163   : > { %v3523_v53 = vadd.f32 %v1277_v51, %v1081_v41  ;;  %2648 = vmatmul.msk.f32.gmra.mxu2 %vm232_vm0, %v3911_v60 }
 0x164   : > { %2678 = vmatmul.msk.f32.gmra.mxu3 %vm232_vm0, %v3912_v22  ;;  %2708 = vmatmul.msk.f32.gmra.mxu0 %vm232_vm0, %v3913_v61 }
 0x166   : > { %v792_v32 = vpop.f32.mrf.mxu2 }
 0x167   : > { %v838_v48 = vadd.f32 %v792_v32, %v577_v25  ;;  %v1036_v8 = vpop.f32.mrf.mxu3  ;;  %v579_v54 = vpop.f32.mrf.mxu1  ;;  %v1833_v25 = vld [vmem:[%s2814_s6 + $0x71] sm:$0xff] }
 0x168   : > { %v580_v56 = vadd.f32 %v579_v54, %v3917_v13  ;;  %v3923_v54 = vld [vmem:[#allocation7_spill] sm:$0xff] }
 0x169   : > { %v1082_v55 = vadd.f32 %v1036_v8, %v838_v48  ;;  %v1283_v42 = vpop.f32.mrf.mxu0  ;;  %v3922_v8 = vld [vmem:[#allocation18_spill] sm:$0xff] }
 0x16a   : > { %2619 = vmatmul.msk.f32.gmra.mxu1 %vm232_vm0, %v3909_v18  ;;  %v3918_v18 = vld [vmem:[#allocation9_spill] sm:$0xff] }
 0x16b   : > { %v3535_v63 = vadd.f32 %v1280_v52, %v1082_v55  ;;  %2649 = vmatmul.msk.f32.gmra.mxu2 %vm232_vm0, %v3915_v14 }
 0x16c   : > { %2679 = vmatmul.msk.f32.gmra.mxu3 %vm232_vm0, %v1831_v15  ;;  %2709 = vmatmul.msk.f32.gmra.mxu0 %vm232_vm0, %v3916_v36 }
 0x16e   : > { %v795_v57 = vpop.f32.mrf.mxu2 }
 0x16f   : > { %v839_v34 = vadd.f32 %v795_v57, %v580_v56  ;;  %v1039_v37 = vpop.f32.mrf.mxu3  ;;  %v582_v50 = vpop.f32.mrf.mxu1  ;;  %v1834_v57 = vld [vmem:[%s2814_s6 + $0x79] sm:$0xff] }
 0x170   : > { %v583_v40 = vadd.f32 %v582_v50, %v3920_v62  ;;  %v3925_v50 = vld [vmem:[#allocation22_spill] sm:$0xff] }
 0x171   : > { %v1083_v51 = vadd.f32 %v1039_v37, %v839_v34  ;;  %v1286_v59 = vpop.f32.mrf.mxu0 }
 0x172   : > { %2620 = vmatmul.msk.f32.gmra.mxu1 %vm232_vm0, %v3913_v61  ;;  %v3921_v61 = vld [vmem:[#allocation12_spill] sm:$0xff] }
 0x173   : > { %v3546_v38 = vadd.f32 %v1283_v42, %v1083_v51  ;;  %2650 = vmatmul.msk.f32.gmra.mxu2 %vm232_vm0, %v3918_v18  ;;  %v3926_v51 = vld [vmem:[#allocation10_spill] sm:$0xff] }
 0x174   : > { %2680 = vmatmul.msk.f32.gmra.mxu3 %vm232_vm0, %v1832_v58  ;;  %2710 = vmatmul.msk.f32.gmra.mxu0 %vm232_vm0, %v3919_v43 }
 0x176   : > { %v798_v41 = vpop.f32.mrf.mxu2 }
 0x177   : > { %v840_v52 = vadd.f32 %v798_v41, %v583_v40  ;;  %v1042_v60 = vpop.f32.mrf.mxu3  ;;  %v585_v22 = vpop.f32.mrf.mxu1 }
 0x178   : > { %v586_v55 = vadd.f32 %v585_v22, %v3923_v54 }
 0x179   : > { %v1084_v2 = vadd.f32 %v1042_v60, %v840_v52  ;;  %v1289_v32 = vpop.f32.mrf.mxu0  ;;  %v1835_v52 = vld [vmem:[%s2814_s6 + $0x81] sm:$0xff] }
 0x17a   : > { %2621 = vmatmul.msk.f32.gmra.mxu1 %vm232_vm0, %v3916_v36  ;;  %v3924_v36 = vld [vmem:[#allocation15_spill] sm:$0xff] }
 0x17b   : > { %v3557_v48 = vadd.f32 %v1286_v59, %v1084_v2  ;;  %2651 = vmatmul.msk.f32.gmra.mxu2 %vm232_vm0, %v3921_v61  ;;  %v3928_v2 = vld [vmem:[#allocation25_spill] sm:$0xff] }
 0x17c   : > { %2681 = vmatmul.msk.f32.gmra.mxu3 %vm232_vm0, %v1833_v25  ;;  %2711 = vmatmul.msk.f32.gmra.mxu0 %vm232_vm0, %v3922_v8  ;;  %v3929_v25 = vld [vmem:[#allocation13_spill] sm:$0xff] }
 0x17e   : > { %v801_v15 = vpop.f32.mrf.mxu2 }
 0x17f   : > { %v841_v42 = vadd.f32 %v801_v15, %v586_v55  ;;  %v1045_v14 = vpop.f32.mrf.mxu3  ;;  %v588_v13 = vpop.f32.mrf.mxu1 }
 0x180   : > { %v589_v58 = vadd.f32 %v588_v13, %v3926_v51 }
 0x181   : > { %v1085_v56 = vadd.f32 %v1045_v14, %v841_v42  ;;  %v1292_v34 = vpop.f32.mrf.mxu0  ;;  %v1836_v14 = vld [vmem:[%s2814_s6 + $0x89] sm:$0xff] }
 0x182   : > { %2622 = vmatmul.msk.f32.gmra.mxu1 %vm232_vm0, %v3919_v43  ;;  %v3927_v43 = vld [vmem:[#allocation19_spill] sm:$0xff] }
 0x183   : > { %v3568_v37 = vadd.f32 %v1289_v32, %v1085_v56  ;;  %2652 = vmatmul.msk.f32.gmra.mxu2 %vm232_vm0, %v3924_v36 }
 0x184   : > { %2682 = vmatmul.msk.f32.gmra.mxu3 %vm232_vm0, %v1834_v57  ;;  %2712 = vmatmul.msk.f32.gmra.mxu0 %vm232_vm0, %v3925_v50 }
 0x186   : > { %v804_v59 = vpop.f32.mrf.mxu2 }
 0x187   : > { %v842_v18 = vadd.f32 %v804_v59, %v589_v58  ;;  %v1048_v62 = vpop.f32.mrf.mxu3  ;;  %v591_v40 = vpop.f32.mrf.mxu1 }
 0x188   : > { %v592_v32 = vadd.f32 %v591_v40, %v3929_v25 }
 0x189   : > { %v1086_v41 = vadd.f32 %v1048_v62, %v842_v18  ;;  %v1295_v60 = vpop.f32.mrf.mxu0  ;;  %v1837_v18 = vld [vmem:[%s2814_s6 + $0x91] sm:$0xff] }
 0x18a   : > { %2623 = vmatmul.msk.f32.gmra.mxu1 %vm232_vm0, %v3922_v8  ;;  %v3930_v8 = vld [vmem:[#allocation17_spill] sm:$0xff] }
 0x18b   : > { %v3579_v22 = vadd.f32 %v1292_v34, %v1086_v41  ;;  %2653 = vmatmul.msk.f32.gmra.mxu2 %vm232_vm0, %v3927_v43 }
 0x18c   : > { %2683 = vmatmul.msk.f32.gmra.mxu3 %vm232_vm0, %v1835_v52  ;;  %2713 = vmatmul.msk.f32.gmra.mxu0 %vm232_vm0, %v3928_v2 }
 0x18e   : > { %v807_v61 = vpop.f32.mrf.mxu2 }
 0x18f   : > { %v843_v54 = vadd.f32 %v807_v61, %v592_v32  ;;  %v1051_v55 = vpop.f32.mrf.mxu3  ;;  %v594_v15 = vpop.f32.mrf.mxu1  ;;  %v1838_v32 = vld [vmem:[%s2814_s6 + $0x99] sm:$0xff] }
 0x190   : > { %v595_v57 = vadd.f32 %v594_v15, %v3930_v8  ;;  %v1839_v8 = vld [vmem:[%s2814_s6 + $0xa1] sm:$0xff] }
 0x191   : > { %v1087_v42 = vadd.f32 %v1051_v55, %v843_v54  ;;  %v1298_v13 = vpop.f32.mrf.mxu0 }
 0x192   : > { %2624 = vmatmul.msk.f32.gmra.mxu1 %vm232_vm0, %v3925_v50 }
 0x193   : > { %v3590_v56 = vadd.f32 %v1295_v60, %v1087_v42  ;;  %2654 = vmatmul.msk.f32.gmra.mxu2 %vm232_vm0, %v3222_v45  ;;  %v3931_v45 = vld [vmem:[#allocation21_spill] sm:$0xff] }
 0x194   : > { %2684 = vmatmul.msk.f32.gmra.mxu3 %vm232_vm0, %v1836_v14  ;;  %2714 = vmatmul.msk.f32.gmra.mxu0 %vm232_vm0, %v3254_v0 }
 0x196   : > { %v810_v34 = vpop.f32.mrf.mxu2 }
 0x197   : > { %v844_v36 = vadd.f32 %v810_v34, %v595_v57  ;;  %v1054_v51 = vpop.f32.mrf.mxu3  ;;  %v597_v58 = vpop.f32.mrf.mxu1 }
 0x198   : > { %v598_v50 = vadd.f32 %v597_v58, %v3931_v45 }
 0x199   : > { %v1088_v59 = vadd.f32 %v1054_v51, %v844_v36  ;;  %v1301_v62 = vpop.f32.mrf.mxu0 }
 0x19a   : > { %2625 = vmatmul.msk.f32.gmra.mxu1 %vm232_vm0, %v3928_v2 }
 0x19b   : > { %v3601_v40 = vadd.f32 %v1298_v13, %v1088_v59  ;;  %2655 = vmatmul.msk.f32.gmra.mxu2 %vm232_vm0, %v3242_v26  ;;  %v3932_v26 = vld [vmem:[#allocation24_spill] sm:$0xff] }
 0x19c   : > { %2685 = vmatmul.msk.f32.gmra.mxu3 %vm232_vm0, %v1837_v18  ;;  %2715 = vmatmul.msk.f32.gmra.mxu0 %vm232_vm0, %v3271_v47 }
 0x19e   : > { %v813_v41 = vpop.f32.mrf.mxu2 }
 0x19f   : > { %v845_v52 = vadd.f32 %v813_v41, %v598_v50  ;;  %v1057_v60 = vpop.f32.mrf.mxu3  ;;  %v600_v43 = vpop.f32.mrf.mxu1  ;;  %v3934_v50 = vld [vmem:[#allocation27_spill] sm:$0xff] }
 0x1a0   : > { %v601_v2 = vadd.f32 %v600_v43, %v3932_v26 }
 0x1a1   : > { %v1089_v25 = vadd.f32 %v1057_v60, %v845_v52  ;;  %v1304_v61 = vpop.f32.mrf.mxu0 }
 0x1a2   : > { %2626 = vmatmul.msk.f32.gmra.mxu1 %vm232_vm0, %v3254_v0 }
 0x1a3   : > { %v3612_v54 = vadd.f32 %v1301_v62, %v1089_v25  ;;  %2656 = vmatmul.msk.f32.gmra.mxu2 %vm232_vm0, %v3257_v9  ;;  %v3933_v9 = vld [vmem:[#allocation26_spill] sm:$0xff] }
 0x1a4   : > { %2686 = vmatmul.msk.f32.gmra.mxu3 %vm232_vm0, %v1838_v32  ;;  %2716 = vmatmul.msk.f32.gmra.mxu0 %vm232_vm0, %v3288_v1  ;;  %v3636_v62 = vld [vmem:[%s3846_s2] ss:$0 sm:$0xff] }
 0x1a6   : > { %v816_v55 = vpop.f32.mrf.mxu2 }
 0x1a7   : > { %v846_v15 = vadd.f32 %v816_v55, %v601_v2  ;;  %v1060_v42 = vpop.f32.mrf.mxu3  ;;  %v1467_v14 = vpop.f32.mrf.mxu1  ;;  %v3935_v55 = vld [vmem:[#allocation28_spill] sm:$0xff] }
 0x1a8   : > { %v1551_v34 = vadd.f32 %v1467_v14, %v3933_v9 }
 0x1a9   : > { %v1090_v13 = vadd.f32 %v1060_v42, %v846_v15  ;;  %v2199_v57 = vpop.f32.mrf.mxu0 }
 0x1aa   : > { %2627 = vmatmul.msk.f32.gmra.mxu1 %vm232_vm0, %v3271_v47  ;;  %v1840_v47 = vld [vmem:[%s2814_s6 + $0xa9] sm:$0xff] }
 0x1ab   : > { %v3623_v0 = vadd.f32 %v1304_v61, %v1090_v13  ;;  %2657 = vmatmul.msk.f32.gmra.mxu2 %vm232_vm0, %v3274_v19  ;;  %v1841_v61 = vld [vmem:[%s2814_s6 + $0xb1] sm:$0xff] }
 0x1ac   : > { %2687 = vmatmul.msk.f32.gmra.mxu3 %vm232_vm0, %v1839_v8  ;;  %2717 = vmatmul.msk.f32.gmra.mxu0 %vm232_vm0, %v3305_v35 }
 0x1ae   : > { %v1711_v36 = vpop.f32.mrf.mxu2 }
 0x1af   : > { %v1795_v51 = vadd.f32 %v1711_v36, %v1551_v34  ;;  %v1955_v58 = vpop.f32.mrf.mxu3  ;;  %v1470_v59 = vpop.f32.mrf.mxu1  ;;  %v1842_v34 = vld [vmem:[%s2814_s6 + $0xb9] sm:$0xff] }
 0x1b0   : > { %v1552_v41 = vadd.f32 %v1470_v59, %v3934_v50 }
 0x1b1   : > { %v2039_v18 = vadd.f32 %v1955_v58, %v1795_v51  ;;  %v2202_v45 = vpop.f32.mrf.mxu0  ;;  %v3936_v51 = vld [vmem:[#allocation29_spill] sm:$0xff] }
 0x1b2   : > { %2628 = vmatmul.msk.f32.gmra.mxu1 %vm232_vm0, %v3288_v1 }
 0x1b3   : > { %v2283_v19 = vadd.f32 %v2199_v57, %v2039_v18  ;;  %2658 = vmatmul.msk.f32.gmra.mxu2 %vm232_vm0, %v3291_v44 }
 0x1b4   : > { %2688 = vmatmul.msk.f32.gmra.mxu3 %vm232_vm0, %v1840_v47  ;;  %2718 = vmatmul.msk.f32.gmra.mxu0 %vm232_vm0, %v3322_v28 }
 0x1b5   : > { %v2315_v52 = vadd.f32 %v3636_v62, %v2283_v19 }
 0x1b6   : > { %v1714_v60 = vpop.f32.mrf.mxu2 }
 0x1b7   : > { %v2343_v1 = vmax.f32 %v2315_v52, 0.0  ;;  %v1796_v43 = vadd.f32 %v1714_v60, %v1552_v41  ;;  %v1958_v25 = vpop.f32.mrf.mxu3  ;;  %v1473_v44 = vpop.f32.mrf.mxu1  ;;  %v1843_v41 = vld [vmem:[%s2814_s6 + $0xc1] sm:$0xff] }
 0x1b8   : > { %v1553_v15 = vadd.f32 %v1473_v44, %v3935_v55  ;;  %v3937_v60 = vld [vmem:[#allocation30_spill] sm:$0xff] }
 0x1b9   : > { %2371 = vst.msk [vmem:[%s3652_s13] sm:$0xff] %vm232_vm0, %v2343_v1  ;;  %v2040_v32 = vadd.f32 %v1958_v25, %v1796_v43  ;;  %v2205_v26 = vpop.f32.mrf.mxu0 }
 0x1ba   : > { %2629 = vmatmul.msk.f32.gmra.mxu1 %vm232_vm0, %v3305_v35 }
 0x1bb   : > { %v2284_v2 = vadd.f32 %v2202_v45, %v2040_v32  ;;  %2659 = vmatmul.msk.f32.gmra.mxu2 %vm232_vm0, %v3308_v30 }
 0x1bc   : > { %2689 = vmatmul.msk.f32.gmra.mxu3 %vm232_vm0, %v1841_v61  ;;  %2719 = vmatmul.msk.f32.gmra.mxu0 %vm232_vm0, %v3339_v46 }
 0x1bd   : > { %v2316_v42 = vadd.f32 %v3636_v62, %v2284_v2  ;;  %v1844_v2 = vld [vmem:[%s2814_s6 + $0xc9] sm:$0xff] }
 0x1be   : > { %v1717_v14 = vpop.f32.mrf.mxu2 }
 0x1bf   : > { %v2344_v13 = vmax.f32 %v2316_v42, 0.0  ;;  %v1797_v8 = vadd.f32 %v1717_v14, %v1553_v15  ;;  %v1961_v57 = vpop.f32.mrf.mxu3  ;;  %v1476_v9 = vpop.f32.mrf.mxu1  ;;  %v3938_v15 = vld [vmem:[#allocation34_spill] sm:$0xff]  ;;  %v3939_v42 = vld [vmem:[#allocation31_spill] sm:$0xff] }
 0x1c0   : > { %v1554_v58 = vadd.f32 %v1476_v9, %v3936_v51  ;;  %v3940_v51 = vld [vmem:[#allocation36_spill] sm:$0xff] }
 0x1c1   : > { %2372 = vst.msk [vmem:[%s3652_s13 + $0x8] sm:$0xff] %vm232_vm0, %v2344_v13  ;;  %v2041_v35 = vadd.f32 %v1961_v57, %v1797_v8  ;;  %v2208_v30 = vpop.f32.mrf.mxu0 }
 0x1c2   : > { %2630 = vmatmul.msk.f32.gmra.mxu1 %vm232_vm0, %v3322_v28 }
 0x1c3   : > { %v2285_v36 = vadd.f32 %v2205_v26, %v2041_v35  ;;  %2660 = vmatmul.msk.f32.gmra.mxu2 %vm232_vm0, %v3325_v29 }
 0x1c4   : > { %2690 = vmatmul.msk.f32.gmra.mxu3 %vm232_vm0, %v1842_v34  ;;  %2720 = vmatmul.msk.f32.gmra.mxu0 %vm232_vm0, %v3356_v33 }
 0x1c5   : > { %v2317_v59 = vadd.f32 %v3636_v62, %v2285_v36 }
 0x1c6   : > { %v1720_v18 = vpop.f32.mrf.mxu2 }
 0x1c7   : > { %v2345_v47 = vmax.f32 %v2317_v59, 0.0  ;;  %v1798_v45 = vadd.f32 %v1720_v18, %v1554_v58  ;;  %v1964_v19 = vpop.f32.mrf.mxu3  ;;  %v1479_v50 = vpop.f32.mrf.mxu1  ;;  %v3941_v58 = vld [vmem:[#allocation32_spill] sm:$0xff] }
 0x1c8   : > { %v1555_v1 = vadd.f32 %v1479_v50, %v3937_v60 }
 0x1c9   : > { %2373 = vst.msk [vmem:[%s3652_s13 + $0x10] sm:$0xff] %vm232_vm0, %v2345_v47  ;;  %v2042_v28 = vadd.f32 %v1964_v19, %v1798_v45  ;;  %v2211_v29 = vpop.f32.mrf.mxu0 }
 0x1ca   : > { %2631 = vmatmul.msk.f32.gmra.mxu1 %vm232_vm0, %v3339_v46 }
 0x1cb   : > { %v2286_v52 = vadd.f32 %v2208_v30, %v2042_v28  ;;  %2661 = vmatmul.msk.f32.gmra.mxu2 %vm232_vm0, %v3342_v39  ;;  %v1845_v30 = vld [vmem:[%s2814_s6 + $0xd1] sm:$0xff] }
 0x1cc   : > { %2691 = vmatmul.msk.f32.gmra.mxu3 %vm232_vm0, %v1843_v41  ;;  %2721 = vmatmul.msk.f32.gmra.mxu0 %vm232_vm0, %v3373_v27  ;;  %v1846_v41 = vld [vmem:[%s2814_s6 + $0xd9] sm:$0xff] }
 0x1cd   : > { %v2318_v43 = vadd.f32 %v3636_v62, %v2286_v52  ;;  %v3942_v52 = vld [vmem:[#allocation33_spill] sm:$0xff] }
 0x1ce   : > { %v1723_v25 = vpop.f32.mrf.mxu2 }
 0x1cf   : > { %v2346_v44 = vmax.f32 %v2318_v43, 0.0  ;;  %v1799_v32 = vadd.f32 %v1723_v25, %v1555_v1  ;;  %v1967_v61 = vpop.f32.mrf.mxu3  ;;  %v1482_v26 = vpop.f32.mrf.mxu1 }
 0x1d0   : > { %v1556_v14 = vadd.f32 %v1482_v26, %v3939_v42 }
 0x1d1   : > { %2374 = vst.msk [vmem:[%s3652_s13 + $0x18] sm:$0xff] %vm232_vm0, %v2346_v44  ;;  %v2043_v46 = vadd.f32 %v1967_v61, %v1799_v32  ;;  %v2214_v39 = vpop.f32.mrf.mxu0 }
 0x1d2   : > { %2632 = vmatmul.msk.f32.gmra.mxu1 %vm232_vm0, %v3356_v33 }
 0x1d3   : > { %v2287_v55 = vadd.f32 %v2211_v29, %v2043_v46  ;;  %2662 = vmatmul.msk.f32.gmra.mxu2 %vm232_vm0, %v3359_v10 }
 0x1d4   : > { %2692 = vmatmul.msk.f32.gmra.mxu3 %vm232_vm0, %v1844_v2  ;;  %2722 = vmatmul.msk.f32.gmra.mxu0 %vm232_vm0, %v3938_v15 }
 0x1d5   : > { %v2319_v13 = vadd.f32 %v3636_v62, %v2287_v55 }
 0x1d6   : > { %v1726_v8 = vpop.f32.mrf.mxu2 }
 0x1d7   : > { %v2347_v57 = vmax.f32 %v2319_v13, 0.0  ;;  %v1800_v9 = vadd.f32 %v1726_v8, %v1556_v14  ;;  %v1970_v35 = vpop.f32.mrf.mxu3  ;;  %v1485_v34 = vpop.f32.mrf.mxu1 }
 0x1d8   : > { %v1557_v59 = vadd.f32 %v1485_v34, %v3941_v58  ;;  %v3944_v34 = vld [vmem:[#allocation37_spill] sm:$0xff] }
 0x1d9   : > { %2375 = vst.msk [vmem:[%s3652_s13 + $0x20] sm:$0xff] %vm232_vm0, %v2347_v57  ;;  %v2044_v33 = vadd.f32 %v1970_v35, %v1800_v9  ;;  %v2217_v10 = vpop.f32.mrf.mxu0  ;;  %v2092_v35 = vld [vmem:[%s2814_s6 + $0xea] sm:$0xff] }
 0x1da   : > { %2633 = vmatmul.msk.f32.gmra.mxu1 %vm232_vm0, %v3373_v27 }
 0x1db   : > { %v2288_v36 = vadd.f32 %v2214_v39, %v2044_v33  ;;  %2663 = vmatmul.msk.f32.gmra.mxu2 %vm232_vm0, %v3376_v16  ;;  %v3943_v39 = vld [vmem:[#allocation35_spill] sm:$0xff] }
 0x1dc   : > { %2693 = vmatmul.msk.f32.gmra.mxu3 %vm232_vm0, %v1845_v30  ;;  %2723 = vmatmul.msk.f32.gmra.mxu0 %vm232_vm0, %v3940_v51 }
 0x1dd   : > { %v2320_v18 = vadd.f32 %v3636_v62, %v2288_v36 }
 0x1de   : > { %v1729_v47 = vpop.f32.mrf.mxu2 }
 0x1df   : > { %v2348_v45 = vmax.f32 %v2320_v18, 0.0  ;;  %v1801_v19 = vadd.f32 %v1729_v47, %v1557_v59  ;;  %v1973_v50 = vpop.f32.mrf.mxu3  ;;  %v1488_v28 = vpop.f32.mrf.mxu1  ;;  %v1605_v18 = vld [vmem:[%s2814_s6 + $0xf0] sm:$0xff] }
 0x1e0   : > { %v1558_v60 = vadd.f32 %v1488_v28, %v3942_v52  ;;  %v1606_v52 = vld [vmem:[%s2814_s6 + $0xf8] sm:$0xff] }
 0x1e1   : > { %2376 = vst.msk [vmem:[%s3652_s13 + $0x28] sm:$0xff] %vm232_vm0, %v2348_v45  ;;  %v2045_v27 = vadd.f32 %v1973_v50, %v1801_v19  ;;  %v2220_v16 = vpop.f32.mrf.mxu0 }
 0x1e2   : > { %2634 = vmatmul.msk.f32.gmra.mxu1 %vm232_vm0, %v3938_v15 }
 0x1e3   : > { %v2289_v29 = vadd.f32 %v2217_v10, %v2045_v27  ;;  %2664 = vmatmul.msk.f32.gmra.mxu2 %vm232_vm0, %v3393_v20  ;;  %v2091_v20 = vld [vmem:[%s2814_s6 + $0xe2] sm:$0xff] }
 0x1e4   : > { %2694 = vmatmul.msk.f32.gmra.mxu3 %vm232_vm0, %v1846_v41  ;;  %2724 = vmatmul.msk.f32.gmra.mxu0 %vm232_vm0, %v3427_v17 }
 0x1e5   : > { %v2321_v1 = vadd.f32 %v3636_v62, %v2289_v29 }
 0x1e6   : > { %v1732_v43 = vpop.f32.mrf.mxu2 }
 0x1e7   : > { %v2349_v25 = vmax.f32 %v2321_v1, 0.0  ;;  %v1802_v44 = vadd.f32 %v1732_v43, %v1558_v60  ;;  %v1976_v32 = vpop.f32.mrf.mxu3  ;;  %v1491_v61 = vpop.f32.mrf.mxu1  ;;  %v1850_v1 = vld [vmem:[%s2814_s6 + $0xf9] sm:$0xff] }
 0x1e8   : > { %v1559_v55 = vadd.f32 %v1491_v61, %v3943_v39 }
 0x1e9   : > { %2377 = vst.msk [vmem:[%s3652_s13 + $0x30] sm:$0xff] %vm232_vm0, %v2349_v25  ;;  %v2046_v26 = vadd.f32 %v1976_v32, %v1802_v44  ;;  %v2223_v46 = vpop.f32.mrf.mxu0  ;;  %v2094_v25 = vld [vmem:[%s2814_s6 + $0xfa] sm:$0xff] }
 0x1ea   : > { %2635 = vmatmul.msk.f32.gmra.mxu1 %vm232_vm0, %v3940_v51 }
 0x1eb   : > { %v2290_v2 = vadd.f32 %v2220_v16, %v2046_v26  ;;  %2665 = vmatmul.msk.f32.gmra.mxu2 %vm232_vm0, %v3410_v24 }
 0x1ec   : > { %2695 = vmatmul.msk.f32.gmra.mxu3 %vm232_vm0, %v3413_v5  ;;  %2725 = vmatmul.msk.f32.gmra.mxu0 %vm232_vm0, %v2091_v20 }
 0x1ed   : > { %v2322_v15 = vadd.f32 %v3636_v62, %v2290_v2 }
 0x1ee   : > { %v1735_v42 = vpop.f32.mrf.mxu2 }
 0x1ef   : > { %v2350_v14 = vmax.f32 %v2322_v15, 0.0  ;;  %v1803_v13 = vadd.f32 %v1735_v42, %v1559_v55  ;;  %v1979_v8 = vpop.f32.mrf.mxu3  ;;  %v1494_v57 = vpop.f32.mrf.mxu1 }
 0x1f0   : > { %v1560_v33 = vadd.f32 %v1494_v57, %v3944_v34 }
 0x1f1   : > { %2378 = vst.msk [vmem:[%s3652_s13 + $0x38] sm:$0xff] %vm232_vm0, %v2350_v14  ;;  %v2047_v9 = vadd.f32 %v1979_v8, %v1803_v13  ;;  %v2226_v24 = vpop.f32.mrf.mxu0 }
 0x1f2   : > { %2636 = vmatmul.msk.f32.gmra.mxu1 %vm232_vm0, %v3427_v17 }
 0x1f3   : > { %v2291_v5 = vadd.f32 %v2223_v46, %v2047_v9  ;;  %2666 = vmatmul.msk.f32.gmra.mxu2 %vm232_vm0, %v3430_v31  ;;  %v1849_v31 = vld [vmem:[%s2814_s6 + $0xf1] sm:$0xff] }
 0x1f4   : > { %2696 = vmatmul.msk.f32.gmra.mxu3 %vm232_vm0, %v3433_v6  ;;  %2726 = vmatmul.msk.f32.gmra.mxu0 %vm232_vm0, %v2092_v35  ;;  %v2093_v6 = vld [vmem:[%s2814_s6 + $0xf2] sm:$0xff] }
 0x1f5   : > { %v2323_v30 = vadd.f32 %v3636_v62, %v2291_v5 }
 0x1f6   : > { %v1738_v10 = vpop.f32.mrf.mxu2 }
 0x1f7   : > { %v2351_v36 = vmax.f32 %v2323_v30, 0.0  ;;  %v1804_v51 = vadd.f32 %v1738_v10, %v1560_v33  ;;  %v1982_v58 = vpop.f32.mrf.mxu3  ;;  %v1497_v59 = vpop.f32.mrf.mxu1 }
 0x1f8   : > { %v1561_v19 = vadd.f32 %v1497_v59, %v3435_v23 }
 0x1f9   : > { %2379 = vst.msk [vmem:[%s3652_s13 + $0x40] sm:$0xff] %vm232_vm0, %v2351_v36  ;;  %v2048_v17 = vadd.f32 %v1982_v58, %v1804_v51  ;;  %v2229_v47 = vpop.f32.mrf.mxu0 }
 0x1fa   : > { %2637 = vmatmul.msk.f32.gmra.mxu1 %vm232_vm0, %v2091_v20 }
 0x1fb   : > { %v2292_v45 = vadd.f32 %v2226_v24, %v2048_v17  ;;  %2667 = vmatmul.msk.f32.gmra.mxu2 %vm232_vm0, %v1605_v18 }
 0x1fc   : > { %2697 = vmatmul.msk.f32.gmra.mxu3 %vm232_vm0, %v1849_v31  ;;  %2727 = vmatmul.msk.f32.gmra.mxu0 %vm232_vm0, %v2093_v6 }
 0x1fd   : > { %v2324_v50 = vadd.f32 %v3636_v62, %v2292_v45 }
 0x1fe   : > { %v1741_v28 = vpop.f32.mrf.mxu2 }
 0x1ff   : > { %v2352_v27 = vmax.f32 %v2324_v50, 0.0  ;;  %v1805_v41 = vadd.f32 %v1741_v28, %v1561_v19  ;;  %v1985_v16 = vpop.f32.mrf.mxu3  ;;  %v1500_v29 = vpop.f32.mrf.mxu1 }
 0x200   : > { %v1562_v23 = vadd.f32 %v1500_v29, %v3446_v3 }
 0x201   : > { %2380 = vst.msk [vmem:[%s3652_s13 + $0x48] sm:$0xff] %vm232_vm0, %v2352_v27  ;;  %v2049_v60 = vadd.f32 %v1985_v16, %v1805_v41  ;;  %v2232_v43 = vpop.f32.mrf.mxu0 }
 0x202   : > { %2638 = vmatmul.msk.f32.gmra.mxu1 %vm232_vm0, %v2092_v35 }
 0x203   : > { %v2293_v44 = vadd.f32 %v2229_v47, %v2049_v60  ;;  %2668 = vmatmul.msk.f32.gmra.mxu2 %vm232_vm0, %v1606_v52 }
 0x204   : > { %2698 = vmatmul.msk.f32.gmra.mxu3 %vm232_vm0, %v1850_v1  ;;  %2728 = vmatmul.msk.f32.gmra.mxu0 %vm232_vm0, %v2094_v25 }
 0x205   : > { %v2325_v32 = vadd.f32 %v3636_v62, %v2293_v44 }
 0x206   : > { %v1744_v61 = vpop.f32.mrf.mxu2 }
 0x207   : > { %v2353_v26 = vmax.f32 %v2325_v32, 0.0  ;;  %v1806_v46 = vadd.f32 %v1744_v61, %v1562_v23  ;;  %v1988_v20 = vpop.f32.mrf.mxu3  ;;  %v1503_v2 = vpop.f32.mrf.mxu1 }
 0x208   : > { %v1563_v42 = vadd.f32 %v1503_v2, %v3457_v21 }
 0x209   : > { %2381 = vst.msk [vmem:[%s3652_s13 + $0x50] sm:$0xff] %vm232_vm0, %v2353_v26  ;;  %v2050_v39 = vadd.f32 %v1988_v20, %v1806_v46  ;;  %v2235_v55 = vpop.f32.mrf.mxu0 }
 0x20b   : > { %v2294_v15 = vadd.f32 %v2232_v43, %v2050_v39 }
 0x20d   : > { %v2326_v14 = vadd.f32 %v3636_v62, %v2294_v15 }
 0x20e   : > { %v1747_v13 = vpop.f32.mrf.mxu2 }
 0x20f   : > { %v2354_v3 = vmax.f32 %v2326_v14, 0.0  ;;  %v1807_v8 = vadd.f32 %v1747_v13, %v1563_v42  ;;  %v1991_v57 = vpop.f32.mrf.mxu3  ;;  %v1506_v9 = vpop.f32.mrf.mxu1 }
 0x210   : > { %v1564_v34 = vadd.f32 %v1506_v9, %v3468_v4 }
 0x211   : > { %2382 = vst.msk [vmem:[%s3652_s13 + $0x58] sm:$0xff] %vm232_vm0, %v2354_v3  ;;  %v2051_v24 = vadd.f32 %v1991_v57, %v1807_v8  ;;  %v2238_v35 = vpop.f32.mrf.mxu0 }
 0x213   : > { %v2295_v5 = vadd.f32 %v2235_v55, %v2051_v24 }
 0x215   : > { %v2327_v33 = vadd.f32 %v3636_v62, %v2295_v5 }
 0x216   : > { %v1750_v30 = vpop.f32.mrf.mxu2 }
 0x217   : > { %v2355_v21 = vmax.f32 %v2327_v33, 0.0  ;;  %v1808_v10 = vadd.f32 %v1750_v30, %v1564_v34  ;;  %v1994_v36 = vpop.f32.mrf.mxu3  ;;  %v1509_v51 = vpop.f32.mrf.mxu1 }
 0x218   : > { %v1565_v17 = vadd.f32 %v1509_v51, %v3479_v7 }
 0x219   : > { %2383 = vst.msk [vmem:[%s3652_s13 + $0x60] sm:$0xff] %vm232_vm0, %v2355_v21  ;;  %v2052_v58 = vadd.f32 %v1994_v36, %v1808_v10  ;;  %v2241_v59 = vpop.f32.mrf.mxu0 }
 0x21b   : > { %v2296_v18 = vadd.f32 %v2238_v35, %v2052_v58 }
 0x21d   : > { %v2328_v31 = vadd.f32 %v3636_v62, %v2296_v18 }
 0x21e   : > { %v1753_v47 = vpop.f32.mrf.mxu2 }
 0x21f   : > { %v2356_v4 = vmax.f32 %v2328_v31, 0.0  ;;  %v1809_v6 = vadd.f32 %v1753_v47, %v1565_v17  ;;  %v1997_v45 = vpop.f32.mrf.mxu3  ;;  %v1512_v19 = vpop.f32.mrf.mxu1 }
 0x220   : > { %v1566_v41 = vadd.f32 %v1512_v19, %v3490_v49 }
 0x221   : > { %2384 = vst.msk [vmem:[%s3652_s13 + $0x68] sm:$0xff] %vm232_vm0, %v2356_v4  ;;  %v2053_v50 = vadd.f32 %v1997_v45, %v1809_v6  ;;  %v2244_v28 = vpop.f32.mrf.mxu0 }
 0x223   : > { %v2297_v27 = vadd.f32 %v2241_v59, %v2053_v50 }
 0x225   : > { %v2329_v16 = vadd.f32 %v3636_v62, %v2297_v27 }
 0x226   : > { %v1756_v29 = vpop.f32.mrf.mxu2 }
 0x227   : > { %v2357_v7 = vmax.f32 %v2329_v16, 0.0  ;;  %v1810_v52 = vadd.f32 %v1756_v29, %v1566_v41  ;;  %v2000_v60 = vpop.f32.mrf.mxu3  ;;  %v1515_v1 = vpop.f32.mrf.mxu1 }
 0x228   : > { %v1567_v23 = vadd.f32 %v1515_v1, %v3501_v11 }
 0x229   : > { %2385 = vst.msk [vmem:[%s3652_s13 + $0x70] sm:$0xff] %vm232_vm0, %v2357_v7  ;;  %v2054_v43 = vadd.f32 %v2000_v60, %v1810_v52  ;;  %v2247_v25 = vpop.f32.mrf.mxu0 }
 0x22b   : > { %v2298_v44 = vadd.f32 %v2244_v28, %v2054_v43 }
 0x22d   : > { %v2330_v32 = vadd.f32 %v3636_v62, %v2298_v44 }
 0x22e   : > { %v1759_v61 = vpop.f32.mrf.mxu2 }
 0x22f   : > { %v2358_v49 = vmax.f32 %v2330_v32, 0.0  ;;  %v1811_v26 = vadd.f32 %v1759_v61, %v1567_v23  ;;  %v2003_v46 = vpop.f32.mrf.mxu3  ;;  %v1518_v20 = vpop.f32.mrf.mxu1 }
 0x230   : > { %v1568_v15 = vadd.f32 %v1518_v20, %v3512_v12 }
 0x231   : > { %2386 = vst.msk [vmem:[%s3652_s13 + $0x78] sm:$0xff] %vm232_vm0, %v2358_v49  ;;  %v2055_v2 = vadd.f32 %v2003_v46, %v1811_v26  ;;  %v2250_v39 = vpop.f32.mrf.mxu0 }
 0x233   : > { %v2299_v55 = vadd.f32 %v2247_v25, %v2055_v2 }
 0x235   : > { %v2331_v42 = vadd.f32 %v3636_v62, %v2299_v55 }
 0x236   : > { %v1762_v14 = vpop.f32.mrf.mxu2 }
 0x237   : > { %v2359_v11 = vmax.f32 %v2331_v42, 0.0  ;;  %v1812_v13 = vadd.f32 %v1762_v14, %v1568_v15  ;;  %v2006_v3 = vpop.f32.mrf.mxu3  ;;  %v1521_v8 = vpop.f32.mrf.mxu1 }
 0x238   : > { %v1569_v35 = vadd.f32 %v1521_v8, %v3523_v53 }
 0x239   : > { %2387 = vst.msk [vmem:[%s3652_s13 + $0x80] sm:$0xff] %vm232_vm0, %v2359_v11  ;;  %v2056_v57 = vadd.f32 %v2006_v3, %v1812_v13  ;;  %v2253_v9 = vpop.f32.mrf.mxu0 }
 0x23b   : > { %v2300_v24 = vadd.f32 %v2250_v39, %v2056_v57 }
 0x23d   : > { %v2332_v5 = vadd.f32 %v3636_v62, %v2300_v24 }
 0x23e   : > { %v1765_v34 = vpop.f32.mrf.mxu2 }
 0x23f   : > { %v2360_v12 = vmax.f32 %v2332_v5, 0.0  ;;  %v1813_v33 = vadd.f32 %v1765_v34, %v1569_v35  ;;  %v2009_v30 = vpop.f32.mrf.mxu3  ;;  %v1524_v21 = vpop.f32.mrf.mxu1 }
 0x240   : > { %v1570_v58 = vadd.f32 %v1524_v21, %v3535_v63 }
 0x241   : > { %2388 = vst.msk [vmem:[%s3652_s13 + $0x88] sm:$0xff] %vm232_vm0, %v2360_v12  ;;  %v2057_v10 = vadd.f32 %v2009_v30, %v1813_v33  ;;  %v2256_v36 = vpop.f32.mrf.mxu0 }
 0x243   : > { %v2301_v51 = vadd.f32 %v2253_v9, %v2057_v10 }
 0x245   : > { %v2333_v59 = vadd.f32 %v3636_v62, %v2301_v51 }
 0x246   : > { %v1768_v18 = vpop.f32.mrf.mxu2 }
 0x247   : > { %v2361_v53 = vmax.f32 %v2333_v59, 0.0  ;;  %v1814_v17 = vadd.f32 %v1768_v18, %v1570_v58  ;;  %v2012_v31 = vpop.f32.mrf.mxu3  ;;  %v1527_v47 = vpop.f32.mrf.mxu1 }
 0x248   : > { %v1571_v19 = vadd.f32 %v1527_v47, %v3546_v38 }
 0x249   : > { %2389 = vst.msk [vmem:[%s3652_s13 + $0x90] sm:$0xff] %vm232_vm0, %v2361_v53  ;;  %v2058_v4 = vadd.f32 %v2012_v31, %v1814_v17  ;;  %v2259_v6 = vpop.f32.mrf.mxu0 }
 0x24b   : > { %v2302_v45 = vadd.f32 %v2256_v36, %v2058_v4 }
 0x24d   : > { %v2334_v50 = vadd.f32 %v3636_v62, %v2302_v45 }
 0x24e   : > { %v1771_v28 = vpop.f32.mrf.mxu2 }
 0x24f   : > { %v2362_v63 = vmax.f32 %v2334_v50, 0.0  ;;  %v1815_v27 = vadd.f32 %v1771_v28, %v1571_v19  ;;  %v2015_v41 = vpop.f32.mrf.mxu3  ;;  %v1530_v16 = vpop.f32.mrf.mxu1 }
 0x250   : > { %v1572_v60 = vadd.f32 %v1530_v16, %v3557_v48 }
 0x251   : > { %2390 = vst.msk [vmem:[%s3652_s13 + $0x98] sm:$0xff] %vm232_vm0, %v2362_v63  ;;  %v2059_v29 = vadd.f32 %v2015_v41, %v1815_v27  ;;  %v2262_v7 = vpop.f32.mrf.mxu0 }
 0x253   : > { %v2303_v52 = vadd.f32 %v2259_v6, %v2059_v29 }
 0x255   : > { %v2335_v1 = vadd.f32 %v3636_v62, %v2303_v52 }
 0x256   : > { %v1774_v43 = vpop.f32.mrf.mxu2 }
 0x257   : > { %v2363_v38 = vmax.f32 %v2335_v1, 0.0  ;;  %v1816_v25 = vadd.f32 %v1774_v43, %v1572_v60  ;;  %v2018_v44 = vpop.f32.mrf.mxu3  ;;  %v1533_v23 = vpop.f32.mrf.mxu1 }
 0x258   : > { %v1573_v26 = vadd.f32 %v1533_v23, %v3568_v37 }
 0x259   : > { %2391 = vst.msk [vmem:[%s3652_s13 + $0xa0] sm:$0xff] %vm232_vm0, %v2363_v38  ;;  %v2060_v32 = vadd.f32 %v2018_v44, %v1816_v25  ;;  %v2265_v61 = vpop.f32.mrf.mxu0 }
 0x25b   : > { %v2304_v49 = vadd.f32 %v2262_v7, %v2060_v32 }
 0x25d   : > { %v2336_v46 = vadd.f32 %v3636_v62, %v2304_v49 }
 0x25e   : > { %v1777_v20 = vpop.f32.mrf.mxu2 }
 0x25f   : > { %v2364_v48 = vmax.f32 %v2336_v46, 0.0  ;;  %v1817_v2 = vadd.f32 %v1777_v20, %v1573_v26  ;;  %v2021_v39 = vpop.f32.mrf.mxu3  ;;  %v1536_v55 = vpop.f32.mrf.mxu1 }
 0x260   : > { %v1574_v11 = vadd.f32 %v1536_v55, %v3579_v22 }
 0x261   : > { %2392 = vst.msk [vmem:[%s3652_s13 + $0xa8] sm:$0xff] %vm232_vm0, %v2364_v48  ;;  %v2061_v15 = vadd.f32 %v2021_v39, %v1817_v2  ;;  %v2268_v42 = vpop.f32.mrf.mxu0 }
 0x263   : > { %v2305_v14 = vadd.f32 %v2265_v61, %v2061_v15 }
 0x265   : > { %v2337_v13 = vadd.f32 %v3636_v62, %v2305_v14 }
 0x266   : > { %v1780_v3 = vpop.f32.mrf.mxu2 }
 0x267   : > { %v2365_v37 = vmax.f32 %v2337_v13, 0.0  ;;  %v1818_v8 = vadd.f32 %v1780_v3, %v1574_v11  ;;  %v2024_v57 = vpop.f32.mrf.mxu3  ;;  %v1539_v9 = vpop.f32.mrf.mxu1 }
 0x268   : > { %v1575_v34 = vadd.f32 %v1539_v9, %v3590_v56 }
 0x269   : > { %2393 = vst.msk [vmem:[%s3652_s13 + $0xb0] sm:$0xff] %vm232_vm0, %v2365_v37  ;;  %v2062_v24 = vadd.f32 %v2024_v57, %v1818_v8  ;;  %v2271_v35 = vpop.f32.mrf.mxu0 }
 0x26b   : > { %v2306_v5 = vadd.f32 %v2268_v42, %v2062_v24 }
 0x26d   : > { %v2338_v12 = vadd.f32 %v3636_v62, %v2306_v5 }
 0x26e   : > { %v1783_v33 = vpop.f32.mrf.mxu2 }
 0x26f   : > { %v2366_v22 = vmax.f32 %v2338_v12, 0.0  ;;  %v1819_v30 = vadd.f32 %v1783_v33, %v1575_v34  ;;  %v2027_v21 = vpop.f32.mrf.mxu3  ;;  %v1542_v10 = vpop.f32.mrf.mxu1 }
 0x270   : > { %v1576_v59 = vadd.f32 %v1542_v10, %v3601_v40 }
 0x271   : > { %2394 = vst.msk [vmem:[%s3652_s13 + $0xb8] sm:$0xff] %vm232_vm0, %v2366_v22  ;;  %v2063_v36 = vadd.f32 %v2027_v21, %v1819_v30  ;;  %v2274_v58 = vpop.f32.mrf.mxu0 }
 0x273   : > { %v2307_v51 = vadd.f32 %v2271_v35, %v2063_v36 }
 0x275   : > { %v2339_v18 = vadd.f32 %v3636_v62, %v2307_v51 }
 0x276   : > { %v1786_v53 = vpop.f32.mrf.mxu2 }
 0x277   : > { %v2367_v56 = vmax.f32 %v2339_v18, 0.0  ;;  %v1820_v17 = vadd.f32 %v1786_v53, %v1576_v59  ;;  %v2030_v31 = vpop.f32.mrf.mxu3  ;;  %v1545_v47 = vpop.f32.mrf.mxu1 }
 0x278   : > { %v1577_v45 = vadd.f32 %v1545_v47, %v3612_v54 }
 0x279   : > { %2395 = vst.msk [vmem:[%s3652_s13 + $0xc0] sm:$0xff] %vm232_vm0, %v2367_v56  ;;  %v2064_v4 = vadd.f32 %v2030_v31, %v1820_v17  ;;  %v2277_v28 = vpop.f32.mrf.mxu0 }
 0x27b   : > { %v2308_v6 = vadd.f32 %v2274_v58, %v2064_v4 }
 0x27d   : > { %v2340_v19 = vadd.f32 %v3636_v62, %v2308_v6 }
 0x27e   : > { %v1789_v50 = vpop.f32.mrf.mxu2 }
 0x27f   : > { %v2368_v40 = vmax.f32 %v2340_v19, 0.0  ;;  %v1821_v63 = vadd.f32 %v1789_v50, %v1577_v45  ;;  %v2033_v27 = vpop.f32.mrf.mxu3  ;;  %v1548_v16 = vpop.f32.mrf.mxu1 }
 0x280   : > { %v1578_v7 = vadd.f32 %v1548_v16, %v3623_v0 }
 0x281   : > { %2396 = vst.msk [vmem:[%s3652_s13 + $0xc8] sm:$0xff] %vm232_vm0, %v2368_v40  ;;  %v2065_v41 = vadd.f32 %v2033_v27, %v1821_v63  ;;  %v2280_v38 = vpop.f32.mrf.mxu0 }
 0x283   : > { %v2309_v29 = vadd.f32 %v2277_v28, %v2065_v41 }
 0x285   : > { %v2341_v52 = vadd.f32 %v3636_v62, %v2309_v29 }
 0x286   : > { %v1792_v60 = vpop.f32.mrf.mxu2 }
 0x287   : > { %v2369_v54 = vmax.f32 %v2341_v52, 0.0  ;;  %v1822_v1 = vadd.f32 %v1792_v60, %v1578_v7  ;;  %v2036_v43 = vpop.f32.mrf.mxu3 }
 0x289   : > { %2397 = vst.msk [vmem:[%s3652_s13 + $0xd0] sm:$0xff] %vm232_vm0, %v2369_v54  ;;  %v2066_v25 = vadd.f32 %v2036_v43, %v1822_v1 }
 0x28b   : > { %v2310_v44 = vadd.f32 %v2280_v38, %v2066_v25 }
 0x28d   : > { %v2342_v23 = vadd.f32 %v3636_v62, %v2310_v44 }
 0x28f   : > { %v2370_v32 = vmax.f32 %v2342_v23, 0.0 }
 0x291   : > { %2398 = vst.msk [vmem:[%s3652_s13 + $0xd8] sm:$0xff] %vm232_vm0, %v2370_v32 }
 0x292 PF: > { %s13_s12 = sadd.s32 1, %s2754_s12  }
 0x293   : > { %p10_p4 = scmp.ge.s32.totalorder %s13_s12, 4  }
 0x295   :  { %12 = sbr.rel (!%p10_p4) target bundleno = 1 (0x1), region = 70 }

// kernel: dqn_base_forward.5
= control target key start
LH: loop header
LB: loop body
LE: loop exit
PB: predicated region body
PF: predicated region fallthrough
CT: control target
= control target key end

     0   :  { %s754_s12 = smov 0   ;;  %s1231_s0 = inlined_call_operand.vmem [shape: f32[2,12,128], index: 0, kind: input, shape index: {}]   ;;  %s1232_s1 = inlined_call_operand.vmem [shape: f32[9,128,32], index: 1, kind: input, shape index: {}]   ;;  %s1233_s2 = inlined_call_operand.vmem [shape: f32[1,32], index: 2, kind: input, shape index: {}]   ;;  %s1234_s3 = inlined_call_operand.vmem [shape: f32[2,3,32], index: 3, kind: output, shape index: {}]  }
   0x1 LB: > { %s578_s13 = sadd.s32 4294967295, %s732_s12   ;;  %p582_p0 = scmp.ge.s32.totalorder %s732_s12, 1  ;;  %s732_s12 = sphi %s754_s12, %s13_s12  }
   0x2   : > { %p137_p1 = scmp.lt.s32.totalorder %s732_s12, 3 }
   0x4   : > { %p138_p2 = pnand %p582_p0, %p137_p1 }
   0x5   : > { %p1016_p3 = scmp.lt.s32.totalorder (!%p138_p2), %s578_s13, 1 }
   0x6   : > { %141 = sbr.rel (%p138_p2) target bundleno = 240 (0xf0), region = 32 }
   0xb   : > { %v601_v0 = vld [vmem:[%s1232_s1 + $0xf8] sm:$0xff]  ;;  %v600_v1 = vld [vmem:[%s1232_s1 + $0xf0] sm:$0xff]  ;;  %v599_v4 = vld [vmem:[%s1232_s1 + $0xe8] sm:$0xff]  ;;  %s1237_s13 = smov (!%p1016_p3, %s578_s13), 1  ;;  %vm523_vm0 = vcmask 256000  }
   0xc   : > { %204 = vmatpush.msra.mxu0 %v601_v0  ;;  %v617_v2 = vld [vmem:[%s1232_s1 + $0x178] sm:$0xff]  ;;  %v616_v3 = vld [vmem:[%s1232_s1 + $0x170] sm:$0xff]  ;;  %v615_v7 = vld [vmem:[%s1232_s1 + $0x168] sm:$0xff]  ;;  %s716_s15 = sshll.u32 %s1237_s13, 4  ;;  %s585_s9 = sshll.u32 %s1237_s13, 2 }
   0xd   : > { %262 = vmatpush.msra.mxu2 %v617_v2  ;;  %v633_v5 = vld [vmem:[%s1232_s1 + $0x1f8] sm:$0xff]  ;;  %v632_v8 = vld [vmem:[%s1232_s1 + $0x1f0] sm:$0xff]  ;;  %v598_v9 = vld [vmem:[%s1232_s1 + $0xe0] sm:$0xff]  ;;  %s1096_s30 = scalar_lea.vmem %s1231_s0, %s716_s15  ;;  %s168_s14 = scalar_lea.vmem %s1234_s3, %s585_s9 }
   0xe   : > { %v185_v6 = vld [vmem:[%s1232_s1 + $0x78] sm:$0xff]  ;;  %205 = vmatpush.msra.mxu0 %v600_v1  ;;  %301 = vmatpush.msra.mxu3 %v633_v5  ;;  %v184_v10 = vld [vmem:[%s1232_s1 + $0x70] sm:$0xff]  ;;  %v631_v11 = vld [vmem:[%s1232_s1 + $0x1e8] sm:$0xff] }
   0xf   : > { %263 = vmatpush.msra.mxu2 %v616_v3  ;;  %224 = vmatpush.msra.mxu1 %v185_v6  ;;  %v614_v12 = vld [vmem:[%s1232_s1 + $0x160] sm:$0xff]  ;;  %v183_v13 = vld [vmem:[%s1232_s1 + $0x68] sm:$0xff]  ;;  %v597_v14 = vld [vmem:[%s1232_s1 + $0xd8] sm:$0xff] }
  0x10   : > { %206 = vmatpush.msra.mxu0 %v599_v4  ;;  %302 = vmatpush.msra.mxu3 %v632_v8  ;;  %v630_v15 = vld [vmem:[%s1232_s1 + $0x1e0] sm:$0xff]  ;;  %v613_v16 = vld [vmem:[%s1232_s1 + $0x158] sm:$0xff]  ;;  %v596_v18 = vld [vmem:[%s1232_s1 + $0xd0] sm:$0xff] }
  0x11   : > { %264 = vmatpush.msra.mxu2 %v615_v7  ;;  %225 = vmatpush.msra.mxu1 %v184_v10  ;;  %v182_v17 = vld [vmem:[%s1232_s1 + $0x60] sm:$0xff]  ;;  %v629_v19 = vld [vmem:[%s1232_s1 + $0x1d8] sm:$0xff]  ;;  %v612_v20 = vld [vmem:[%s1232_s1 + $0x150] sm:$0xff] }
  0x12   : > { %207 = vmatpush.msra.mxu0 %v598_v9  ;;  %303 = vmatpush.msra.mxu3 %v631_v11  ;;  %v181_v21 = vld [vmem:[%s1232_s1 + $0x58] sm:$0xff]  ;;  %v595_v22 = vld [vmem:[%s1232_s1 + $0xc8] sm:$0xff]  ;;  %v628_v23 = vld [vmem:[%s1232_s1 + $0x1d0] sm:$0xff] }
  0x13   : > { %265 = vmatpush.msra.mxu2 %v614_v12  ;;  %226 = vmatpush.msra.mxu1 %v183_v13  ;;  %v611_v24 = vld [vmem:[%s1232_s1 + $0x148] sm:$0xff]  ;;  %v180_v25 = vld [vmem:[%s1232_s1 + $0x50] sm:$0xff]  ;;  %v594_v26 = vld [vmem:[%s1232_s1 + $0xc0] sm:$0xff] }
  0x14   : > { %208 = vmatpush.msra.mxu0 %v597_v14  ;;  %304 = vmatpush.msra.mxu3 %v630_v15  ;;  %v627_v27 = vld [vmem:[%s1232_s1 + $0x1c8] sm:$0xff]  ;;  %v610_v28 = vld [vmem:[%s1232_s1 + $0x140] sm:$0xff]  ;;  %v593_v30 = vld [vmem:[%s1232_s1 + $0xb8] sm:$0xff] }
  0x15   : > { %266 = vmatpush.msra.mxu2 %v613_v16  ;;  %227 = vmatpush.msra.mxu1 %v182_v17  ;;  %v179_v29 = vld [vmem:[%s1232_s1 + $0x48] sm:$0xff]  ;;  %v626_v31 = vld [vmem:[%s1232_s1 + $0x1c0] sm:$0xff]  ;;  %v609_v32 = vld [vmem:[%s1232_s1 + $0x138] sm:$0xff] }
  0x16   : > { %209 = vmatpush.msra.mxu0 %v596_v18  ;;  %305 = vmatpush.msra.mxu3 %v629_v19  ;;  %v178_v33 = vld [vmem:[%s1232_s1 + $0x40] sm:$0xff]  ;;  %v592_v34 = vld [vmem:[%s1232_s1 + $0xb0] sm:$0xff]  ;;  %v625_v35 = vld [vmem:[%s1232_s1 + $0x1b8] sm:$0xff] }
  0x17   : > { %267 = vmatpush.msra.mxu2 %v612_v20  ;;  %228 = vmatpush.msra.mxu1 %v181_v21  ;;  %v608_v36 = vld [vmem:[%s1232_s1 + $0x130] sm:$0xff]  ;;  %v177_v37 = vld [vmem:[%s1232_s1 + $0x38] sm:$0xff]  ;;  %v591_v38 = vld [vmem:[%s1232_s1 + $0xa8] sm:$0xff] }
  0x18   : > { %210 = vmatpush.msra.mxu0 %v595_v22  ;;  %306 = vmatpush.msra.mxu3 %v628_v23  ;;  %v624_v39 = vld [vmem:[%s1232_s1 + $0x1b0] sm:$0xff]  ;;  %v607_v40 = vld [vmem:[%s1232_s1 + $0x128] sm:$0xff]  ;;  %v590_v42 = vld [vmem:[%s1232_s1 + $0xa0] sm:$0xff] }
  0x19   : > { %268 = vmatpush.msra.mxu2 %v611_v24  ;;  %229 = vmatpush.msra.mxu1 %v180_v25  ;;  %v176_v41 = vld [vmem:[%s1232_s1 + $0x30] sm:$0xff]  ;;  %v623_v43 = vld [vmem:[%s1232_s1 + $0x1a8] sm:$0xff]  ;;  %v606_v44 = vld [vmem:[%s1232_s1 + $0x120] sm:$0xff] }
  0x1a   : > { %211 = vmatpush.msra.mxu0 %v594_v26  ;;  %307 = vmatpush.msra.mxu3 %v627_v27  ;;  %v175_v45 = vld [vmem:[%s1232_s1 + $0x28] sm:$0xff]  ;;  %v589_v46 = vld [vmem:[%s1232_s1 + $0x98] sm:$0xff]  ;;  %v622_v47 = vld [vmem:[%s1232_s1 + $0x1a0] sm:$0xff] }
  0x1b   : > { %269 = vmatpush.msra.mxu2 %v610_v28  ;;  %230 = vmatpush.msra.mxu1 %v179_v29  ;;  %v605_v48 = vld [vmem:[%s1232_s1 + $0x118] sm:$0xff]  ;;  %v174_v49 = vld [vmem:[%s1232_s1 + $0x20] sm:$0xff]  ;;  %v588_v50 = vld [vmem:[%s1232_s1 + $0x90] sm:$0xff] }
  0x1c   : > { %212 = vmatpush.msra.mxu0 %v593_v30  ;;  %308 = vmatpush.msra.mxu3 %v626_v31  ;;  %v621_v51 = vld [vmem:[%s1232_s1 + $0x198] sm:$0xff]  ;;  %v604_v52 = vld [vmem:[%s1232_s1 + $0x110] sm:$0xff]  ;;  %v587_v54 = vld [vmem:[%s1232_s1 + $0x88] sm:$0xff] }
  0x1d   : > { %270 = vmatpush.msra.mxu2 %v609_v32  ;;  %231 = vmatpush.msra.mxu1 %v178_v33  ;;  %v173_v53 = vld [vmem:[%s1232_s1 + $0x18] sm:$0xff]  ;;  %v620_v55 = vld [vmem:[%s1232_s1 + $0x190] sm:$0xff]  ;;  %v603_v56 = vld [vmem:[%s1232_s1 + $0x108] sm:$0xff] }
  0x1e   : > { %213 = vmatpush.msra.mxu0 %v592_v34  ;;  %309 = vmatpush.msra.mxu3 %v625_v35  ;;  %v172_v57 = vld [vmem:[%s1232_s1 + $0x10] sm:$0xff]  ;;  %v586_v58 = vld [vmem:[%s1232_s1 + $0x80] sm:$0xff]  ;;  %v619_v59 = vld [vmem:[%s1232_s1 + $0x188] sm:$0xff] }
  0x1f   : > { %271 = vmatpush.msra.mxu2 %v608_v36  ;;  %232 = vmatpush.msra.mxu1 %v177_v37  ;;  %v649_v60 = vld [vmem:[%s1232_s1 + $0x278] sm:$0xff]  ;;  %v602_v61 = vld [vmem:[%s1232_s1 + $0x100] sm:$0xff]  ;;  %v171_v63 = vld [vmem:[%s1232_s1 + $0x8] sm:$0xff] }
  0x20   : > { %214 = vmatpush.msra.mxu0 %v591_v38  ;;  %310 = vmatpush.msra.mxu3 %v624_v39  ;;  %v681_v62 = vld [vmem:[%s1232_s1 + $0x378] sm:$0xff]  ;;  %v648_v0 = vld [vmem:[%s1232_s1 + $0x270] sm:$0xff]  ;;  %v618_v1 = vld [vmem:[%s1232_s1 + $0x180] sm:$0xff] }
  0x21   : > { %272 = vmatpush.msra.mxu2 %v607_v40  ;;  %233 = vmatpush.msra.mxu1 %v176_v41  ;;  %v680_v2 = vld [vmem:[%s1232_s1 + $0x370] sm:$0xff]  ;;  %v697_v3 = vld [vmem:[%s1232_s1 + $0x3f8] sm:$0xff]  ;;  %v647_v4 = vld [vmem:[%s1232_s1 + $0x268] sm:$0xff] }
  0x22   : > { %215 = vmatpush.msra.mxu0 %v590_v42  ;;  %311 = vmatpush.msra.mxu3 %v623_v43  ;;  %v170_v5 = vld [vmem:[%s1232_s1] sm:$0xff]  ;;  %v665_v6 = vld [vmem:[%s1232_s1 + $0x2f8] sm:$0xff]  ;;  %v679_v7 = vld [vmem:[%s1232_s1 + $0x368] sm:$0xff] }
  0x23   : > { %273 = vmatpush.msra.mxu2 %v606_v44  ;;  %234 = vmatpush.msra.mxu1 %v175_v45  ;;  %v646_v8 = vld [vmem:[%s1232_s1 + $0x260] sm:$0xff]  ;;  %v696_v9 = vld [vmem:[%s1232_s1 + $0x3f0] sm:$0xff]  ;;  %v645_v12 = vld [vmem:[%s1232_s1 + $0x258] sm:$0xff] }
  0x24   : > { %216 = vmatpush.msra.mxu0 %v589_v46  ;;  %312 = vmatpush.msra.mxu3 %v622_v47  ;;  %v664_v10 = vld [vmem:[%s1232_s1 + $0x2f0] sm:$0xff]  ;;  %v678_v11 = vld [vmem:[%s1232_s1 + $0x360] sm:$0xff]  ;;  %v695_v13 = vld [vmem:[%s1232_s1 + $0x3e8] sm:$0xff] }
  0x25   : > { %274 = vmatpush.msra.mxu2 %v605_v48  ;;  %235 = vmatpush.msra.mxu1 %v174_v49  ;;  %v663_v14 = vld [vmem:[%s1232_s1 + $0x2e8] sm:$0xff]  ;;  %v677_v15 = vld [vmem:[%s1232_s1 + $0x358] sm:$0xff]  ;;  %v644_v16 = vld [vmem:[%s1232_s1 + $0x250] sm:$0xff] }
  0x26   : > { %217 = vmatpush.msra.mxu0 %v588_v50  ;;  %313 = vmatpush.msra.mxu3 %v621_v51  ;;  %v694_v17 = vld [vmem:[%s1232_s1 + $0x3e0] sm:$0xff]  ;;  %v676_v19 = vld [vmem:[%s1232_s1 + $0x350] sm:$0xff]  ;;  %v643_v20 = vld [vmem:[%s1232_s1 + $0x248] sm:$0xff] }
  0x27   : > { %275 = vmatpush.msra.mxu2 %v604_v52  ;;  %236 = vmatpush.msra.mxu1 %v173_v53  ;;  %v662_v18 = vld [vmem:[%s1232_s1 + $0x2e0] sm:$0xff]  ;;  %v693_v21 = vld [vmem:[%s1232_s1 + $0x3d8] sm:$0xff]  ;;  %v675_v23 = vld [vmem:[%s1232_s1 + $0x348] sm:$0xff] }
  0x28   : > { %218 = vmatpush.msra.mxu0 %v587_v54  ;;  %314 = vmatpush.msra.mxu3 %v620_v55  ;;  %v661_v22 = vld [vmem:[%s1232_s1 + $0x2d8] sm:$0xff]  ;;  %v642_v24 = vld [vmem:[%s1232_s1 + $0x240] sm:$0xff]  ;;  %v692_v25 = vld [vmem:[%s1232_s1 + $0x3d0] sm:$0xff] }
  0x29   : > { %276 = vmatpush.msra.mxu2 %v603_v56  ;;  %237 = vmatpush.msra.mxu1 %v172_v57  ;;  %v660_v26 = vld [vmem:[%s1232_s1 + $0x2d0] sm:$0xff]  ;;  %v674_v27 = vld [vmem:[%s1232_s1 + $0x340] sm:$0xff]  ;;  %v641_v28 = vld [vmem:[%s1232_s1 + $0x238] sm:$0xff] }
  0x2a   : > { %219 = vmatpush.msra.mxu0 %v586_v58  ;;  %315 = vmatpush.msra.mxu3 %v619_v59  ;;  %v691_v29 = vld [vmem:[%s1232_s1 + $0x3c8] sm:$0xff]  ;;  %v673_v31 = vld [vmem:[%s1232_s1 + $0x338] sm:$0xff]  ;;  %v640_v32 = vld [vmem:[%s1232_s1 + $0x230] sm:$0xff] }
  0x2b   : > { %277 = vmatpush.msra.mxu2 %v602_v61  ;;  %238 = vmatpush.msra.mxu1 %v171_v63  ;;  %v659_v30 = vld [vmem:[%s1232_s1 + $0x2c8] sm:$0xff]  ;;  %v690_v33 = vld [vmem:[%s1232_s1 + $0x3c0] sm:$0xff]  ;;  %v672_v35 = vld [vmem:[%s1232_s1 + $0x330] sm:$0xff] }
  0x2c   : > { %340 = vmatpush.msrb.mxu0 %v649_v60  ;;  %316 = vmatpush.msra.mxu3 %v618_v1  ;;  %v658_v34 = vld [vmem:[%s1232_s1 + $0x2c0] sm:$0xff]  ;;  %v639_v36 = vld [vmem:[%s1232_s1 + $0x228] sm:$0xff]  ;;  %v689_v37 = vld [vmem:[%s1232_s1 + $0x3b8] sm:$0xff] }
  0x2d   : > { %418 = vmatpush.msrb.mxu2 %v681_v62  ;;  %239 = vmatpush.msra.mxu1 %v170_v5  ;;  %v657_v38 = vld [vmem:[%s1232_s1 + $0x2b8] sm:$0xff]  ;;  %v671_v39 = vld [vmem:[%s1232_s1 + $0x328] sm:$0xff]  ;;  %v638_v40 = vld [vmem:[%s1232_s1 + $0x220] sm:$0xff] }
  0x2e   : > { %341 = vmatpush.msrb.mxu0 %v648_v0  ;;  %457 = vmatpush.msrb.mxu3 %v697_v3  ;;  %v688_v41 = vld [vmem:[%s1232_s1 + $0x3b0] sm:$0xff]  ;;  %v670_v43 = vld [vmem:[%s1232_s1 + $0x320] sm:$0xff]  ;;  %v637_v44 = vld [vmem:[%s1232_s1 + $0x218] sm:$0xff] }
  0x2f   : > { %419 = vmatpush.msrb.mxu2 %v680_v2  ;;  %379 = vmatpush.msrb.mxu1 %v665_v6  ;;  %v656_v42 = vld [vmem:[%s1232_s1 + $0x2b0] sm:$0xff]  ;;  %v687_v45 = vld [vmem:[%s1232_s1 + $0x3a8] sm:$0xff]  ;;  %v244_v46 = vld [vmem:[%s1096_s30 + $0x2] sm:$0x7] }
  0x30   : > { %342 = vmatpush.msrb.mxu0 %v647_v4  ;;  %458 = vmatpush.msrb.mxu3 %v696_v9  ;;  %v655_v47 = vld [vmem:[%s1232_s1 + $0x2a8] sm:$0xff]  ;;  %v636_v48 = vld [vmem:[%s1232_s1 + $0x210] sm:$0xff]  ;;  %v669_v49 = vld [vmem:[%s1232_s1 + $0x318] sm:$0xff] }
  0x31   : > { %420 = vmatpush.msrb.mxu2 %v679_v7  ;;  %380 = vmatpush.msrb.mxu1 %v664_v10  ;;  %v686_v50 = vld [vmem:[%s1232_s1 + $0x3a0] sm:$0xff]  ;;  %v635_v52 = vld [vmem:[%s1232_s1 + $0x208] sm:$0xff]  ;;  %v668_v55 = vld [vmem:[%s1232_s1 + $0x310] sm:$0xff] }
  0x32   : > { %343 = vmatpush.msrb.mxu0 %v646_v8  ;;  %459 = vmatpush.msrb.mxu3 %v695_v13  ;;  %v186_v51 = vld [vmem:[%s1096_s30 + $0x1] sm:$0x7]  ;;  %v685_v57 = vld [vmem:[%s1232_s1 + $0x398] sm:$0xff]  ;;  %v667_v61 = vld [vmem:[%s1232_s1 + $0x308] sm:$0xff] }
  0x33   : > { %421 = vmatpush.msrb.mxu2 %v678_v11  ;;  %381 = vmatpush.msrb.mxu1 %v663_v14  ;;  %v283_v53 = vld [vmem:[%s1096_s30 + $0x3] sm:$0x7]  ;;  %v169_v58 = vld [vmem:[%s1096_s30] sm:$0x7]  ;;  %v713_v59 = vld [vmem:[%s1232_s1 + $0x478] sm:$0xff] }
  0x34   : > { %344 = vmatpush.msrb.mxu0 %v645_v12  ;;  %460 = vmatpush.msrb.mxu3 %v694_v17  ;;  %v654_v54 = vld [vmem:[%s1232_s1 + $0x2a0] sm:$0xff]  ;;  %v653_v60 = vld [vmem:[%s1232_s1 + $0x298] sm:$0xff]  ;;  %v684_v62 = vld [vmem:[%s1232_s1 + $0x390] sm:$0xff] }
  0x35   : > { %422 = vmatpush.msrb.mxu2 %v677_v15  ;;  %382 = vmatpush.msrb.mxu1 %v662_v18  ;;  %v634_v56 = vld [vmem:[%s1232_s1 + $0x200] sm:$0xff]  ;;  %v712_v63 = vld [vmem:[%s1232_s1 + $0x470] sm:$0xff]  ;;  %v683_v2 = vld [vmem:[%s1232_s1 + $0x388] sm:$0xff] }
  0x36   : > { %345 = vmatpush.msrb.mxu0 %v644_v16  ;;  %461 = vmatpush.msrb.mxu3 %v693_v21  ;;  %v652_v0 = vld [vmem:[%s1232_s1 + $0x290] sm:$0xff]  ;;  %v666_v1 = vld [vmem:[%s1232_s1 + $0x300] sm:$0xff]  ;;  %v711_v4 = vld [vmem:[%s1232_s1 + $0x468] sm:$0xff] }
  0x37   : > { %423 = vmatpush.msrb.mxu2 %v676_v19  ;;  %383 = vmatpush.msrb.mxu1 %v661_v22  ;;  %v400_v3 = vld [vmem:[%s1096_s30 + $0x6] sm:$0x7]  ;;  %v709_v12 = vld [vmem:[%s1232_s1 + $0x458] sm:$0xff]  ;;  %v708_v13 = vld [vmem:[%s1232_s1 + $0x450] sm:$0xff] }
  0x38   : > { %346 = vmatpush.msrb.mxu0 %v643_v20  ;;  %462 = vmatpush.msrb.mxu3 %v692_v25  ;;  %v651_v5 = vld [vmem:[%s1232_s1 + $0x288] sm:$0xff]  ;;  %v682_v6 = vld [vmem:[%s1232_s1 + $0x380] sm:$0xff]  ;;  %v705_v16 = vld [vmem:[%s1232_s1 + $0x438] sm:$0xff] }
  0x39   : > { %424 = vmatpush.msrb.mxu2 %v675_v23  ;;  %384 = vmatpush.msrb.mxu1 %v660_v26  ;;  %v322_v7 = vld [vmem:[%s1096_s30 + $0x4] sm:$0x7]  ;;  %v439_v8 = vld [vmem:[%s1096_s30 + $0x7] sm:$0x7]  ;;  %v704_v17 = vld [vmem:[%s1232_s1 + $0x430] sm:$0xff] }
  0x3a   : > { %347 = vmatpush.msrb.mxu0 %v642_v24  ;;  %463 = vmatpush.msrb.mxu3 %v691_v29  ;;  %v710_v9 = vld [vmem:[%s1232_s1 + $0x460] sm:$0xff]  ;;  %v707_v14 = vld [vmem:[%s1232_s1 + $0x448] sm:$0xff]  ;;  %v701_v20 = vld [vmem:[%s1232_s1 + $0x418] sm:$0xff] }
  0x3b   : > { %425 = vmatpush.msrb.mxu2 %v674_v27  ;;  %385 = vmatpush.msrb.mxu1 %v659_v30  ;;  %v650_v10 = vld [vmem:[%s1232_s1 + $0x280] sm:$0xff]  ;;  %v703_v18 = vld [vmem:[%s1232_s1 + $0x428] sm:$0xff]  ;;  %v700_v21 = vld [vmem:[%s1232_s1 + $0x410] sm:$0xff] }
  0x3c   : > { %348 = vmatpush.msrb.mxu0 %v641_v28  ;;  %464 = vmatpush.msrb.mxu3 %v690_v33  ;;  %v361_v11 = vld [vmem:[%s1096_s30 + $0x5] sm:$0x7]  ;;  %v699_v22 = vld [vmem:[%s1232_s1 + $0x408] sm:$0xff] }
  0x3d   : > { %426 = vmatpush.msrb.mxu2 %v673_v31  ;;  %386 = vmatpush.msrb.mxu1 %v658_v34  ;;  %v706_v15 = vld [vmem:[%s1232_s1 + $0x440] sm:$0xff]  ;;  %v478_v24 = vld [vmem:[%s1096_s30 + $0x8] sm:$0x7] }
  0x3e   : > { %349 = vmatpush.msrb.mxu0 %v640_v32  ;;  %465 = vmatpush.msrb.mxu3 %v689_v37  ;;  %v702_v19 = vld [vmem:[%s1232_s1 + $0x420] sm:$0xff] }
  0x3f   : > { %427 = vmatpush.msrb.mxu2 %v672_v35  ;;  %387 = vmatpush.msrb.mxu1 %v657_v38  ;;  %v698_v23 = vld [vmem:[%s1232_s1 + $0x400] sm:$0xff] }
  0x40   : > { %350 = vmatpush.msrb.mxu0 %v639_v36  ;;  %466 = vmatpush.msrb.mxu3 %v688_v41 }
  0x41   : > { %428 = vmatpush.msrb.mxu2 %v671_v39  ;;  %388 = vmatpush.msrb.mxu1 %v656_v42 }
  0x42   : > { %351 = vmatpush.msrb.mxu0 %v638_v40  ;;  %467 = vmatpush.msrb.mxu3 %v687_v45  ;;  %v725_v40 = vld [vmem:[%s1233_s2] ss:$0 sm:$0xff] }
  0x43   : > { %429 = vmatpush.msrb.mxu2 %v670_v43  ;;  %389 = vmatpush.msrb.mxu1 %v655_v47 }
  0x44   : > { %352 = vmatpush.msrb.mxu0 %v637_v44  ;;  %278 = vmatmul.f32.vlgmr.msra.gmra.mxu2 %v244_v46 }
  0x45   : > { %430 = vmatpush.msrb.mxu2 %v669_v49  ;;  %468 = vmatpush.msrb.mxu3 %v686_v50 }
  0x46   : > { %353 = vmatpush.msrb.mxu0 %v636_v48  ;;  %317 = vmatmul.f32.vlgmr.msra.gmra.mxu3 %v283_v53 }
  0x47   : > { %220 = vmatmul.f32.vlgmr.msra.gmra.mxu0 %v186_v51  ;;  %390 = vmatpush.msrb.mxu1 %v654_v54 }
  0x48   : > { %354 = vmatpush.msrb.mxu0 %v635_v52  ;;  %431 = vmatpush.msrb.mxu2 %v668_v55 }
  0x49   : > { %469 = vmatpush.msrb.mxu3 %v685_v57  ;;  %240 = vmatmul.f32.vlgmr.msra.gmra.mxu1 %v169_v58 }
  0x4a   : > { %355 = vmatpush.msrb.mxu0 %v634_v56  ;;  %391 = vmatpush.msrb.mxu1 %v653_v60 }
  0x4b   : > { %432 = vmatpush.msrb.mxu2 %v667_v61  ;;  %470 = vmatpush.msrb.mxu3 %v684_v62 }
  0x4c   : > { %496 = vmatpush.msra.mxu0 %v713_v59  ;;  %392 = vmatpush.msrb.mxu1 %v652_v0 }
  0x4d   : > { %433 = vmatpush.msrb.mxu2 %v666_v1  ;;  %471 = vmatpush.msrb.mxu3 %v683_v2 }
  0x4e   : > { %497 = vmatpush.msra.mxu0 %v712_v63  ;;  %434 = vmatmul.f32.vlgmr.msrb.gmra.mxu2 %v400_v3 }
  0x4f   : > { %393 = vmatpush.msrb.mxu1 %v651_v5  ;;  %472 = vmatpush.msrb.mxu3 %v682_v6 }
  0x50   : > { %498 = vmatpush.msra.mxu0 %v711_v4  ;;  %473 = vmatmul.f32.vlgmr.msrb.gmra.mxu3 %v439_v8 }
  0x51   : > { %356 = vmatmul.f32.vlgmr.msrb.gmra.mxu0 %v322_v7  ;;  %394 = vmatpush.msrb.mxu1 %v650_v10 }
  0x52   : > { %499 = vmatpush.msra.mxu0 %v710_v9  ;;  %395 = vmatmul.f32.vlgmr.msrb.gmra.mxu1 %v361_v11 }
  0x54   : > { %500 = vmatpush.msra.mxu0 %v709_v12 }
  0x56   : > { %501 = vmatpush.msra.mxu0 %v708_v13 }
  0x58   : > { %502 = vmatpush.msra.mxu0 %v707_v14 }
  0x5a   : > { %503 = vmatpush.msra.mxu0 %v706_v15 }
  0x5c   : > { %504 = vmatpush.msra.mxu0 %v705_v16 }
  0x5e   : > { %505 = vmatpush.msra.mxu0 %v704_v17 }
  0x60   : > { %506 = vmatpush.msra.mxu0 %v703_v18 }
  0x62   : > { %507 = vmatpush.msra.mxu0 %v702_v19 }
  0x64   : > { %508 = vmatpush.msra.mxu0 %v701_v20 }
  0x66   : > { %509 = vmatpush.msra.mxu0 %v700_v21 }
  0x68   : > { %510 = vmatpush.msra.mxu0 %v699_v22 }
  0x6a   : > { %511 = vmatpush.msra.mxu0 %v698_v23 }
  0x6b   : > { %512 = vmatmul.f32.vlgmr.msra.gmra.mxu0 %v478_v24 }
  0xc4   : > { %v221_v26 = vpop.f32.mrf.mxu0 }
  0xc6   : > { %v241_v25 = vpop.f32.mrf.mxu1 }
  0xc7   : > { %v242_v27 = vadd.f32 %v241_v25, %v221_v26  ;;  %v279_v28 = vpop.f32.mrf.mxu2 }
  0xc9   : > { %v282_v29 = vadd.f32 %v279_v28, %v242_v27  ;;  %v318_v30 = vpop.f32.mrf.mxu3 }
  0xcb   : > { %v321_v31 = vadd.f32 %v318_v30, %v282_v29 }
  0xce   : > { %v357_v32 = vpop.f32.mrf.mxu0 }
  0xcf   : > { %v360_v33 = vadd.f32 %v357_v32, %v321_v31  ;;  %v396_v34 = vpop.f32.mrf.mxu1 }
  0xd1   : > { %v399_v35 = vadd.f32 %v396_v34, %v360_v33  ;;  %v435_v36 = vpop.f32.mrf.mxu2 }
  0xd3   : > { %v438_v37 = vadd.f32 %v435_v36, %v399_v35  ;;  %v474_v38 = vpop.f32.mrf.mxu3 }
  0xd5   : > { %v477_v39 = vadd.f32 %v474_v38, %v438_v37 }
  0xe8   : > { %v513_v41 = vpop.f32.mrf.mxu0 }
  0xe9   : > { %v516_v42 = vadd.f32 %v513_v41, %v477_v39 }
  0xeb   : > { %v521_v43 = vadd.f32 %v725_v40, %v516_v42 }
  0xed   : > { %v522_v44 = vmax.f32 %v521_v43, 0.0 }
  0xef   : > { %524 = vst.msk [vmem:[%s168_s14] sm:$0x7] %vm523_vm0, %v522_v44 }
  0xf0 PF: > { %s13_s12 = sadd.s32 1, %s732_s12  }
  0xf1   : > { %p10_p4 = scmp.ge.s32.totalorder %s13_s12, 4  }
  0xf3   :  { %12 = sbr.rel (!%p10_p4) target bundleno = 1 (0x1), region = 70 }

</bundles_post_ra>
